<compile_context>
chip_gen: v7x
topology: tpu7x:2x2x1
jax: 0.10.0
libtpu: 0.0.40
codegen_flags: <defaults>
</compile_context>

<pallas_src>
import functools

import jax
import jax.numpy as jnp
import numpy as np
from jax.experimental import pallas as pl
from jax.experimental.pallas import tpu as pltpu

KSIZE = 7
PAD = 3


def _rescbam_kernel(x_ref, w1t_ref, w2t_ref, toep_ref, o_ref, *, C, HW):
    """One grid step: Bt images, channel attention + spatial attention + residual.

    x_ref    : VMEM (Bt, C, HW)        input block (lane-dense layout)
    w1t_ref  : VMEM (C, Cr) f32        channel-MLP fc1 weight, transposed
    w2t_ref  : VMEM (Cr, C) f32        channel-MLP fc2 weight, transposed
    toep_ref : VMEM (2*HW, HW) f32     banded-Toeplitz matrix of the 7x7 conv
                                       (1/C folded into the 'avg' rows)
    o_ref    : VMEM (Bt, C, HW)        output block
    """
    hp = jax.lax.Precision.HIGHEST
    x = x_ref[...].astype(jnp.float32)                         # (Bt, C, HW)
    Bt = x.shape[0]

    # ---------------- Channel attention ----------------
    p_avg = jnp.sum(x, axis=-1) * (1.0 / HW)                   # (Bt, C)
    p_max = jnp.max(x, axis=-1)                                # (Bt, C)
    w1t = w1t_ref[...]                                         # (C, Cr)
    w2t = w2t_ref[...]                                         # (Cr, C)

    def mlp(v):                                                # (rows, C) -> (rows, C)
        if C >= 64:
            # Production-sized C: shared MLP on the MXU.
            h = jnp.maximum(
                jnp.dot(v, w1t, precision=hp, preferred_element_type=jnp.float32), 0.0)
            return jnp.dot(h, w2t, precision=hp, preferred_element_type=jnp.float32)
        # Toy C: exact f32 VPU form (matmul shapes would be degenerate).
        h = jnp.maximum(jnp.sum(v[:, :, None] * w1t[None, :, :], axis=1), 0.0)
        return jnp.sum(h[:, :, None] * w2t[None, :, :], axis=1)

    if C >= 64:
        pooled = jnp.concatenate([p_avg, p_max], axis=0)       # (2*Bt, C): one MXU pass
        fc = mlp(pooled)
        ca = jax.nn.sigmoid(fc[:Bt] + fc[Bt:])                 # (Bt, C)
    else:
        ca = jax.nn.sigmoid(mlp(p_avg) + mlp(p_max))           # (Bt, C)

    out = x * ca[:, :, None]                                   # (Bt, C, HW) == x * ca(x)

    # ------------- Spatial attention: banded-Toeplitz conv on the MXU -------------
    # Plain channel sum (the 1/C of the mean is folded into the Toeplitz rows).
    s_sum = jnp.sum(out, axis=1)                               # (Bt, HW)
    s_max = jnp.max(out, axis=1)                               # (Bt, HW)
    cat = jnp.concatenate([s_sum, s_max], axis=-1)             # (Bt, 2*HW), lane-dense
    sa = jax.nn.sigmoid(
        jnp.dot(cat, toep_ref[...], precision=hp,
                preferred_element_type=jnp.float32))           # (Bt, HW)

    # ---------------- Residual combine: (x*ca)*sa + x ----------------
    o_ref[...] = (out * sa[:, None, :] + x).astype(o_ref.dtype)


def _build_sa_toeplitz(w_sa, C, H, W):
    """Banded-Toeplitz matrix T of shape (2*HW, HW) such that

        concat([channel_sum, channel_max], -1) @ T
          == flat( conv7x7_same( [channel_sum/C, channel_max] ) )

    i.e. the zero-padded 7x7 'same' cross-correlation of the two reduced
    planes, with the 1/C of the channel mean folded into the 'avg' block.
    Index arrays are static numpy; the weight scatter is jnp (jit-safe)."""
    HW = H * W
    rows, cols, taps = [], [], []
    for c in range(2):
        for ki in range(-PAD, PAD + 1):
            for kj in range(-PAD, PAD + 1):
                i = np.arange(max(0, -ki), min(H, H - ki))
                j = np.arange(max(0, -kj), min(W, W - kj))
                if i.size == 0 or j.size == 0:
                    continue
                out_idx = (i[:, None] * W + j[None, :]).ravel()
                in_idx = ((i[:, None] + ki) * W + (j[None, :] + kj)).ravel()
                rows.append(c * HW + in_idx)
                cols.append(out_idx)
                taps.append(np.full(
                    out_idx.size,
                    c * KSIZE * KSIZE + (ki + PAD) * KSIZE + (kj + PAD),
                    np.int32))
    rows = np.concatenate(rows)
    cols = np.concatenate(cols)
    taps = np.concatenate(taps)

    w_flat = w_sa.reshape(2, KSIZE * KSIZE).astype(jnp.float32)
    w_flat = (w_flat * jnp.array([[1.0 / C], [1.0]], jnp.float32)).reshape(-1)  # (98,)
    toep = jnp.zeros((2 * HW, HW), jnp.float32).at[rows, cols].add(w_flat[taps])
    return toep


def _vmem_capacity_bytes():
    try:
        return int(pltpu.get_tpu_info().vmem_capacity_bytes)
    except Exception:
        return 64 << 20  # conservative (v7x per-TC)


def _block_budget_bytes(vmem_cap):
    # ~8 MiB blocks on 128 MiB parts (v5e/v6e), ~3 MiB on 64 MiB parts (v7x).
    return (8 << 20) if vmem_cap >= (128 << 20) else (3 << 20)


def _pick_batch_tile(n, per_image_bytes, max_block_bytes):
    """Largest divisor Bt of n with Bt*per_image_bytes <= max_block_bytes,
    keeping the grid >= 2 steps when possible (v7x has 2 TensorCores)."""
    cap = n if n < 2 else n // 2
    best = 1
    for bt in range(1, cap + 1):
        if n % bt == 0 and bt * per_image_bytes <= max_block_bytes:
            best = bt
    return best


def rescbam(x, w_fc1, w_fc2, w_sa):
    """ResCBAM forward pass.

    x     : (N, C, H, W) f32 (or bf16)
    w_fc1 : (C//r, C, 1, 1) f32   channel-attention fc1 weight (bias=False)
    w_fc2 : (C, C//r, 1, 1) f32   channel-attention fc2 weight (bias=False)
    w_sa  : (1, 2, 7, 7) f32      spatial-attention conv weight (bias=False)
    """
    N, C, H, W = x.shape
    HW = H * W
    Cr = w_fc1.shape[0]

    xf = x.reshape(N, C, HW)                                   # lane-dense layout
    w1t = w_fc1.reshape(Cr, C).astype(jnp.float32).T           # (C, Cr)
    w2t = w_fc2.reshape(C, Cr).astype(jnp.float32).T           # (Cr, C)
    toep = _build_sa_toeplitz(w_sa, C, H, W)                   # (2*HW, HW)

    vmem_cap = _vmem_capacity_bytes()
    per_image_bytes = C * HW * x.dtype.itemsize
    Bt = _pick_batch_tile(N, per_image_bytes, _block_budget_bytes(vmem_cap))
    grid = (N // Bt,)

    block_bytes = Bt * per_image_bytes
    toep_bytes = 2 * HW * HW * 4
    # in/out double-buffered blocks + (possibly double-buffered) Toeplitz + margin,
    # capped at 3/4 of physical VMEM.
    vmem_limit = min(int(vmem_cap * 3 // 4),
                     max(32 << 20, 4 * block_bytes + 2 * toep_bytes + (8 << 20)))

    kernel = functools.partial(_rescbam_kernel, C=C, HW=HW)

    out_flat = pl.pallas_call(
        kernel,
        out_shape=jax.ShapeDtypeStruct((N, C, HW), x.dtype),
        grid=grid,
        in_specs=[
            pl.BlockSpec((Bt, C, HW), lambda b: (b, 0, 0)),    # x block
            pl.BlockSpec((C, Cr), lambda b: (0, 0)),           # fc1^T
            pl.BlockSpec((Cr, C), lambda b: (0, 0)),           # fc2^T
            pl.BlockSpec((2 * HW, HW), lambda b: (0, 0)),      # conv Toeplitz
        ],
        out_specs=pl.BlockSpec((Bt, C, HW), lambda b: (b, 0, 0)),
        compiler_params=pltpu.CompilerParams(
            dimension_semantics=("parallel",),
            vmem_limit_bytes=vmem_limit,
        ),
    )(xf, w1t, w2t, toep)
    return out_flat.reshape(N, C, H, W)


def _reference(x, w_fc1, w_fc2, w_sa):
    """Pure-JAX ResCBAM reference (high precision) for validation."""
    N, C, H, W = x.shape
    Cr = w_fc1.shape[0]
    hp = jax.lax.Precision.HIGHEST
    W1 = w_fc1.reshape(Cr, C)
    W2 = w_fc2.reshape(C, Cr)

    avg = jnp.mean(x, axis=(2, 3))                             # (N, C)
    mx = jnp.max(x, axis=(2, 3))                               # (N, C)

    def fc(v):
        h = jax.nn.relu(jnp.einsum("nc,oc->no", v, W1, precision=hp))
        return jnp.einsum("nc,oc->no", h, W2, precision=hp)

    ca = jax.nn.sigmoid(fc(avg) + fc(mx))[:, :, None, None]    # (N, C, 1, 1)
    out = x * ca

    s_avg = jnp.mean(out, axis=1, keepdims=True)
    s_max = jnp.max(out, axis=1, keepdims=True)
    cat = jnp.concatenate([s_avg, s_max], axis=1)
    conv = jax.lax.conv_general_dilated(
        cat, w_sa, (1, 1), ((PAD, PAD), (PAD, PAD)),
        dimension_numbers=("NCHW", "OIHW", "NCHW"), precision=hp)
    sa = jax.nn.sigmoid(conv)
    return out * sa + x


if __name__ == "__main__":
    key = jax.random.PRNGKey(0)
    kx, k1, k2, k3 = jax.random.split(key, 4)

    N, C, H, W = 2, 4, 16, 16
    ratio = 4
    Cr = C // ratio

    x = jax.random.normal(kx, (N, C, H, W), dtype=jnp.float32)
    w_fc1 = jax.random.normal(k1, (Cr, C, 1, 1), dtype=jnp.float32) * jnp.sqrt(2.0 / C)
    w_fc2 = jax.random.normal(k2, (C, Cr, 1, 1), dtype=jnp.float32) * jnp.sqrt(2.0 / max(Cr, 1))
    w_sa = jax.random.normal(k3, (1, 2, KSIZE, KSIZE), dtype=jnp.float32) * jnp.sqrt(
        2.0 / (2 * KSIZE * KSIZE))

    out = jax.block_until_ready(rescbam(x, w_fc1, w_fc2, w_sa))
    ref = jax.block_until_ready(_reference(x, w_fc1, w_fc2, w_sa))

    assert out.shape == x.shape, out.shape
    np.testing.assert_allclose(np.asarray(out), np.asarray(ref), rtol=1e-5, atol=1e-5)

    print("KERNEL_OK")
</pallas_src>

<mosaic_0001>
module attributes {stable_mosaic.version = 11 : i64} {
  func.func @_rescbam_kernel(%arg0: i32, %arg1: memref<1x4x256xf32, #tpu.memory_space<vmem>>, %arg2: memref<4x1xf32, #tpu.memory_space<vmem>>, %arg3: memref<1x4xf32, #tpu.memory_space<vmem>>, %arg4: memref<512x256xf32, #tpu.memory_space<vmem>>, %arg5: memref<1x4x256xf32, #tpu.memory_space<vmem>>) attributes {dimension_semantics = [#tpu.dimension_semantics<parallel>], iteration_bounds = array<i64: 2>, scalar_prefetch = 0 : i64, scratch_operands = 0 : i64, tpu.core_type = #tpu.core_type<tc>, window_params = [{transform_indices = @transform_0, window_bounds = array<i64: 1, 4, 256>}, {pipeline_mode = #tpu.pipeline_mode<synchronous>, transform_indices = @transform_1, window_bounds = array<i64: 4, 1>}, {pipeline_mode = #tpu.pipeline_mode<synchronous>, transform_indices = @transform_2, window_bounds = array<i64: 1, 4>}, {pipeline_mode = #tpu.pipeline_mode<synchronous>, transform_indices = @transform_3, window_bounds = array<i64: 512, 256>}, {transform_indices = @transform_4, window_bounds = array<i64: 1, 4, 256>}]} {
    %c0 = arith.constant 0 : index
    %c0_0 = arith.constant 0 : index
    %c0_1 = arith.constant 0 : index
    %0 = vector.load %arg1[%c0, %c0_0, %c0_1] : memref<1x4x256xf32, #tpu.memory_space<vmem>>, vector<1x4x256xf32>
    %cst = arith.constant dense<0.000000e+00> : vector<1x4xf32>
    %1 = vector.multi_reduction <add>, %0, %cst [2] : vector<1x4x256xf32> to vector<1x4xf32>
    %cst_2 = arith.constant 3.906250e-03 : f32
    %2 = vector.broadcast %cst_2 : f32 to vector<1x4xf32>
    %3 = arith.mulf %1, %2 : vector<1x4xf32>
    %cst_3 = arith.constant dense<0xFF800000> : vector<1x4xf32>
    %4 = vector.multi_reduction <maximumf>, %0, %cst_3 [2] : vector<1x4x256xf32> to vector<1x4xf32>
    %c0_4 = arith.constant 0 : index
    %c0_5 = arith.constant 0 : index
    %5 = vector.load %arg2[%c0_4, %c0_5] : memref<4x1xf32, #tpu.memory_space<vmem>>, vector<4x1xf32>
    %c0_6 = arith.constant 0 : index
    %c0_7 = arith.constant 0 : index
    %6 = vector.load %arg3[%c0_6, %c0_7] : memref<1x4xf32, #tpu.memory_space<vmem>>, vector<1x4xf32>
    %7 = vector.shape_cast %3 : vector<1x4xf32> to vector<1x4x1xf32>
    %8 = vector.shape_cast %5 : vector<4x1xf32> to vector<1x4x1xf32>
    %9 = arith.mulf %7, %8 : vector<1x4x1xf32>
    %cst_8 = arith.constant dense<0.000000e+00> : vector<1x1xf32>
    %10 = vector.multi_reduction <add>, %9, %cst_8 [1] : vector<1x4x1xf32> to vector<1x1xf32>
    %cst_9 = arith.constant 0.000000e+00 : f32
    %11 = vector.broadcast %cst_9 : f32 to vector<1x1xf32>
    %12 = arith.maximumf %10, %11 : vector<1x1xf32>
    %13 = vector.shape_cast %12 : vector<1x1xf32> to vector<1x1x1xf32>
    %14 = vector.shape_cast %6 : vector<1x4xf32> to vector<1x1x4xf32>
    %15 = vector.broadcast %13 : vector<1x1x1xf32> to vector<1x1x4xf32>
    %16 = arith.mulf %15, %14 : vector<1x1x4xf32>
    %cst_10 = arith.constant dense<0.000000e+00> : vector<1x4xf32>
    %17 = vector.multi_reduction <add>, %16, %cst_10 [1] : vector<1x1x4xf32> to vector<1x4xf32>
    %18 = vector.shape_cast %4 : vector<1x4xf32> to vector<1x4x1xf32>
    %19 = vector.shape_cast %5 : vector<4x1xf32> to vector<1x4x1xf32>
    %20 = arith.mulf %18, %19 : vector<1x4x1xf32>
    %cst_11 = arith.constant dense<0.000000e+00> : vector<1x1xf32>
    %21 = vector.multi_reduction <add>, %20, %cst_11 [1] : vector<1x4x1xf32> to vector<1x1xf32>
    %cst_12 = arith.constant 0.000000e+00 : f32
    %22 = vector.broadcast %cst_12 : f32 to vector<1x1xf32>
    %23 = arith.maximumf %21, %22 : vector<1x1xf32>
    %24 = vector.shape_cast %23 : vector<1x1xf32> to vector<1x1x1xf32>
    %25 = vector.shape_cast %6 : vector<1x4xf32> to vector<1x1x4xf32>
    %26 = vector.broadcast %24 : vector<1x1x1xf32> to vector<1x1x4xf32>
    %27 = arith.mulf %26, %25 : vector<1x1x4xf32>
    %cst_13 = arith.constant dense<0.000000e+00> : vector<1x4xf32>
    %28 = vector.multi_reduction <add>, %27, %cst_13 [1] : vector<1x1x4xf32> to vector<1x4xf32>
    %29 = arith.addf %17, %28 : vector<1x4xf32>
    %30 = arith.negf %29 : vector<1x4xf32>
    %31 = math.exp %30 : vector<1x4xf32>
    %cst_14 = arith.constant 1.000000e+00 : f32
    %32 = vector.broadcast %cst_14 : f32 to vector<1x4xf32>
    %33 = arith.addf %32, %31 : vector<1x4xf32>
    %34 = arith.divf %32, %33 : vector<1x4xf32>
    %35 = vector.shape_cast %34 : vector<1x4xf32> to vector<1x4x1xf32>
    %36 = vector.broadcast %35 : vector<1x4x1xf32> to vector<1x4x256xf32>
    %37 = arith.mulf %0, %36 : vector<1x4x256xf32>
    %cst_15 = arith.constant dense<0.000000e+00> : vector<1x256xf32>
    %38 = vector.multi_reduction <add>, %37, %cst_15 [1] : vector<1x4x256xf32> to vector<1x256xf32>
    %cst_16 = arith.constant dense<0xFF800000> : vector<1x256xf32>
    %39 = vector.multi_reduction <maximumf>, %37, %cst_16 [1] : vector<1x4x256xf32> to vector<1x256xf32>
    %40 = tpu.concatenate %38, %39 in 1 : vector<1x256xf32>, vector<1x256xf32> -> vector<1x512xf32>
    %c0_17 = arith.constant 0 : index
    %c0_18 = arith.constant 0 : index
    %41 = vector.load %arg4[%c0_17, %c0_18] : memref<512x256xf32, #tpu.memory_space<vmem>>, vector<512x256xf32>
    %cst_19 = arith.constant dense<0.000000e+00> : vector<1x256xf32>
    %42 = tpu.matmul %40, %41, %cst_19 {dimension_numbers = #tpu.dot_dimension_numbers<[1], [0], [0], [1], [0, 0, 1, 1], [], []>, precision = #tpu.contract_precision<fp32>} : vector<1x512xf32>, vector<512x256xf32>, vector<1x256xf32> -> vector<1x256xf32>
    %43 = arith.negf %42 : vector<1x256xf32>
    %44 = math.exp %43 : vector<1x256xf32>
    %cst_20 = arith.constant 1.000000e+00 : f32
    %45 = vector.broadcast %cst_20 : f32 to vector<1x256xf32>
    %46 = arith.addf %45, %44 : vector<1x256xf32>
    %47 = arith.divf %45, %46 : vector<1x256xf32>
    %48 = vector.shape_cast %47 : vector<1x256xf32> to vector<1x1x256xf32>
    %49 = vector.broadcast %48 : vector<1x1x256xf32> to vector<1x4x256xf32>
    %50 = arith.mulf %37, %49 : vector<1x4x256xf32>
    %51 = arith.addf %50, %0 : vector<1x4x256xf32>
    %c0_21 = arith.constant 0 : index
    %c0_22 = arith.constant 0 : index
    %c0_23 = arith.constant 0 : index
    %52 = vector.load %arg5[%c0_21, %c0_22, %c0_23] : memref<1x4x256xf32, #tpu.memory_space<vmem>>, vector<1x4x256xf32>
    tpu.vector_store %arg5[%c0_21, %c0_22, %c0_23], %51 {strides = array<i32>} : memref<1x4x256xf32, #tpu.memory_space<vmem>>, vector<1x4x256xf32>,
    return
  }
  func.func @transform_0(%arg0: i32) -> (i32, i32, i32) {
    %c0_i32 = arith.constant 0 : i32
    %c0_i32_0 = arith.constant 0 : i32
    %c0_i32_1 = arith.constant 0 : i32
    return %arg0, %c0_i32, %c0_i32_0 : i32, i32, i32
  }
  func.func @transform_1(%arg0: i32) -> (i32, i32) {
    %c0_i32 = arith.constant 0 : i32
    %c0_i32_0 = arith.constant 0 : i32
    %c0_i32_1 = arith.constant 0 : i32
    return %c0_i32, %c0_i32_0 : i32, i32
  }
  func.func @transform_2(%arg0: i32) -> (i32, i32) {
    %c0_i32 = arith.constant 0 : i32
    %c0_i32_0 = arith.constant 0 : i32
    %c0_i32_1 = arith.constant 0 : i32
    return %c0_i32, %c0_i32_0 : i32, i32
  }
  func.func @transform_3(%arg0: i32) -> (i32, i32) {
    %c0_i32 = arith.constant 0 : i32
    %c0_i32_0 = arith.constant 0 : i32
    %c0_i32_1 = arith.constant 0 : i32
    return %c0_i32, %c0_i32_0 : i32, i32
  }
  func.func @transform_4(%arg0: i32) -> (i32, i32, i32) {
    %c0_i32 = arith.constant 0 : i32
    %c0_i32_0 = arith.constant 0 : i32
    %c0_i32_1 = arith.constant 0 : i32
    return %arg0, %c0_i32, %c0_i32_0 : i32, i32, i32
  }
}

</mosaic_0001>

<bundles_post_ra>
// kernel: tpu_custom_call.1
= control target key start
LH: loop header
LB: loop body
LE: loop exit
PB: predicated region body
PF: predicated region fallthrough
CT: control target
= control target key end

     0   :  { %9 = vsyncpa [#allocation3], 0  ;;  %s6312_s0 = inlined_call_operand.hbm [shape: f32[2,4,256], index: 0, kind: input, shape index: {}]   ;;  %s6313_s1 = inlined_call_operand.vmem [shape: f32[4,1], index: 1, kind: input, shape index: {}]   ;;  %s6314_s2 = inlined_call_operand.vmem [shape: f32[1,4], index: 2, kind: input, shape index: {}]   ;;  %s6315_s3 = inlined_call_operand.hbm [shape: f32[512,256], index: 3, kind: input, shape index: {}]   ;;  %s6316_s4 = inlined_call_operand.hbm [shape: f32[2,4,256], index: 4, kind: output, shape index: {}]  }
   0x1   :  { %11 = vsyncpa [#allocation3 + $0x1], 0 }
   0x2   :  { %12 = vsyncpa [#allocation6], 0 }
   0x3   :  { %13 = vsyncpa [#allocation4], 0 }
   0x4   :  { %15 = vsyncpa [#allocation4 + $0x1], 0  ;;  %s4204_s15 = smov 0   ;;  %s4206_s16 = smov 0  }
   0x5   :  { %s4208_s17 = smov 0   ;;  %s4210_s18 = smov 0  }
   0x6 LB: > { %s4225_s19 = sadd.s32 4294967295, %s4170_s18   ;;  %s3153_s20 = sadd.s32 4294967294, %s4170_s18   ;;  %s4170_s18 = sphi %s4210_s18, %s7709_s18   ;;  %s4166_s17 = sphi %s4208_s17, %s7708_s17   ;;  %s4162_s16 = sphi %s4206_s16, %s7707_s16   ;;  %s4158_s15 = sphi %s4204_s15, %s7706_s15  }
   0x7   : > { %p41_p0 = scmp.ne.s32.totalorder %s4162_s16, %s4158_s15  ;;  %p6317_p1 = scmp.eq.s32.totalorder %s4225_s19, 0 }
   0x8   : > { %p134_p3 = scmp.eq.s32.totalorder %s3153_s20, 1  ;;  %p3154_p5 = scmp.ge.s32.totalorder %s4170_s18, 1 }
   0x9   : > { %p4234_p4 = por %p6317_p1, %p41_p0  ;;  %p141_p7 = scmp.lt.s32.totalorder %s4170_s18, 3 }
   0xa   : > { %p4239_p6 = por %p134_p3, %p41_p0  ;;  %s4172_s24 = smov [#allocation5]  }
   0xb   : > { %s6751_s21 = scalar_select %p4234_p4, 1, 0 }
   0xc   : > { %s6752_s22 = scalar_select %p4239_p6, 1, 0 }
   0xd   : > { %p4244_p8 = pnand %p3154_p5, %p141_p7  ;;  %s159_s25 = sshll.u32 %s4172_s24, 4  ;;  %s4248_s25 = int_to_ptr.vmem [resolvable:$true] %s159_s25 }
   0xe   : > { %s4260_s27 = sadd.s32 1, %s4170_s18   ;;  %s28_s28 = sadd.s32 1, %s4166_s17 }
   0xf   : > { %s6753_s23 = scalar_select %p4244_p8, 1, 0 }
  0x10   : > { %p3972_p9 = pneg %p4244_p8  ;;  %s25_s29 = ssub.s32 %s4170_s18, %s4260_s27 }
  0x11   : > { %s4042_s6 = scalar_lea.hbm %s6315_s3, 16384 }
  0x12   : > { %p4255_p11 = pnand %p3972_p9, %p6317_p1  ;;  %p4043_p12 = scmp.ne.s32.totalorder %s6315_s3, %s4042_s6 }
  0x13   : > { %p4049_p5 = scmp.lt.u32.totalorder %s4042_s6, %s6315_s3 }
  0x14   : > { %p4044_p13 = pneg %p4255_p11 }
  0x16   : > { %p4045_p0 = pnand %p4044_p13, %p4043_p12 }
  0x18   : > { %p4046_p3 = pneg %p4045_p0 }
  0x1a   : > { %p4051_p7 = pnand %p4049_p5, %p4046_p3 }
  0x1c   : > { %4054 = shalt.err (!%p4051_p7)
}
  0x1d   : > { %s4055_s11 = scalar_lea.vmem %s4248_s25, 16384  ;;  %p4063_p2 = scmp.lt.s32.totalorder %s4248_s25, %s4248_s25 }
  0x1e   : > { %p4056_p9 = scmp.ne.s32.totalorder %s4248_s25, %s4055_s11  ;;  %p4064_p6 = scmp.lt.s32.totalorder %s4055_s11, %s4055_s11 }
  0x20   : > { %p4058_p10 = pnand %p4056_p9, %p4044_p13  ;;  %p4065_p4 = por %p4064_p6, %p4063_p2 }
  0x22   : > { %p4059_p1 = pneg %p4058_p10 }
  0x24   : > { %p4066_p8 = pnand %p4065_p4, %p4059_p1 }
  0x26   : > { %4069 = shalt.err (!%p4066_p8)
}
  0x27   : > { %s4173_s12 = smov 256   ;;  %s4174_s13 = smov 16  }
  0x28   : > { %3975 = dma.hbm_to_vmem [thread:$0]  (!%p4255_p11), %s6315_s3, 16384, %s4248_s25, [#allocation6], %s4173_s12, %s4173_s12, %s4174_s13  }
  0x29   : > { %p26_p2 = scmp.eq.s32.totalorder %s25_s29, 0  ;;  %p35_p1 = scmp.ne.s32.totalorder %s4166_s17, %s4162_s16 }
  0x2a   : > { %p36_p4 = scmp.eq.s32.totalorder %s4170_s18, 0  ;;  %p3985_p6 = scmp.lt.s32.totalorder %s4170_s18, 2 }
  0x2b   : > { %s4291_s24 = scalar_select %p26_p2, %s4166_s17, %s28_s28  }
  0x2c   : > { %p37_p8 = por %p36_p4, %p35_p1  ;;  %p6755_p10 = scmp.eq.s32.totalorder %s4225_s19, 1 }
  0x2d   : > { %s173_s5 = sand.u32 1, %s4166_s17   ;;  %s3172_s6 = sshll.u32 %s4170_s18, 7 }
  0x2e   : > { %p4295_p12 = por %p6755_p10, %p35_p1  ;;  %s3157_s7 = sshll.u32 %s173_s5, 3 }
  0x2f   : > { %s4304_s9 = scalar_lea.hbm %s6312_s0, %s3172_s6  ;;  %s177_s25 = scalar_lea.vmem [#allocation2], %s3157_s7 }
  0x30   : > { %s185_s28 = sshll.u32 %s177_s25, 4  ;;  %p4306_p11 = pnand %p3985_p6, %p37_p8  ;;  %s4310_s28 = int_to_ptr.vmem [resolvable:$true] %s185_s28 }
  0x31   : > { %s174_s10 = scalar_lea.sflag [#allocation3], %s173_s5  ;;  %s4070_s11 = scalar_lea.hbm %s4304_s9, 128 }
  0x32   : > { %p4071_p13 = scmp.ne.s32.totalorder %s4304_s9, %s4070_s11  ;;  %p4072_p0 = pneg %p4306_p11 }
  0x33   : > { %s4075_s14 = scalar_lea.hbm %s6312_s0, 256  ;;  %p4076_p7 = scmp.lt.u32.totalorder %s4304_s9, %s6312_s0 }
  0x34   : > { %p4073_p3 = pnand %p4072_p0, %p4071_p13  ;;  %p4077_p9 = scmp.lt.u32.totalorder %s4075_s14, %s4070_s11 }
  0x35   : > { %p4079_p1 = scmp.lt.u32.totalorder %s4070_s11, %s4304_s9 }
  0x36   : > { %p4074_p5 = pneg %p4073_p3  ;;  %p4078_p2 = por %p4077_p9, %p4076_p7 }
  0x38   : > { %p4080_p4 = por %p4079_p1, %p4078_p2 }
  0x3a   : > { %p4081_p6 = pnand %p4080_p4, %p4074_p5 }
  0x3c   : > { %4084 = shalt.err (!%p4081_p6)
}
  0x3d   : > { %s4085_s5 = scalar_lea.vmem %s4310_s28, 128  ;;  %s4175_s7 = smov [#allocation2]  }
  0x3e   : > { %p4086_p8 = scmp.ne.s32.totalorder %s4310_s28, %s4085_s5  ;;  %s4090_s26 = sshll.u32 %s4175_s7, 4  ;;  %s4091_s26 = int_to_ptr.vmem [resolvable:$false] %s4090_s26 }
  0x3f   : > { %s4092_s8 = scalar_lea.vmem %s4091_s26, 256  ;;  %p4093_p3 = scmp.lt.s32.totalorder %s4310_s28, %s4091_s26 }
  0x40   : > { %p4088_p10 = pnand %p4086_p8, %p4072_p0  ;;  %p4094_p7 = scmp.lt.s32.totalorder %s4092_s8, %s4085_s5 }
  0x42   : > { %p4089_p13 = pneg %p4088_p10  ;;  %p4095_p9 = por %p4094_p7, %p4093_p3 }
  0x44   : > { %p4096_p2 = pnand %p4095_p9, %p4089_p13 }
  0x46   : > { %4099 = shalt.err (!%p4096_p2)
}
  0x47   : > { %3979 = dma.hbm_to_vmem [thread:$0]  (!%p4306_p11), %s4304_s9, 128, %s4310_s28, %s174_s10  }
  0x48   : > { %p6758_p5 = scmp.ne.s32.totalorder %s6753_s23, 0 }
  0x4a   : > { %194 = sbr.rel (%p6758_p5) target bundleno = 1148 (0x47c), region = 36 }
  0x51   : > { %s4340_s25 = sand.u32 1, %s4162_s16   ;;  %p6759_p0 = scmp.ne.s32.totalorder %s6751_s21, 0 }
  0x52   : > { %s3161_s11 = sshll.u32 %s4340_s25, 3  ;;  %s197_s12 = scalar_lea.sflag [#allocation3], %s4340_s25 }
  0x53   : > { %s4346_s13 = scalar_lea.vmem [#allocation2], %s3161_s11 }
  0x54   : > { %4145 = dma.done.wait (%p6759_p0), %s197_s12, 128  }
  0x55   : > { %4147 = vsyncadd (%p6759_p0), %s197_s12, 4294967168  ;;  %p6760_p11 = scmp.eq.s32.totalorder %s4225_s19, 0 }
  0x57   : > { %4149 = dma.done.wait (%p6760_p11), [#allocation6], 16384   ;;  %p6761_p1 = pmov %p6760_p11 }
  0x58   : > { %vm233_vm0 = vcmask 1043456   ;;  %v229_v0 = vld [vmem:[%s4346_s13] sm:$0xff]  ;;  %v4176_v8 = vmov 0   ;;  %vm248_vm1 = vcmask 3072   ;;  %v336_v31 = vld [vmem:[#allocation5 + $0x8] sm:$0xff]  ;;  %v335_v38 = vld [vmem:[#allocation5] sm:$0xff] }
  0x59   : > { %4151 = vsyncadd (%p6761_p1), [#allocation6], 4294950912  ;;  %v231_v1 = vcombine.high %v229_v0, %v229_v0  ;;  %v234_v2 = vsel %vm233_vm0, %v229_v0, 0.0  ;;  %v240_v4 = vsel %vm233_vm0, %v229_v0, -inf  ;;  %4025 = vset.pattern.permute.xlu1 %v4176_v8  ;;  %4026 = vset.pattern.permute.xlu0 %v4176_v8  ;;  %v245_v10 = vld [vmem:[%s6313_s1] sm:$0xf] }
  0x5a   : > { %v338_v32 = vld [vmem:[#allocation5 + $0x18] sm:$0xff]  ;;  %v400_v33 = vld [vmem:[#allocation5 + $0x208] sm:$0xff]  ;;  %v463_v34 = vand.u32 4294901760, %v336_v31  ;;  %v337_v39 = vld [vmem:[#allocation5 + $0x10] sm:$0xff]  ;;  %v465_v41 = vand.u32 4294901760, %v335_v38  ;;  %s3173_s29 = sshll.u32 %s4225_s19, 7 }
  0x5b   : > { %v235_v3 = vsel %vm233_vm0, %v231_v1, 0.0  ;;  %v241_v5 = vsel %vm233_vm0, %v231_v1, -inf  ;;  %v467_v35 = vand.u32 4294901760, %v338_v32  ;;  %v402_v36 = vld [vmem:[#allocation5 + $0x218] sm:$0xff]  ;;  %v1747_v37 = vand.u32 4294901760, %v400_v33  ;;  %v399_v43 = vld [vmem:[#allocation5 + $0x200] sm:$0xff]  ;;  %s6268_s5 = scalar_lea.hbm %s6316_s4, %s3173_s29 }
  0x5c   : > { %v236_v6 = vadd.f32 %v235_v3, %v234_v2  ;;  %v242_v7 = vmax.f32 %v240_v4, %v241_v5  ;;  %v1751_v40 = vand.u32 4294901760, %v402_v36  ;;  %v469_v42 = vand.u32 4294901760, %v337_v39  ;;  %v401_v44 = vld [vmem:[#allocation5 + $0x210] sm:$0xff]  ;;  %v340_v45 = vld [vmem:[#allocation5 + $0x28] sm:$0xff]  ;;  %v342_v50 = vld [vmem:[#allocation5 + $0x38] sm:$0xff]  ;;  %s228_s10 = scalar_lea.vmem [#allocation7], %s3161_s11 }
  0x5d   : > { %v4364_v46 = vpack.c.bf16 %v467_v35, %v463_v34  ;;  %v4366_v47 = vsub.f32 %v336_v31, %v463_v34  ;;  %v4368_v48 = vsub.f32 %v338_v32, %v467_v35  ;;  %v4370_v49 = vsub.f32 %v400_v33, %v1747_v37  ;;  %v404_v51 = vld [vmem:[#allocation5 + $0x228] sm:$0xff]  ;;  %v406_v52 = vld [vmem:[#allocation5 + $0x238] sm:$0xff]  ;;  %v339_v57 = vld [vmem:[#allocation5 + $0x20] sm:$0xff]  ;;  %s3073_s14 = sshll.u32 %s228_s10, 4  ;;  %s3059_s7 = scalar_lea.sflag [#allocation4], %s4340_s25  ;;  %s6270_s14 = int_to_ptr.vmem [resolvable:$true] %s3073_s14 }
  0x5e   : > { %237 = vadd.xlane.f32.xlu0 %v236_v6  ;;  %v4372_v53 = vpack.c.bf16 %v1751_v40, %v1747_v37  ;;  %v4374_v54 = vsub.f32 %v402_v36, %v1751_v40  ;;  %v4376_v55 = vpack.c.bf16 %v469_v42, %v465_v41  ;;  %v4378_v56 = vsub.f32 %v335_v38, %v465_v41  ;;  %v341_v62 = vld [vmem:[#allocation5 + $0x30] sm:$0xff]  ;;  %v403_v3 = vld [vmem:[#allocation5 + $0x220] sm:$0xff]  ;;  %v348_v33 = vld [vmem:[#allocation5 + $0x68] sm:$0xff]  ;;  %s4100_s19 = scalar_lea.vmem %s6270_s14, 128  ;;  %s4178_s26 = smov [#allocation7]  }
  0x5f   : > { %6762 = vst [vmem:[#allocation11_spill] sm:$0xff] %v4364_v46  ;;  %6763 = vst [vmem:[#allocation12_spill] sm:$0xff] %v4366_v47  ;;  %3175 = vmatprep.subr.bf16.mxu1 %v4364_v46  ;;  %v4381_v58 = vsub.f32 %v337_v39, %v469_v42  ;;  %v1749_v59 = vand.u32 4294901760, %v399_v43  ;;  %v1753_v60 = vand.u32 4294901760, %v401_v44  ;;  %v471_v61 = vand.u32 4294901760, %v340_v45  ;;  %v405_v4 = vld [vmem:[#allocation5 + $0x230] sm:$0xff]  ;;  %p4101_p4 = scmp.ne.s32.totalorder %s6270_s14, %s4100_s19 }
  0x60   : > { %6764 = vst [vmem:[#allocation13_spill] sm:$0xff] %v4368_v48  ;;  %6765 = vst [vmem:[#allocation14_spill] sm:$0xff] %v4370_v49  ;;  %3559 = vmatprep.subr.bf16.mxu0 %v4372_v53  ;;  %3177 = vmatpush1.bf16.msra.mxu1 %v4376_v55  ;;  %v475_v63 = vand.u32 4294901760, %v342_v50  ;;  %v1755_v0 = vand.u32 4294901760, %v404_v51  ;;  %v1759_v1 = vand.u32 4294901760, %v406_v52  ;;  %v473_v2 = vand.u32 4294901760, %v339_v57 }
  0x61   : > { %6766 = vst [vmem:[#allocation15_spill] sm:$0xff] %v4372_v53  ;;  %6767 = vst [vmem:[#allocation16_spill] sm:$0xff] %v4374_v54  ;;  %v4385_v5 = vpack.c.bf16 %v1753_v60, %v1749_v59  ;;  %v4387_v6 = vsub.f32 %v399_v43, %v1749_v59  ;;  %v4391_v8 = vsub.f32 %v340_v45, %v471_v61  ;;  %v407_v31 = vld [vmem:[#allocation5 + $0x240] sm:$0xff]  ;;  %v409_v32 = vld [vmem:[#allocation5 + $0x250] sm:$0xff]  ;;  %p4102_p6 = pnand %p4101_p4, %p4295_p12  ;;  %s4104_s8 = sshll.u32 %s4178_s26, 4  ;;  %s4105_s8 = int_to_ptr.vmem [resolvable:$false] %s4104_s8 }
  0x62   : > { %243 = vmax.xlane.f32.xlu0 %v242_v7  ;;  %6768 = vst [vmem:[#allocation17_spill] sm:$0xff] %v4376_v55  ;;  %6769 = vst [vmem:[#allocation18_spill] sm:$0xff] %v4378_v56  ;;  %v4389_v7 = vsub.f32 %v401_v44, %v1753_v60  ;;  %v350_v38 = vld [vmem:[#allocation5 + $0x78] sm:$0xff]  ;;  %v412_v39 = vld [vmem:[#allocation5 + $0x268] sm:$0xff]  ;;  %s4106_s11 = scalar_lea.vmem %s4105_s8, 256  ;;  %p4107_p10 = scmp.lt.s32.totalorder %s6270_s14, %s4105_s8 }
  0x63   : > { %6770 = vst [vmem:[#allocation19_spill] sm:$0xff] %v4381_v58  ;;  %6771 = vst [vmem:[#allocation20_spill] sm:$0xff] %v4385_v5  ;;  %3561 = vmatpush1.bf16.msra.mxu0 %v4385_v5  ;;  %v414_v40 = vld [vmem:[#allocation5 + $0x278] sm:$0xff]  ;;  %v491_v59 = vand.u32 4294901760, %v350_v38  ;;  %v1771_v60 = vand.u32 4294901760, %v412_v39  ;;  %v421_v46 = vld [vmem:[#allocation5 + $0x2b0] sm:$0xff]  ;;  %p4103_p8 = pneg %p4102_p6  ;;  %p4108_p13 = scmp.lt.s32.totalorder %s4106_s11, %s4100_s19 }
  0x64   : > { %6772 = vst [vmem:[#allocation21_spill] sm:$0xff] %v4387_v6  ;;  %6773 = vst [vmem:[#allocation22_spill] sm:$0xff] %v4389_v7 }
  0x65   : > { %6774 = vst [vmem:[#allocation23_spill] sm:$0xff] %v4391_v8  ;;  %p4109_p3 = por %p4108_p13, %p4107_p10 }
  0x67   : > { %p4110_p7 = pnand %p4109_p3, %p4103_p8 }
  0xeb   : > { %v238_v9 = vpop.xlane.xlu0 %237 }
  0xec   : > { %v239_v11 = vmul.f32 0.00390625, %v238_v9  ;;  %v344_v9 = vld [vmem:[#allocation5 + $0x48] sm:$0xff] }
  0xee   : > { %v247_v12 = vmul.f32 %v245_v10, %v239_v11  ;;  %v408_v11 = vld [vmem:[#allocation5 + $0x248] sm:$0xff] }
  0xef   : > { %v244_v13 = vpop.xlane.xlu0 %243 }
  0xf0   : > { %v249_v14 = vsel %vm248_vm1, %v247_v12, 0.0  ;;  %v264_v15 = vmul.f32 %v245_v10, %v244_v13  ;;  %v346_v10 = vld [vmem:[#allocation5 + $0x58] sm:$0xff]  ;;  %v4393_v12 = vpack.c.bf16 %v475_v63, %v471_v61  ;;  %v4395_v13 = vsub.f32 %v342_v50, %v475_v63 }
  0xf1   : > { %v250_v16 = vrot.slane %v249_v14, 4  ;;  %v1775_v61 = vand.u32 4294901760, %v414_v40 }
  0xf2   : > { %v265_v17 = vsel %vm248_vm1, %v264_v15, 0.0  ;;  %6775 = vst [vmem:[#allocation24_spill] sm:$0xff] %v4393_v12  ;;  %6776 = vst [vmem:[#allocation25_spill] sm:$0xff] %v4395_v13  ;;  %v4399_v15 = vsub.f32 %v404_v51, %v1755_v0  ;;  %3179 = vmatprep.subr.bf16.mxu1 %v4393_v12  ;;  %v1765_v51 = vand.u32 4294901760, %v407_v31  ;;  %v419_v12 = vld [vmem:[#allocation5 + $0x2a0] sm:$0xff] }
  0xf3   : > { %v251_v18 = vadd.f32 %v250_v16, %v249_v14  ;;  %v266_v19 = vrot.slane %v265_v17, 4  ;;  %v4397_v14 = vpack.c.bf16 %v1759_v1, %v1755_v0  ;;  %v410_v16 = vld [vmem:[#allocation5 + $0x258] sm:$0xff] }
  0xf4   : > { %6778 = vst [vmem:[#allocation27_spill] sm:$0xff] %v4399_v15 }
  0xf5   : > { %v267_v20 = vadd.f32 %v266_v19, %v265_v17  ;;  %v252_v21 = vrot.slane %v251_v18, 2  ;;  %6777 = vst [vmem:[#allocation26_spill] sm:$0xff] %v4397_v14  ;;  %v4402_v17 = vsub.f32 %v406_v52, %v1759_v1  ;;  %v4404_v19 = vsub.f32 %v339_v57, %v473_v2  ;;  %3563 = vmatprep.subr.bf16.mxu0 %v4397_v14  ;;  %v420_v14 = vld [vmem:[#allocation5 + $0x2a8] sm:$0xff] }
  0xf6   : > { %v1769_v52 = vand.u32 4294901760, %v409_v32  ;;  %v487_v57 = vand.u32 4294901760, %v348_v33 }
  0xf7   : > { %v268_v22 = vrot.slane %v267_v20, 2  ;;  %v253_v23 = vadd.f32 %v252_v21, %v251_v18  ;;  %6779 = vst [vmem:[#allocation28_spill] sm:$0xff] %v4402_v17  ;;  %v477_v18 = vand.u32 4294901760, %v341_v62  ;;  %6780 = vst [vmem:[#allocation29_spill] sm:$0xff] %v4404_v19  ;;  %v1761_v21 = vand.u32 4294901760, %v405_v4 }
  0xf9   : > { %v269_v24 = vadd.f32 %v268_v22, %v267_v20  ;;  %v254_v25 = vrot.slane %v253_v23, 1  ;;  %v1757_v20 = vand.u32 4294901760, %v403_v3  ;;  %v479_v22 = vand.u32 4294901760, %v344_v9 }
  0xfa   : > { %v4416_v35 = vsub.f32 %v405_v4, %v1761_v21  ;;  %v411_v4 = vld [vmem:[#allocation5 + $0x260] sm:$0xff] }
  0xfb   : > { %v255_v26 = vadd.f32 %v254_v25, %v253_v23  ;;  %v270_v27 = vrot.slane %v269_v24, 1  ;;  %v483_v23 = vand.u32 4294901760, %v346_v10  ;;  %v343_v25 = vld [vmem:[#allocation5 + $0x40] sm:$0xff]  ;;  %v4414_v34 = vpack.c.bf16 %v1761_v21, %v1757_v20  ;;  %v354_v21 = vld [vmem:[#allocation5 + $0x98] sm:$0xff] }
  0xfc   : > { %6785 = vst [vmem:[#allocation34_spill] sm:$0xff] %v4416_v35  ;;  %v4420_v37 = vsub.f32 %v344_v9, %v479_v22  ;;  %v481_v45 = vand.u32 4294901760, %v343_v25  ;;  %v413_v9 = vld [vmem:[#allocation5 + $0x270] sm:$0xff] }
  0xfd   : > { %v256_v28 = vmax.f32 %v255_v26, 0.0  ;;  %v271_v29 = vadd.f32 %v270_v27, %v269_v24  ;;  %v1763_v24 = vand.u32 4294901760, %v408_v11  ;;  %v345_v26 = vld [vmem:[#allocation5 + $0x50] sm:$0xff]  ;;  %v4408_v27 = vpack.c.bf16 %v477_v18, %v473_v2  ;;  %6784 = vst [vmem:[#allocation33_spill] sm:$0xff] %v4414_v34  ;;  %3565 = vmatpush1.bf16.msra.mxu0 %v4414_v34 }
  0xfe   : > { %v4418_v36 = vpack.c.bf16 %v483_v23, %v479_v22  ;;  %6787 = vst [vmem:[#allocation36_spill] sm:$0xff] %v4420_v37  ;;  %v4423_v41 = vsub.f32 %v346_v10, %v483_v23  ;;  %v485_v50 = vand.u32 4294901760, %v345_v26  ;;  %v4436_v0 = vsub.f32 %v343_v25, %v481_v45  ;;  %v416_v22 = vld [vmem:[#allocation5 + $0x288] sm:$0xff] }
  0xff   : > { %259 = vperm.xlu1 %4025, %v256_v28   ;;  %v272_v30 = vmax.f32 %v271_v29, 0.0  ;;  %6781 = vst [vmem:[#allocation30_spill] sm:$0xff] %v4408_v27  ;;  %v4410_v28 = vsub.f32 %v341_v62, %v477_v18  ;;  %v4412_v29 = vsub.f32 %v403_v3, %v1757_v20  ;;  %3181 = vmatpush1.bf16.msra.mxu1 %v4408_v27  ;;  %v347_v62 = vld [vmem:[#allocation5 + $0x60] sm:$0xff]  ;;  %v349_v3 = vld [vmem:[#allocation5 + $0x70] sm:$0xff]  ;;  %v352_v20 = vld [vmem:[#allocation5 + $0x88] sm:$0xff] }
 0x100   : > { %6786 = vst [vmem:[#allocation35_spill] sm:$0xff] %v4418_v36  ;;  %6788 = vst [vmem:[#allocation37_spill] sm:$0xff] %v4423_v41  ;;  %v4427_v43 = vsub.f32 %v408_v11, %v1763_v24  ;;  %3183 = vmatprep.subr.bf16.mxu1 %v4418_v36  ;;  %v4434_v63 = vpack.c.bf16 %v485_v50, %v481_v45  ;;  %v4438_v1 = vsub.f32 %v345_v26, %v485_v50  ;;  %v418_v45 = vld [vmem:[#allocation5 + $0x298] sm:$0xff] }
 0x101   : > { %6782 = vst [vmem:[#allocation31_spill] sm:$0xff] %v4410_v28  ;;  %6783 = vst [vmem:[#allocation32_spill] sm:$0xff] %v4412_v29  ;;  %v4440_v2 = vpack.c.bf16 %v1769_v52, %v1765_v51  ;;  %v4442_v10 = vsub.f32 %v407_v31, %v1765_v51  ;;  %v4444_v11 = vsub.f32 %v409_v32, %v1769_v52  ;;  %v489_v26 = vand.u32 4294901760, %v347_v62 }
 0x102   : > { %6790 = vst [vmem:[#allocation39_spill] sm:$0xff] %v4427_v43  ;;  %6792 = vst [vmem:[#allocation41_spill] sm:$0xff] %v4434_v63  ;;  %v4448_v18 = vsub.f32 %v348_v33, %v487_v57  ;;  %v4452_v23 = vsub.f32 %v350_v38, %v491_v59  ;;  %v4456_v25 = vsub.f32 %v412_v39, %v1771_v60  ;;  %v493_v31 = vand.u32 4294901760, %v349_v3  ;;  %v415_v39 = vld [vmem:[#allocation5 + $0x280] sm:$0xff] }
 0x103   : > { %275 = vperm.xlu1 %4025, %v272_v30   ;;  %v1767_v30 = vand.u32 4294901760, %v410_v16  ;;  %6793 = vst [vmem:[#allocation42_spill] sm:$0xff] %v4436_v0  ;;  %6794 = vst [vmem:[#allocation43_spill] sm:$0xff] %v4438_v1  ;;  %3185 = vmatpush1.bf16.msra.mxu1 %v4434_v63  ;;  %v1773_v32 = vand.u32 4294901760, %v411_v4  ;;  %v1777_v33 = vand.u32 4294901760, %v413_v9  ;;  %v4462_v50 = vsub.f32 %v347_v62, %v489_v26  ;;  %v356_v63 = vld [vmem:[#allocation5 + $0xa8] sm:$0xff] }
 0x104   : > { %6795 = vst [vmem:[#allocation44_spill] sm:$0xff] %v4440_v2  ;;  %6796 = vst [vmem:[#allocation45_spill] sm:$0xff] %v4442_v10  ;;  %v495_v51 = vand.u32 4294901760, %v352_v20  ;;  %v499_v38 = vand.u32 4294901760, %v354_v21  ;;  %v1779_v52 = vand.u32 4294901760, %v416_v22  ;;  %v443_v10 = vld [vmem:[#allocation5 + $0x360] sm:$0xff] }
 0x105   : > { %v4425_v42 = vpack.c.bf16 %v1767_v30, %v1763_v24  ;;  %v4429_v44 = vsub.f32 %v410_v16, %v1767_v30  ;;  %6797 = vst [vmem:[#allocation46_spill] sm:$0xff] %v4444_v11  ;;  %v4446_v16 = vpack.c.bf16 %v491_v59, %v487_v57  ;;  %6799 = vst [vmem:[#allocation48_spill] sm:$0xff] %v4448_v18  ;;  %v351_v57 = vld [vmem:[#allocation5 + $0x80] sm:$0xff]  ;;  %v353_v59 = vld [vmem:[#allocation5 + $0x90] sm:$0xff]  ;;  %v1837_v41 = vand.u32 4294901760, %v443_v10 }
 0x106   : > { %6800 = vst [vmem:[#allocation49_spill] sm:$0xff] %v4452_v23  ;;  %v4454_v24 = vpack.c.bf16 %v1775_v61, %v1771_v60  ;;  %6802 = vst [vmem:[#allocation51_spill] sm:$0xff] %v4456_v25  ;;  %v4459_v30 = vsub.f32 %v414_v40, %v1775_v61  ;;  %v4464_v60 = vpack.c.bf16 %v493_v31, %v489_v26  ;;  %v381_v25 = vld [vmem:[#allocation5 + $0x170] sm:$0xff] }
 0x107   : > { %6789 = vst [vmem:[#allocation38_spill] sm:$0xff] %v4425_v42  ;;  %6791 = vst [vmem:[#allocation40_spill] sm:$0xff] %v4429_v44  ;;  %3567 = vmatprep.subr.bf16.mxu0 %v4425_v42  ;;  %3187 = vmatprep.subr.bf16.mxu1 %v4446_v16  ;;  %v4468_v40 = vpack.c.bf16 %v1777_v33, %v1773_v32  ;;  %v4470_v61 = vsub.f32 %v411_v4, %v1773_v32  ;;  %v358_v42 = vld [vmem:[#allocation5 + $0xb8] sm:$0xff]  ;;  %v497_v4 = vand.u32 4294901760, %v351_v57  ;;  %v445_v1 = vld [vmem:[#allocation5 + $0x370] sm:$0xff] }
 0x108   : > { %6798 = vst [vmem:[#allocation47_spill] sm:$0xff] %v4446_v16  ;;  %3569 = vmatpush1.bf16.msra.mxu0 %v4440_v2  ;;  %6801 = vst [vmem:[#allocation50_spill] sm:$0xff] %v4454_v24  ;;  %v4466_v2 = vsub.f32 %v349_v3, %v493_v31  ;;  %v417_v16 = vld [vmem:[#allocation5 + $0x290] sm:$0xff]  ;;  %v4474_v62 = vpack.c.bf16 %v499_v38, %v495_v51  ;;  %v4476_v36 = vsub.f32 %v352_v20, %v495_v51  ;;  %v422_v20 = vld [vmem:[#allocation5 + $0x2b8] sm:$0xff] }
 0x109   : > { %6803 = vst [vmem:[#allocation52_spill] sm:$0xff] %v4459_v30  ;;  %3571 = vmatprep.subr.bf16.mxu0 %v4454_v24  ;;  %6804 = vst [vmem:[#allocation53_spill] sm:$0xff] %v4462_v50  ;;  %v4472_v24 = vsub.f32 %v413_v9, %v1777_v33  ;;  %v4478_v34 = vsub.f32 %v354_v21, %v499_v38  ;;  %3189 = vmatpush1.bf16.msra.mxu1 %v4464_v60  ;;  %v1783_v3 = vand.u32 4294901760, %v418_v45  ;;  %v446_v50 = vld [vmem:[#allocation5 + $0x378] sm:$0xff] }
 0x10a   : > { %6805 = vst [vmem:[#allocation54_spill] sm:$0xff] %v4464_v60  ;;  %6806 = vst [vmem:[#allocation55_spill] sm:$0xff] %v4466_v2  ;;  %v4482_v26 = vsub.f32 %v416_v22, %v1779_v52  ;;  %v501_v31 = vand.u32 4294901760, %v353_v59  ;;  %3191 = vmatprep.subr.bf16.mxu1 %v4474_v62  ;;  %v1781_v32 = vand.u32 4294901760, %v415_v39  ;;  %v1785_v9 = vand.u32 4294901760, %v417_v16  ;;  %v355_v22 = vld [vmem:[#allocation5 + $0xa0] sm:$0xff] }
 0x10b   : > { %6807 = vst [vmem:[#allocation56_spill] sm:$0xff] %v4468_v40  ;;  %6808 = vst [vmem:[#allocation57_spill] sm:$0xff] %v4470_v61  ;;  %v503_v33 = vand.u32 4294901760, %v356_v63  ;;  %v507_v27 = vand.u32 4294901760, %v358_v42  ;;  %v4485_v51 = vpack.c.bf16 %v1783_v3, %v1779_v52  ;;  %v4487_v21 = vsub.f32 %v418_v45, %v1783_v3  ;;  %v357_v60 = vld [vmem:[#allocation5 + $0xb0] sm:$0xff]  ;;  %v360_v52 = vld [vmem:[#allocation5 + $0xc8] sm:$0xff] }
 0x10c   : > { %6809 = vst [vmem:[#allocation58_spill] sm:$0xff] %v4472_v24  ;;  %6810 = vst [vmem:[#allocation59_spill] sm:$0xff] %v4474_v62  ;;  %3573 = vmatpush1.bf16.msra.mxu0 %v4468_v40  ;;  %v4489_v38 = vpack.c.bf16 %v501_v31, %v497_v4  ;;  %v4491_v40 = vsub.f32 %v351_v57, %v497_v4  ;;  %v4493_v5 = vsub.f32 %v353_v59, %v501_v31  ;;  %v382_v24 = vld [vmem:[#allocation5 + $0x178] sm:$0xff] }
 0x10d   : > { %6811 = vst [vmem:[#allocation60_spill] sm:$0xff] %v4476_v36  ;;  %6812 = vst [vmem:[#allocation61_spill] sm:$0xff] %v4478_v34  ;;  %v4495_v62 = vpack.c.bf16 %v1785_v9, %v1781_v32  ;;  %v4497_v55 = vsub.f32 %v415_v39, %v1781_v32  ;;  %v4499_v53 = vsub.f32 %v417_v16, %v1785_v9  ;;  %3575 = vmatprep.subr.bf16.mxu0 %v4485_v51 }
 0x10e   : > { %6813 = vst [vmem:[#allocation62_spill] sm:$0xff] %v4482_v26  ;;  %6814 = vst [vmem:[#allocation63_spill] sm:$0xff] %v4485_v51  ;;  %v362_v26 = vld [vmem:[#allocation5 + $0xd8] sm:$0xff]  ;;  %3193 = vmatpush1.bf16.msra.mxu1 %v4489_v38  ;;  %v4503_v45 = vpack.c.bf16 %v507_v27, %v503_v33  ;;  %v4505_v57 = vsub.f32 %v356_v63, %v503_v33  ;;  %v4507_v3 = vsub.f32 %v358_v42, %v507_v27 }
 0x10f   : > { %6815 = vst [vmem:[#allocation64_spill] sm:$0xff] %v4487_v21  ;;  %6816 = vst [vmem:[#allocation65_spill] sm:$0xff] %v4489_v38  ;;  %v1787_v59 = vand.u32 4294901760, %v420_v14  ;;  %v1791_v39 = vand.u32 4294901760, %v422_v20  ;;  %v505_v4 = vand.u32 4294901760, %v355_v22  ;;  %v509_v16 = vand.u32 4294901760, %v357_v60 }
 0x110   : > { %6817 = vst [vmem:[#allocation66_spill] sm:$0xff] %v4491_v40  ;;  %6818 = vst [vmem:[#allocation67_spill] sm:$0xff] %v4493_v5  ;;  %3577 = vmatpush1.bf16.msra.mxu0 %v4495_v62  ;;  %v1789_v31 = vand.u32 4294901760, %v419_v12  ;;  %3195 = vmatprep.subr.bf16.mxu1 %v4503_v45  ;;  %v1793_v9 = vand.u32 4294901760, %v421_v46  ;;  %v511_v51 = vand.u32 4294901760, %v360_v52  ;;  %v515_v38 = vand.u32 4294901760, %v362_v26 }
 0x111   : > { %6819 = vst [vmem:[#allocation68_spill] sm:$0xff] %v4495_v62  ;;  %6820 = vst [vmem:[#allocation69_spill] sm:$0xff] %v4497_v55  ;;  %v4511_v32 = vsub.f32 %v420_v14, %v1787_v59  ;;  %v426_v55 = vld [vmem:[#allocation5 + $0x2d8] sm:$0xff]  ;;  %v4513_v63 = vpack.c.bf16 %v1791_v39, %v1787_v59  ;;  %v4515_v27 = vsub.f32 %v422_v20, %v1791_v39  ;;  %v359_v62 = vld [vmem:[#allocation5 + $0xc0] sm:$0xff]  ;;  %v1839_v23 = vand.u32 4294901760, %v446_v50 }
 0x112   : > { %6821 = vst [vmem:[#allocation70_spill] sm:$0xff] %v4499_v53  ;;  %6822 = vst [vmem:[#allocation71_spill] sm:$0xff] %v4503_v45  ;;  %v424_v53 = vld [vmem:[#allocation5 + $0x2c8] sm:$0xff]  ;;  %v4517_v42 = vpack.c.bf16 %v509_v16, %v505_v4  ;;  %v4519_v33 = vsub.f32 %v355_v22, %v505_v4  ;;  %v4521_v5 = vsub.f32 %v357_v60, %v509_v16  ;;  %v425_v40 = vld [vmem:[#allocation5 + $0x2d0] sm:$0xff]  ;;  %v513_v4 = vand.u32 4294901760, %v359_v62 }
 0x113   : > { %6823 = vst [vmem:[#allocation72_spill] sm:$0xff] %v4505_v57  ;;  %6824 = vst [vmem:[#allocation73_spill] sm:$0xff] %v4507_v3  ;;  %v361_v3 = vld [vmem:[#allocation5 + $0xd0] sm:$0xff]  ;;  %v423_v57 = vld [vmem:[#allocation5 + $0x2c0] sm:$0xff]  ;;  %v4523_v14 = vpack.c.bf16 %v1793_v9, %v1789_v31  ;;  %v4525_v45 = vsub.f32 %v419_v12, %v1789_v31  ;;  %3579 = vmatprep.subr.bf16.mxu0 %v4513_v63  ;;  %v4531_v20 = vpack.c.bf16 %v515_v38, %v511_v51 }
 0x114   : > { %6825 = vst [vmem:[#allocation74_spill] sm:$0xff] %v4511_v32  ;;  %6826 = vst [vmem:[#allocation75_spill] sm:$0xff] %v4513_v63  ;;  %v4527_v32 = vsub.f32 %v421_v46, %v1793_v9  ;;  %v364_v59 = vld [vmem:[#allocation5 + $0xe8] sm:$0xff]  ;;  %v366_v21 = vld [vmem:[#allocation5 + $0xf8] sm:$0xff]  ;;  %3197 = vmatpush1.bf16.msra.mxu1 %v4517_v42  ;;  %v4533_v22 = vsub.f32 %v360_v52, %v511_v51  ;;  %v4535_v39 = vsub.f32 %v362_v26, %v515_v38 }
 0x115   : > { %6827 = vst [vmem:[#allocation76_spill] sm:$0xff] %v4515_v27  ;;  %6828 = vst [vmem:[#allocation77_spill] sm:$0xff] %v4517_v42  ;;  %v1795_v60 = vand.u32 4294901760, %v424_v53  ;;  %3581 = vmatpush1.bf16.msra.mxu0 %v4523_v14  ;;  %v1799_v12 = vand.u32 4294901760, %v426_v55  ;;  %v517_v46 = vand.u32 4294901760, %v361_v3  ;;  %v1797_v16 = vand.u32 4294901760, %v423_v57  ;;  %3199 = vmatprep.subr.bf16.mxu1 %v4531_v20 }
 0x116   : > { %6829 = vst [vmem:[#allocation78_spill] sm:$0xff] %v4519_v33  ;;  %6830 = vst [vmem:[#allocation79_spill] sm:$0xff] %v4521_v5  ;;  %v1801_v9 = vand.u32 4294901760, %v425_v40  ;;  %v519_v63 = vand.u32 4294901760, %v364_v59  ;;  %v523_v42 = vand.u32 4294901760, %v366_v21  ;;  %v4547_v52 = vsub.f32 %v359_v62, %v513_v4  ;;  %v429_v33 = vld [vmem:[#allocation5 + $0x2f0] sm:$0xff] }
 0x117   : > { %6831 = vst [vmem:[#allocation80_spill] sm:$0xff] %v4523_v14  ;;  %6832 = vst [vmem:[#allocation81_spill] sm:$0xff] %v4525_v45  ;;  %v4539_v31 = vsub.f32 %v424_v53, %v1795_v60  ;;  %v430_v45 = vld [vmem:[#allocation5 + $0x2f8] sm:$0xff]  ;;  %v4541_v51 = vpack.c.bf16 %v1799_v12, %v1795_v60  ;;  %v4543_v26 = vsub.f32 %v426_v55, %v1799_v12  ;;  %v363_v14 = vld [vmem:[#allocation5 + $0xe0] sm:$0xff]  ;;  %v557_v11 = vand.u32 4294901760, %v381_v25 }
 0x118   : > { %6833 = vst [vmem:[#allocation82_spill] sm:$0xff] %v4527_v32  ;;  %6834 = vst [vmem:[#allocation83_spill] sm:$0xff] %v4531_v20  ;;  %v428_v32 = vld [vmem:[#allocation5 + $0x2e8] sm:$0xff]  ;;  %v4545_v38 = vpack.c.bf16 %v517_v46, %v513_v4  ;;  %v4549_v5 = vsub.f32 %v361_v3, %v517_v46  ;;  %v4551_v53 = vpack.c.bf16 %v1801_v9, %v1797_v16  ;;  %v370_v27 = vld [vmem:[#allocation5 + $0x118] sm:$0xff]  ;;  %v521_v4 = vand.u32 4294901760, %v363_v14 }
 0x119   : > { %6835 = vst [vmem:[#allocation84_spill] sm:$0xff] %v4533_v22  ;;  %6836 = vst [vmem:[#allocation85_spill] sm:$0xff] %v4535_v39  ;;  %v365_v39 = vld [vmem:[#allocation5 + $0xf0] sm:$0xff]  ;;  %v427_v22 = vld [vmem:[#allocation5 + $0x2e0] sm:$0xff]  ;;  %v4553_v20 = vsub.f32 %v423_v57, %v1797_v16  ;;  %3583 = vmatprep.subr.bf16.mxu0 %v4541_v51  ;;  %v4559_v55 = vpack.c.bf16 %v523_v42, %v519_v63  ;;  %v4561_v62 = vsub.f32 %v364_v59, %v519_v63 }
 0x11a   : > { %6837 = vst [vmem:[#allocation86_spill] sm:$0xff] %v4539_v31  ;;  %6838 = vst [vmem:[#allocation87_spill] sm:$0xff] %v4541_v51  ;;  %v4555_v31 = vsub.f32 %v425_v40, %v1801_v9  ;;  %v368_v60 = vld [vmem:[#allocation5 + $0x108] sm:$0xff]  ;;  %3201 = vmatpush1.bf16.msra.mxu1 %v4545_v38  ;;  %v4563_v12 = vsub.f32 %v366_v21, %v523_v42  ;;  %v1803_v3 = vand.u32 4294901760, %v428_v32  ;;  %3585 = vmatpush1.bf16.msra.mxu0 %v4551_v53 }
 0x11b   : > { %6839 = vst [vmem:[#allocation88_spill] sm:$0xff] %v4543_v26  ;;  %6840 = vst [vmem:[#allocation89_spill] sm:$0xff] %v4545_v38  ;;  %v1807_v57 = vand.u32 4294901760, %v430_v45  ;;  %v525_v40 = vand.u32 4294901760, %v365_v39  ;;  %v1805_v46 = vand.u32 4294901760, %v427_v22  ;;  %3203 = vmatprep.subr.bf16.mxu1 %v4559_v55  ;;  %v1809_v9 = vand.u32 4294901760, %v429_v33 }
 0x11c   : > { %6841 = vst [vmem:[#allocation90_spill] sm:$0xff] %v4547_v52  ;;  %6842 = vst [vmem:[#allocation91_spill] sm:$0xff] %v4549_v5  ;;  %v4567_v16 = vsub.f32 %v428_v32, %v1803_v3  ;;  %v527_v51 = vand.u32 4294901760, %v368_v60  ;;  %v531_v38 = vand.u32 4294901760, %v370_v27  ;;  %v4575_v59 = vsub.f32 %v363_v14, %v521_v4  ;;  %v433_v52 = vld [vmem:[#allocation5 + $0x310] sm:$0xff] }
 0x11d   : > { %6843 = vst [vmem:[#allocation92_spill] sm:$0xff] %v4551_v53  ;;  %6844 = vst [vmem:[#allocation93_spill] sm:$0xff] %v4553_v20  ;;  %v434_v20 = vld [vmem:[#allocation5 + $0x318] sm:$0xff]  ;;  %v4569_v63 = vpack.c.bf16 %v1807_v57, %v1803_v3  ;;  %v4571_v21 = vsub.f32 %v430_v45, %v1807_v57  ;;  %v4573_v42 = vpack.c.bf16 %v525_v40, %v521_v4  ;;  %v367_v53 = vld [vmem:[#allocation5 + $0x100] sm:$0xff] }
 0x11e   : > { %6845 = vst [vmem:[#allocation94_spill] sm:$0xff] %v4555_v31  ;;  %6846 = vst [vmem:[#allocation95_spill] sm:$0xff] %v4559_v55  ;;  %v432_v31 = vld [vmem:[#allocation5 + $0x308] sm:$0xff]  ;;  %v4577_v5 = vsub.f32 %v365_v39, %v525_v40  ;;  %v4579_v32 = vpack.c.bf16 %v1809_v9, %v1805_v46  ;;  %v4581_v55 = vsub.f32 %v427_v22, %v1805_v46  ;;  %v1815_v39 = vand.u32 4294901760, %v434_v20 }
 0x11f   : > { %6847 = vst [vmem:[#allocation96_spill] sm:$0xff] %v4561_v62  ;;  %6848 = vst [vmem:[#allocation97_spill] sm:$0xff] %v4563_v12  ;;  %v369_v12 = vld [vmem:[#allocation5 + $0x110] sm:$0xff]  ;;  %v431_v62 = vld [vmem:[#allocation5 + $0x300] sm:$0xff]  ;;  %3587 = vmatprep.subr.bf16.mxu0 %v4569_v63  ;;  %3205 = vmatpush1.bf16.msra.mxu1 %v4573_v42  ;;  %v4587_v45 = vpack.c.bf16 %v531_v38, %v527_v51  ;;  %v4589_v14 = vsub.f32 %v368_v60, %v527_v51  ;;  %v1811_v57 = vand.u32 4294901760, %v432_v31 }
 0x120   : > { %6849 = vst [vmem:[#allocation98_spill] sm:$0xff] %v4567_v16  ;;  %6850 = vst [vmem:[#allocation99_spill] sm:$0xff] %v4569_v63  ;;  %v4583_v16 = vsub.f32 %v429_v33, %v1809_v9  ;;  %v4591_v3 = vsub.f32 %v370_v27, %v531_v38  ;;  %3589 = vmatpush1.bf16.msra.mxu0 %v4579_v32  ;;  %v529_v4 = vand.u32 4294901760, %v367_v53  ;;  %v533_v22 = vand.u32 4294901760, %v369_v12 }
 0x121   : > { %6851 = vst [vmem:[#allocation100_spill] sm:$0xff] %v4571_v21  ;;  %6852 = vst [vmem:[#allocation101_spill] sm:$0xff] %v4573_v42  ;;  %v1813_v40 = vand.u32 4294901760, %v431_v62  ;;  %3207 = vmatprep.subr.bf16.mxu1 %v4587_v45  ;;  %v4595_v33 = vsub.f32 %v432_v31, %v1811_v57  ;;  %v1817_v46 = vand.u32 4294901760, %v433_v52  ;;  %v4597_v9 = vpack.c.bf16 %v1815_v39, %v1811_v57  ;;  %v246_v31 = vld [vmem:[%s6314_s2] sm:$0x1] }
 0x122   : > { %6853 = vst [vmem:[#allocation102_spill] sm:$0xff] %v4575_v59  ;;  %6854 = vst [vmem:[#allocation103_spill] sm:$0xff] %v4577_v5  ;;  %v4599_v42 = vsub.f32 %v434_v20, %v1815_v39  ;;  %v4601_v51 = vpack.c.bf16 %v533_v22, %v529_v4  ;;  %v4603_v27 = vsub.f32 %v367_v53, %v529_v4  ;;  %v441_v59 = vld [vmem:[#allocation5 + $0x350] sm:$0xff] }
 0x123   : > { %6855 = vst [vmem:[#allocation104_spill] sm:$0xff] %v4579_v32  ;;  %6856 = vst [vmem:[#allocation105_spill] sm:$0xff] %v4581_v55  ;;  %v4605_v38 = vsub.f32 %v369_v12, %v533_v22  ;;  %v4607_v60 = vpack.c.bf16 %v1817_v46, %v1813_v40  ;;  %v4609_v32 = vsub.f32 %v431_v62, %v1813_v40  ;;  %3591 = vmatprep.subr.bf16.mxu0 %v4597_v9  ;;  %v4619_v62 = vld [vmem:[#allocation5 + $0x128] sm:$0xff]  ;;  %v377_v55 = vld [vmem:[#allocation5 + $0x150] sm:$0xff] }
 0x124   : > { %6857 = vst [vmem:[#allocation106_spill] sm:$0xff] %v4583_v16  ;;  %6858 = vst [vmem:[#allocation107_spill] sm:$0xff] %v4587_v45  ;;  %v4611_v63 = vsub.f32 %v433_v52, %v1817_v46  ;;  %3209 = vmatpush1.bf16.msra.mxu1 %v4601_v51  ;;  %v4621_v52 = vld [vmem:[#allocation5 + $0x138] sm:$0xff]  ;;  %v4623_v22 = vld [vmem:[#allocation5 + $0x328] sm:$0xff]  ;;  %v6870_v45 = vand.u32 4294901760, %v4619_v62  ;;  %v549_v5 = vand.u32 4294901760, %v377_v55 }
 0x125   : > { %6859 = vst [vmem:[#allocation108_spill] sm:$0xff] %v4589_v14  ;;  %6860 = vst [vmem:[#allocation109_spill] sm:$0xff] %v4591_v3  ;;  %3593 = vmatpush1.bf16.msra.mxu0 %v4607_v60  ;;  %v4639_v46 = vld [vmem:[#allocation5 + $0x330] sm:$0xff]  ;;  %v375_v16 = vld [vmem:[#allocation5 + $0x140] sm:$0xff]  ;;  %v1833_v26 = vand.u32 4294901760, %v441_v59  ;;  %v6890_v35 = vand.u32 4294901760, %v4621_v52 }
 0x126   : > { %6861 = vst [vmem:[#allocation110_spill] sm:$0xff] %v4595_v33  ;;  %6862 = vst [vmem:[#allocation111_spill] sm:$0xff] %v4597_v9  ;;  %v6871_v9 = vand.u32 4294901760, %v4621_v52  ;;  %v376_v33 = vld [vmem:[#allocation5 + $0x148] sm:$0xff] }
 0x127   : > { %6863 = vst [vmem:[#allocation112_spill] sm:$0xff] %v4599_v42  ;;  %6864 = vst [vmem:[#allocation113_spill] sm:$0xff] %v4601_v51  ;;  %v4627_v51 = vld [vmem:[#allocation5 + $0x338] sm:$0xff]  ;;  %v543_v3 = vand.u32 4294901760, %v376_v33 }
 0x128   : > { %6865 = vst [vmem:[#allocation114_spill] sm:$0xff] %v4603_v27  ;;  %6866 = vst [vmem:[#allocation115_spill] sm:$0xff] %v4605_v38  ;;  %v6894_v28 = vand.u32 4294901760, %v4627_v51 }
 0x129   : > { %6867 = vst [vmem:[#allocation116_spill] sm:$0xff] %v4607_v60  ;;  %6868 = vst [vmem:[#allocation117_spill] sm:$0xff] %v4609_v32  ;;  %v287_v60 = vlaneseq }
 0x12a   : > { %6869 = vst [vmem:[#allocation118_spill] sm:$0xff] %v4611_v63  ;;  %v4645_v63 = vpack.c.bf16 %v6871_v9, %v6870_v45  ;;  %v378_v45 = vld [vmem:[#allocation5 + $0x158] sm:$0xff]  ;;  %v440_v9 = vld [vmem:[#allocation5 + $0x348] sm:$0xff]  ;;  %v4712_v19 = vsub.f32 %v4627_v51, %v6894_v28  ;;  %v6902_v28 = vand.u32 4294901760, %v4639_v46 }
 0x12b   : > { %v1827_v14 = vand.u32 4294901760, %v440_v9  ;;  %v4670_v21 = vshrl.u32 %v287_v60, 7  ;;  %v555_v60 = vand.u32 4294901760, %v382_v24 }
 0x12c   : > { %6872 = vst [vmem:[#allocation119_spill] sm:$0xff] %v4645_v63  ;;  %3211 = vmatprep.subr.bf16.mxu1 %v4645_v63  ;;  %v439_v63 = vld [vmem:[#allocation5 + $0x340] sm:$0xff]  ;;  %6895 = vst [vmem:[#allocation135_spill] sm:$0xff] %v4712_v19 }
 0x12d   : > { %6879 = vst [vmem:[#allocation123_spill] sm:$0xff] %v4670_v21  ;;  %v4685_v0 = vsub.s32 0, %v4670_v21  ;;  %v4702_v21 = vsub.f32 %v4621_v52, %v6890_v35 }
 0x12f   : > { %6884 = vst [vmem:[#allocation128_spill] sm:$0xff] %v4685_v0  ;;  %6891 = vst [vmem:[#allocation133_spill] sm:$0xff] %v4702_v21 }
 0x17e   : > { %v260_v20 = vpop.permute.xlu1 %259 }
 0x17f   : > { %v262_v12 = vmul.f32 %v260_v20, %v246_v31  ;;  %v4630_v20 = vld [vmem:[#allocation5 + $0x120] sm:$0xff] }
 0x180   : > { %v6875_v38 = vand.u32 4294901760, %v4630_v20 }
 0x182   : > { %v276_v53 = vpop.permute.xlu1 %275 }
 0x183   : > { %v278_v57 = vmul.f32 %v276_v53, %v246_v31  ;;  %v4632_v31 = vld [vmem:[#allocation5 + $0x130] sm:$0xff] }
 0x184   : > { %v6876_v27 = vand.u32 4294901760, %v4632_v31  ;;  %v6898_v35 = vand.u32 4294901760, %v4632_v31 }
 0x185   : > { %v280_v39 = vadd.f32 %v278_v57, %v262_v12  ;;  %v6423_v12 = vand.u32 4294901760, %v4627_v51  ;;  %v6873_v57 = vand.u32 4294901760, %v4623_v22  ;;  %v4733_v51 = vsub.f32 %v4639_v46, %v6902_v28  ;;  %v384_v28 = vld [vmem:[#allocation5 + $0x188] sm:$0xff] }
 0x186   : > { %v4659_v42 = vpack.c.bf16 %v6876_v27, %v6875_v38  ;;  %v545_v38 = vand.u32 4294901760, %v375_v16  ;;  %v4723_v52 = vsub.f32 %v4632_v31, %v6898_v35  ;;  %v4741_v31 = vsub.f32 %v440_v9, %v1827_v14 }
 0x187   : > { %v3164_v4 = vmul.f32 -1.442695, %v280_v39  ;;  %v4653_v39 = vpack.c.bf16 %v6423_v12, %v6873_v57  ;;  %v547_v57 = vand.u32 4294901760, %v378_v45  ;;  %v442_v12 = vld [vmem:[#allocation5 + $0x358] sm:$0xff]  ;;  %6903 = vst [vmem:[#allocation139_spill] sm:$0xff] %v4733_v51  ;;  %v448_v51 = vld [vmem:[#allocation5 + $0x388] sm:$0xff]  ;;  %v4760_v9 = vsub.f32 %v446_v50, %v1839_v23 }
 0x188   : > { %6877 = vst [vmem:[#allocation121_spill] sm:$0xff] %v4659_v42  ;;  %3213 = vmatpush1.bf16.msra.mxu1 %v4659_v42  ;;  %v1831_v27 = vand.u32 4294901760, %v442_v12  ;;  %v4677_v36 = vpack.c.bf16 %v549_v5, %v545_v38  ;;  %v444_v42 = vld [vmem:[#allocation5 + $0x368] sm:$0xff]  ;;  %6899 = vst [vmem:[#allocation137_spill] sm:$0xff] %v4723_v52  ;;  %v449_v50 = vld [vmem:[#allocation5 + $0x390] sm:$0xff] }
 0x189   : > { %4028 = vpow2.f32 %v3164_v4  ;;  %v4637_v4 = vld [vmem:[#allocation5 + $0x320] sm:$0xff]  ;;  %6874 = vst [vmem:[#allocation120_spill] sm:$0xff] %v4653_v39  ;;  %3595 = vmatprep.subr.bf16.mxu0 %v4653_v39  ;;  %v380_v39 = vld [vmem:[#allocation5 + $0x168] sm:$0xff]  ;;  %v1835_v30 = vand.u32 4294901760, %v444_v42  ;;  %6906 = vst [vmem:[#allocation142_spill] sm:$0xff] %v4741_v31 }
 0x18a   : > { %v6433_v32 = vand.u32 4294901760, %v4637_v4  ;;  %v4675_v34 = vpack.c.bf16 %v1831_v27, %v1827_v14  ;;  %6882 = vst [vmem:[#allocation126_spill] sm:$0xff] %v4677_v36  ;;  %v551_v2 = vand.u32 4294901760, %v380_v39  ;;  %v4744_v35 = vsub.f32 %v442_v12, %v1831_v27  ;;  %v450_v12 = vld [vmem:[#allocation5 + $0x398] sm:$0xff]  ;;  %6911 = vst [vmem:[#allocation147_spill] sm:$0xff] %v4760_v9  ;;  %v457_v52 = vld [vmem:[#allocation5 + $0x3d0] sm:$0xff] }
 0x18b   : > { %v4690_v44 = vpack.c.bf16 %v1839_v23, %v1835_v30  ;;  %v4756_v14 = vsub.f32 %v382_v24, %v555_v60  ;;  %v559_v24 = vand.u32 4294901760, %v384_v28  ;;  %v458_v31 = vld [vmem:[#allocation5 + $0x3d8] sm:$0xff] }
 0x18c   : > { %6881 = vst [vmem:[#allocation125_spill] sm:$0xff] %v4675_v34  ;;  %6907 = vst [vmem:[#allocation143_spill] sm:$0xff] %v4744_v35  ;;  %v456_v35 = vld [vmem:[#allocation5 + $0x3c8] sm:$0xff] }
 0x18d   : > { %6886 = vst [vmem:[#allocation130_spill] sm:$0xff] %v4690_v44 }
 0x193   : > { %v4029_v40 = vpop.eup %4028 }
 0x194   : > { %v284_v53 = vadd.f32 1.0, %v4029_v40  ;;  %v6432_v40 = vand.u32 4294901760, %v4639_v46 }
 0x196   : > { %4030 = vrcp.f32 %v284_v53  ;;  %v4666_v53 = vpack.c.bf16 %v6432_v40, %v6433_v32  ;;  %v4673_v40 = vpack.c.bf16 %v547_v57, %v543_v3  ;;  %v1829_v32 = vand.u32 4294901760, %v439_v63 }
 0x198   : > { %6878 = vst [vmem:[#allocation122_spill] sm:$0xff] %v4666_v53  ;;  %3597 = vmatpush1.bf16.msra.mxu0 %v4666_v53  ;;  %6880 = vst [vmem:[#allocation124_spill] sm:$0xff] %v4673_v40  ;;  %3215 = vmatprep.subr.bf16.mxu1 %v4673_v40  ;;  %v4680_v61 = vpack.c.bf16 %v1833_v26, %v1829_v32  ;;  %v379_v53 = vld [vmem:[#allocation5 + $0x160] sm:$0xff]  ;;  %v4688_v40 = vpack.c.bf16 %v555_v60, %v551_v2 }
 0x199   : > { %3599 = vmatprep.subr.bf16.mxu0 %v4675_v34  ;;  %3217 = vmatpush1.bf16.msra.mxu1 %v4677_v36  ;;  %v553_v18 = vand.u32 4294901760, %v379_v53  ;;  %v1841_v34 = vand.u32 4294901760, %v445_v1  ;;  %v6888_v36 = vand.u32 4294901760, %v4619_v62  ;;  %v4750_v46 = vsub.f32 %v439_v63, %v1829_v32  ;;  %v447_v32 = vld [vmem:[#allocation5 + $0x380] sm:$0xff] }
 0x19a   : > { %6883 = vst [vmem:[#allocation127_spill] sm:$0xff] %v4680_v61  ;;  %6885 = vst [vmem:[#allocation129_spill] sm:$0xff] %v4688_v40  ;;  %3219 = vmatprep.subr.bf16.mxu1 %v4688_v40  ;;  %v4739_v40 = vsub.f32 %v378_v45, %v547_v57  ;;  %v383_v45 = vld [vmem:[#allocation5 + $0x180] sm:$0xff] }
 0x19b   : > { %v4692_v43 = vpack.c.bf16 %v557_v11, %v553_v18  ;;  %v4697_v37 = vsub.f32 %v4619_v62, %v6888_v36  ;;  %v6896_v36 = vand.u32 4294901760, %v4630_v20  ;;  %v4766_v63 = vpack.c.bf16 %v1841_v34, %v1837_v41 }
 0x19c   : > { %3601 = vmatpush1.bf16.msra.mxu0 %v4680_v61  ;;  %v6892_v61 = vand.u32 4294901760, %v4623_v22  ;;  %6905 = vst [vmem:[#allocation141_spill] sm:$0xff] %v4739_v40  ;;  %v391_v40 = vld [vmem:[#allocation5 + $0x1c0] sm:$0xff] }
 0x19d   : > { %6887 = vst [vmem:[#allocation131_spill] sm:$0xff] %v4692_v43  ;;  %6889 = vst [vmem:[#allocation132_spill] sm:$0xff] %v4697_v37  ;;  %v4718_v62 = vsub.f32 %v4630_v20, %v6896_v36  ;;  %3603 = vmatprep.subr.bf16.mxu0 %v4690_v44  ;;  %v4737_v36 = vsub.f32 %v376_v33, %v543_v3  ;;  %3221 = vmatpush1.bf16.msra.mxu1 %v4692_v43  ;;  %v386_v44 = vld [vmem:[#allocation5 + $0x198] sm:$0xff] }
 0x19e   : > { %v4707_v29 = vsub.f32 %v4623_v22, %v6892_v61  ;;  %v6900_v61 = vand.u32 4294901760, %v4637_v4  ;;  %v4754_v3 = vsub.f32 %v380_v39, %v551_v2  ;;  %v4758_v33 = vsub.f32 %v444_v42, %v1835_v30  ;;  %6914 = vst [vmem:[#allocation150_spill] sm:$0xff] %v4766_v63  ;;  %v462_v37 = vld [vmem:[#allocation5 + $0x3f8] sm:$0xff] }
 0x19f   : > { %6897 = vst [vmem:[#allocation136_spill] sm:$0xff] %v4718_v62  ;;  %6904 = vst [vmem:[#allocation140_spill] sm:$0xff] %v4737_v36  ;;  %v4770_v2 = vsub.f32 %v445_v1, %v1841_v34  ;;  %v1843_v30 = vand.u32 4294901760, %v448_v51  ;;  %v1847_v42 = vand.u32 4294901760, %v450_v12  ;;  %v561_v39 = vand.u32 4294901760, %v383_v45  ;;  %v452_v34 = vld [vmem:[#allocation5 + $0x3a8] sm:$0xff] }
 0x1a0   : > { %6893 = vst [vmem:[#allocation134_spill] sm:$0xff] %v4707_v29  ;;  %v4031_v17 = vpop.eup %4030  ;;  %v4728_v22 = vsub.f32 %v4637_v4, %v6900_v61  ;;  %v4746_v4 = vsub.f32 %v375_v16, %v545_v38  ;;  %v4748_v61 = vsub.f32 %v377_v55, %v549_v5  ;;  %6910 = vst [vmem:[#allocation146_spill] sm:$0xff] %v4758_v33  ;;  %v385_v16 = vld [vmem:[#allocation5 + $0x190] sm:$0xff]  ;;  %3605 = vmatpush1.bf16.msra.mxu0 %v4766_v63  ;;  %v454_v1 = vld [vmem:[#allocation5 + $0x3b8] sm:$0xff] }
 0x1a1   : > { %v290_v20 = vrot.slane %v4031_v17, %v4685_v0  ;;  %v4752_v17 = vsub.f32 %v441_v59, %v1833_v26  ;;  %v4762_v5 = vsub.f32 %v379_v53, %v553_v18  ;;  %v4764_v55 = vsub.f32 %v381_v25, %v557_v11  ;;  %6916 = vst [vmem:[#allocation152_spill] sm:$0xff] %v4770_v2  ;;  %v388_v18 = vld [vmem:[#allocation5 + $0x1a8] sm:$0xff]  ;;  %v389_v0 = vld [vmem:[#allocation5 + $0x1b0] sm:$0xff]  ;;  %v451_v63 = vld [vmem:[#allocation5 + $0x3a0] sm:$0xff] }
 0x1a2   : > { %6901 = vst [vmem:[#allocation138_spill] sm:$0xff] %v4728_v22  ;;  %6908 = vst [vmem:[#allocation144_spill] sm:$0xff] %v4746_v4  ;;  %v4768_v26 = vsub.f32 %v443_v10, %v1837_v41  ;;  %v563_v59 = vand.u32 4294901760, %v386_v44  ;;  %v565_v23 = vand.u32 4294901760, %v385_v16  ;;  %v4775_v11 = vsub.f32 %v384_v28, %v559_v24  ;;  %v390_v10 = vld [vmem:[#allocation5 + $0x1b8] sm:$0xff]  ;;  %v393_v22 = vld [vmem:[#allocation5 + $0x1d0] sm:$0xff] }
 0x1a3   : > { %6909 = vst [vmem:[#allocation145_spill] sm:$0xff] %v4748_v61  ;;  %292 = vbcast.lane.b32.xlu0 %v290_v20, 256  ;;  %6912 = vst [vmem:[#allocation148_spill] sm:$0xff] %v4762_v5  ;;  %v1845_v41 = vand.u32 4294901760, %v447_v32  ;;  %v4779_v57 = vpack.c.bf16 %v1847_v42, %v1843_v30  ;;  %v4781_v27 = vsub.f32 %v448_v51, %v1843_v30  ;;  %v387_v20 = vld [vmem:[#allocation5 + $0x1a0] sm:$0xff]  ;;  %v567_v51 = vand.u32 4294901760, %v388_v18 }
 0x1a4   : > { %6913 = vst [vmem:[#allocation149_spill] sm:$0xff] %v4764_v55  ;;  %6915 = vst [vmem:[#allocation151_spill] sm:$0xff] %v4768_v26  ;;  %v4773_v53 = vpack.c.bf16 %v563_v59, %v559_v24  ;;  %v4777_v25 = vsub.f32 %v386_v44, %v563_v59  ;;  %v4783_v38 = vsub.f32 %v450_v12, %v1847_v42  ;;  %v1849_v24 = vand.u32 4294901760, %v449_v50  ;;  %v460_v62 = vld [vmem:[#allocation5 + $0x3e8] sm:$0xff] }
 0x1a5   : > { %6918 = vst [vmem:[#allocation154_spill] sm:$0xff] %v4775_v11  ;;  %6920 = vst [vmem:[#allocation156_spill] sm:$0xff] %v4779_v57  ;;  %v4785_v60 = vpack.c.bf16 %v565_v23, %v561_v39  ;;  %v4788_v28 = vsub.f32 %v383_v45, %v561_v39  ;;  %v4790_v44 = vsub.f32 %v385_v16, %v565_v23  ;;  %3607 = vmatprep.subr.bf16.mxu0 %v4779_v57  ;;  %v453_v16 = vld [vmem:[#allocation5 + $0x3b0] sm:$0xff]  ;;  %v392_v23 = vld [vmem:[#allocation5 + $0x1c8] sm:$0xff] }
 0x1a6   : > { %6917 = vst [vmem:[#allocation153_spill] sm:$0xff] %v4773_v53  ;;  %6919 = vst [vmem:[#allocation155_spill] sm:$0xff] %v4777_v25  ;;  %3223 = vmatprep.subr.bf16.mxu1 %v4773_v53  ;;  %v4792_v59 = vsub.f32 %v447_v32, %v1845_v41  ;;  %v571_v12 = vand.u32 4294901760, %v390_v10  ;;  %v1851_v30 = vand.u32 4294901760, %v452_v34  ;;  %v1855_v42 = vand.u32 4294901760, %v454_v1  ;;  %v394_v53 = vld [vmem:[#allocation5 + $0x1d8] sm:$0xff] }
 0x1a7   : > { %6921 = vst [vmem:[#allocation157_spill] sm:$0xff] %v4781_v27  ;;  %6922 = vst [vmem:[#allocation158_spill] sm:$0xff] %v4783_v38  ;;  %3225 = vmatpush1.bf16.msra.mxu1 %v4785_v60  ;;  %v4796_v43 = vpack.c.bf16 %v1849_v24, %v1845_v41  ;;  %v4798_v61 = vsub.f32 %v449_v50, %v1849_v24  ;;  %v569_v45 = vand.u32 4294901760, %v387_v20  ;;  %v573_v39 = vand.u32 4294901760, %v389_v0 }
 0x1a8   : > { %6923 = vst [vmem:[#allocation159_spill] sm:$0xff] %v4785_v60  ;;  %6924 = vst [vmem:[#allocation160_spill] sm:$0xff] %v4788_v28  ;;  %v4800_v32 = vpack.c.bf16 %v571_v12, %v567_v51  ;;  %v4802_v4 = vsub.f32 %v388_v18, %v567_v51  ;;  %v4804_v57 = vsub.f32 %v390_v10, %v571_v12  ;;  %v1853_v10 = vand.u32 4294901760, %v451_v63 }
 0x1a9   : > { %6925 = vst [vmem:[#allocation161_spill] sm:$0xff] %v4790_v44  ;;  %6926 = vst [vmem:[#allocation162_spill] sm:$0xff] %v4792_v59  ;;  %v4806_v60 = vpack.c.bf16 %v1855_v42, %v1851_v30  ;;  %3609 = vmatpush1.bf16.msra.mxu0 %v4796_v43  ;;  %v4809_v50 = vsub.f32 %v452_v34, %v1851_v30  ;;  %v4811_v41 = vsub.f32 %v454_v1, %v1855_v42 }
 0x1aa   : > { %6927 = vst [vmem:[#allocation163_spill] sm:$0xff] %v4796_v43  ;;  %6928 = vst [vmem:[#allocation164_spill] sm:$0xff] %v4798_v61  ;;  %v4813_v24 = vpack.c.bf16 %v573_v39, %v569_v45  ;;  %v4815_v36 = vsub.f32 %v387_v20, %v569_v45  ;;  %3227 = vmatprep.subr.bf16.mxu1 %v4800_v32  ;;  %v4819_v18 = vsub.f32 %v389_v0, %v573_v39  ;;  %v455_v43 = vld [vmem:[#allocation5 + $0x3c0] sm:$0xff]  ;;  %v396_v39 = vld [vmem:[#allocation5 + $0x1e8] sm:$0xff] }
 0x1ab   : > { %6929 = vst [vmem:[#allocation165_spill] sm:$0xff] %v4800_v32  ;;  %6930 = vst [vmem:[#allocation166_spill] sm:$0xff] %v4802_v4  ;;  %3611 = vmatprep.subr.bf16.mxu0 %v4806_v60  ;;  %v1857_v51 = vand.u32 4294901760, %v453_v16  ;;  %v575_v12 = vand.u32 4294901760, %v392_v23  ;;  %v579_v34 = vand.u32 4294901760, %v394_v53  ;;  %v1859_v30 = vand.u32 4294901760, %v456_v35 }
 0x1ac   : > { %6931 = vst [vmem:[#allocation167_spill] sm:$0xff] %v4804_v57  ;;  %6932 = vst [vmem:[#allocation168_spill] sm:$0xff] %v4806_v60  ;;  %3229 = vmatpush1.bf16.msra.mxu1 %v4813_v24  ;;  %v1863_v1 = vand.u32 4294901760, %v458_v31  ;;  %v577_v42 = vand.u32 4294901760, %v391_v40  ;;  %v4824_v45 = vsub.f32 %v451_v63, %v1853_v10  ;;  %v398_v60 = vld [vmem:[#allocation5 + $0x1f8] sm:$0xff] }
 0x1ad   : > { %6933 = vst [vmem:[#allocation169_spill] sm:$0xff] %v4809_v50  ;;  %6934 = vst [vmem:[#allocation170_spill] sm:$0xff] %v4811_v41  ;;  %v4822_v20 = vpack.c.bf16 %v1857_v51, %v1853_v10  ;;  %v4826_v32 = vsub.f32 %v453_v16, %v1857_v51  ;;  %v4828_v0 = vsub.f32 %v392_v23, %v575_v12  ;;  %v581_v16 = vand.u32 4294901760, %v393_v22 }
 0x1ae   : > { %6935 = vst [vmem:[#allocation171_spill] sm:$0xff] %v4813_v24  ;;  %6936 = vst [vmem:[#allocation172_spill] sm:$0xff] %v4815_v36  ;;  %v4830_v19 = vpack.c.bf16 %v579_v34, %v575_v12  ;;  %v4832_v24 = vsub.f32 %v394_v53, %v579_v34  ;;  %v4834_v29 = vpack.c.bf16 %v1863_v1, %v1859_v30  ;;  %v1861_v23 = vand.u32 4294901760, %v455_v43 }
 0x1af   : > { %6937 = vst [vmem:[#allocation173_spill] sm:$0xff] %v4819_v18  ;;  %6938 = vst [vmem:[#allocation174_spill] sm:$0xff] %v4822_v20  ;;  %v4836_v21 = vsub.f32 %v456_v35, %v1859_v30  ;;  %3613 = vmatpush1.bf16.msra.mxu0 %v4822_v20  ;;  %v4839_v63 = vsub.f32 %v458_v31, %v1863_v1  ;;  %v4841_v10 = vsub.f32 %v391_v40, %v577_v42  ;;  %v397_v1 = vld [vmem:[#allocation5 + $0x1f0] sm:$0xff]  ;;  %v459_v40 = vld [vmem:[#allocation5 + $0x3e0] sm:$0xff] }
 0x1b0   : > { %6939 = vst [vmem:[#allocation175_spill] sm:$0xff] %v4824_v45  ;;  %6940 = vst [vmem:[#allocation176_spill] sm:$0xff] %v4826_v32  ;;  %3231 = vmatprep.subr.bf16.mxu1 %v4830_v19  ;;  %3615 = vmatprep.subr.bf16.mxu0 %v4834_v29  ;;  %v1865_v51 = vand.u32 4294901760, %v457_v52  ;;  %v583_v53 = vand.u32 4294901760, %v396_v39  ;;  %v587_v12 = vand.u32 4294901760, %v398_v60  ;;  %v1867_v34 = vand.u32 4294901760, %v460_v62 }
 0x1b1   : > { %6941 = vst [vmem:[#allocation177_spill] sm:$0xff] %v4828_v0  ;;  %6942 = vst [vmem:[#allocation178_spill] sm:$0xff] %v4830_v19  ;;  %v4845_v35 = vpack.c.bf16 %v581_v16, %v577_v42  ;;  %v4847_v30 = vsub.f32 %v393_v22, %v581_v16  ;;  %v4849_v20 = vsub.f32 %v455_v43, %v1861_v23  ;;  %v1871_v31 = vand.u32 4294901760, %v462_v37 }
 0x1b2   : > { %6943 = vst [vmem:[#allocation179_spill] sm:$0xff] %v4832_v24  ;;  %6944 = vst [vmem:[#allocation180_spill] sm:$0xff] %v4834_v29  ;;  %v395_v24 = vld [vmem:[#allocation5 + $0x1e0] sm:$0xff]  ;;  %v4853_v19 = vsub.f32 %v457_v52, %v1865_v51  ;;  %v4855_v29 = vpack.c.bf16 %v587_v12, %v583_v53  ;;  %v4860_v42 = vsub.f32 %v398_v60, %v587_v12 }
 0x1b3   : > { %6945 = vst [vmem:[#allocation181_spill] sm:$0xff] %v4836_v21  ;;  %6946 = vst [vmem:[#allocation182_spill] sm:$0xff] %v4839_v63  ;;  %v4851_v63 = vpack.c.bf16 %v1865_v51, %v1861_v23  ;;  %v4857_v21 = vsub.f32 %v396_v39, %v583_v53  ;;  %3233 = vmatpush1.bf16.msra.mxu1 %v4845_v35  ;;  %v4862_v22 = vpack.c.bf16 %v1871_v31, %v1867_v34 }
 0x1b4   : > { %6947 = vst [vmem:[#allocation183_spill] sm:$0xff] %v4841_v10  ;;  %6948 = vst [vmem:[#allocation184_spill] sm:$0xff] %v4845_v35  ;;  %v461_v10 = vld [vmem:[#allocation5 + $0x3f0] sm:$0xff]  ;;  %v4864_v43 = vsub.f32 %v460_v62, %v1867_v34  ;;  %v4866_v16 = vsub.f32 %v462_v37, %v1871_v31  ;;  %3235 = vmatprep.subr.bf16.mxu1 %v4855_v29  ;;  %v585_v52 = vand.u32 4294901760, %v395_v24  ;;  %v589_v23 = vand.u32 4294901760, %v397_v1 }
 0x1b5   : > { %6949 = vst [vmem:[#allocation185_spill] sm:$0xff] %v4847_v30  ;;  %6950 = vst [vmem:[#allocation186_spill] sm:$0xff] %v4849_v20  ;;  %3617 = vmatpush1.bf16.msra.mxu0 %v4851_v63  ;;  %v1869_v51 = vand.u32 4294901760, %v459_v40  ;;  %v6526_v39 = vand.u32 4294901760, %v4366_v47  ;;  %v6965_v53 = vand.u32 4294901760, %v4368_v48 }
 0x1b6   : > { %6951 = vst [vmem:[#allocation187_spill] sm:$0xff] %v4851_v63  ;;  %6952 = vst [vmem:[#allocation188_spill] sm:$0xff] %v4853_v19  ;;  %v1873_v19 = vand.u32 4294901760, %v461_v10  ;;  %3619 = vmatprep.subr.bf16.mxu0 %v4862_v22  ;;  %v4875_v37 = vpack.c.bf16 %v589_v23, %v585_v52  ;;  %v4877_v12 = vsub.f32 %v395_v24, %v585_v52  ;;  %v6966_v24 = vand.u32 4294901760, %v4370_v49 }
 0x1b7   : > { %6953 = vst [vmem:[#allocation189_spill] sm:$0xff] %v4855_v29  ;;  %6954 = vst [vmem:[#allocation190_spill] sm:$0xff] %v4857_v21  ;;  %v4879_v34 = vsub.f32 %v397_v1, %v589_v23  ;;  %v4883_v29 = vsub.f32 %v459_v40, %v1869_v51  ;;  %v611_v60 = vsub.f32 %v4366_v47, %v6526_v39  ;;  %v6967_v40 = vand.u32 4294901760, %v4374_v54 }
 0x1b8   : > { %6955 = vst [vmem:[#allocation191_spill] sm:$0xff] %v4860_v42  ;;  %6956 = vst [vmem:[#allocation192_spill] sm:$0xff] %v4862_v22  ;;  %v4881_v31 = vpack.c.bf16 %v1873_v19, %v1869_v51  ;;  %v4885_v63 = vsub.f32 %v461_v10, %v1873_v19  ;;  %v623_v62 = vsub.f32 %v4368_v48, %v6965_v53  ;;  %3237 = vmatpush1.bf16.msra.mxu1 %v4875_v37 }
 0x1b9   : > { %6957 = vst [vmem:[#allocation193_spill] sm:$0xff] %v4864_v43  ;;  %6958 = vst [vmem:[#allocation194_spill] sm:$0xff] %v4866_v16  ;;  %v1895_v1 = vsub.f32 %v4370_v49, %v6966_v24  ;;  %v1907_v19 = vsub.f32 %v4374_v54, %v6967_v40  ;;  %v612_v10 = vand.u32 4294901760, %v611_v60  ;;  %v6537_v53 = vand.u32 4294901760, %v4378_v56  ;;  %v6971_v40 = vld [vmem:[#allocation32_spill] sm:$0xff]  ;;  %v6972_v24 = vld [vmem:[#allocation34_spill] sm:$0xff] }
 0x1ba   : > { %6959 = vst [vmem:[#allocation195_spill] sm:$0xff] %v4875_v37  ;;  %6960 = vst [vmem:[#allocation196_spill] sm:$0xff] %v4877_v12  ;;  %3621 = vmatpush1.bf16.msra.mxu0 %v4881_v31  ;;  %v624_v52 = vand.u32 4294901760, %v623_v62  ;;  %v6543_v37 = vand.u32 4294901760, %v4387_v6  ;;  %v6968_v62 = vld [vmem:[#allocation28_spill] sm:$0xff]  ;;  %v6974_v54 = vand.u32 4294901760, %v4391_v8 }
 0x1bb   : > { %6961 = vst [vmem:[#allocation197_spill] sm:$0xff] %v4879_v34  ;;  %6962 = vst [vmem:[#allocation198_spill] sm:$0xff] %v4881_v31  ;;  %v1896_v23 = vand.u32 4294901760, %v1895_v1  ;;  %v1908_v51 = vand.u32 4294901760, %v1907_v19  ;;  %v6540_v31 = vand.u32 4294901760, %v4381_v58  ;;  %v6969_v19 = vld [vmem:[#allocation29_spill] sm:$0xff] }
 0x1bc   : > { %6963 = vst [vmem:[#allocation199_spill] sm:$0xff] %v4883_v29  ;;  %6964 = vst [vmem:[#allocation200_spill] sm:$0xff] %v4885_v63  ;;  %v3238_v39 = vpack.c.bf16 %v624_v52, %v612_v10  ;;  %v4177_v52 = vmov 839922192   ;;  %v1901_v60 = vsub.f32 %v4387_v6, %v6543_v37  ;;  %v6977_v1 = vand.u32 4294901760, %v6968_v62  ;;  %v6983_v63 = vld [vmem:[#allocation37_spill] sm:$0xff] }
 0x1bd   : > { %v3622_v22 = vpack.c.bf16 %v1908_v51, %v1896_v23  ;;  %v296_v23 = vunpack.c.l.s4 %v4177_v52  ;;  %v617_v51 = vsub.f32 %v4378_v56, %v6537_v53  ;;  %v629_v35 = vsub.f32 %v4381_v58, %v6540_v31 }
 0x1be   : > { %3239 = vmatprep.subr.bf16.mxu1 %v3238_v39  ;;  %v6970_v39 = vld [vmem:[#allocation31_spill] sm:$0xff]  ;;  %v635_v53 = vsub.f32 %v4391_v8, %v6974_v54  ;;  %v6975_v56 = vand.u32 4294901760, %v4395_v13  ;;  %v6976_v58 = vand.u32 4294901760, %v4399_v15  ;;  %v1931_v10 = vsub.f32 %v6968_v62, %v6977_v1  ;;  %v6980_v8 = vld [vmem:[#allocation36_spill] sm:$0xff] }
 0x1bf   : > { %3623 = vmatprep.subr.bf16.mxu0 %v3622_v22  ;;  %v6973_v22 = vand.u32 4294901760, %v4389_v7  ;;  %v6978_v6 = vand.u32 4294901760, %v6969_v19  ;;  %v297_v48 = vunpack.c.0.s8 %v296_v23  ;;  %v1902_v47 = vand.u32 4294901760, %v1901_v60 }
 0x1c0   : > { %v647_v31 = vsub.f32 %v4395_v13, %v6975_v56  ;;  %v1919_v37 = vsub.f32 %v4399_v15, %v6976_v58  ;;  %v618_v56 = vand.u32 4294901760, %v617_v51  ;;  %v630_v13 = vand.u32 4294901760, %v629_v35  ;;  %v6985_v51 = vld [vmem:[#allocation39_spill] sm:$0xff] }
 0x1c1   : > { %v1913_v52 = vsub.f32 %v4389_v7, %v6973_v22  ;;  %v641_v22 = vsub.f32 %v6969_v19, %v6978_v6  ;;  %v6979_v7 = vand.u32 4294901760, %v6970_v39  ;;  %v6981_v58 = vand.u32 4294901760, %v6971_v40 }
 0x1c2   : > { %v6982_v1 = vand.u32 4294901760, %v6972_v24  ;;  %v6570_v6 = vand.u32 4294901760, %v6983_v63  ;;  %v636_v29 = vand.u32 4294901760, %v635_v53  ;;  %v648_v34 = vand.u32 4294901760, %v647_v31  ;;  %v6987_v53 = vld [vmem:[#allocation123_spill] sm:$0xff] }
 0x1c3   : > { %v653_v54 = vsub.f32 %v6970_v39, %v6979_v7  ;;  %v1925_v15 = vsub.f32 %v6971_v40, %v6981_v58  ;;  %v1914_v19 = vand.u32 4294901760, %v1913_v52  ;;  %v1920_v7 = vand.u32 4294901760, %v1919_v37  ;;  %v6986_v58 = vld [vmem:[#allocation40_spill] sm:$0xff] }
 0x1c4   : > { %v1937_v62 = vsub.f32 %v6972_v24, %v6982_v1  ;;  %v1932_v39 = vand.u32 4294901760, %v1931_v10  ;;  %v642_v49 = vand.u32 4294901760, %v641_v22  ;;  %v6984_v35 = vand.u32 4294901760, %v6980_v8 }
 0x1c5   : > { %v654_v23 = vand.u32 4294901760, %v653_v54  ;;  %v6571_v12 = vand.u32 4294901760, %v6985_v51  ;;  %v6575_v40 = vand.u32 4294901760, %v6986_v58  ;;  %v1926_v16 = vand.u32 4294901760, %v1925_v15 }
 0x1c6   : > { %v659_v60 = vsub.f32 %v6980_v8, %v6984_v35  ;;  %v1938_v43 = vand.u32 4294901760, %v1937_v62  ;;  %v671_v52 = vsub.f32 %v6983_v63, %v6570_v6  ;;  %v4960_v31 = vsub.s32 %v297_v48, %v6987_v53  ;;  %v6993_v62 = vld [vmem:[#allocation42_spill] sm:$0xff]  ;;  %v6999_v53 = vld [vmem:[#allocation49_spill] sm:$0xff]  ;;  %v7001_v63 = vld [vmem:[#allocation52_spill] sm:$0xff] }
 0x1c7   : > { %v4962_v37 = vpack.c.bf16 %v630_v13, %v618_v56  ;;  %v4964_v10 = vpack.c.bf16 %v1914_v19, %v1902_v47  ;;  %v4966_v22 = vpack.c.bf16 %v648_v34, %v636_v29  ;;  %v4968_v54 = vpack.c.bf16 %v1932_v39, %v1920_v7  ;;  %v6994_v56 = vld [vmem:[#allocation43_spill] sm:$0xff]  ;;  %v6996_v34 = vld [vmem:[#allocation45_spill] sm:$0xff] }
 0x1c8   : > { %v4970_v1 = vpack.c.bf16 %v654_v23, %v642_v49  ;;  %v660_v35 = vand.u32 4294901760, %v659_v60  ;;  %v1943_v15 = vsub.f32 %v6985_v51, %v6571_v12  ;;  %v1955_v48 = vsub.f32 %v6986_v58, %v6575_v40  ;;  %v6997_v49 = vld [vmem:[#allocation46_spill] sm:$0xff]  ;;  %v6998_v23 = vld [vmem:[#allocation48_spill] sm:$0xff]  ;;  %v7000_v12 = vld [vmem:[#allocation51_spill] sm:$0xff] }
 0x1c9   : > { %6988 = vst [vmem:[#allocation123_spill] sm:$0xff] %v4962_v37  ;;  %6989 = vst [vmem:[#allocation201_spill] sm:$0xff] %v4964_v10  ;;  %v4980_v19 = vpack.c.bf16 %v1938_v43, %v1926_v16  ;;  %v672_v29 = vand.u32 4294901760, %v671_v52  ;;  %v7002_v40 = vld [vmem:[#allocation53_spill] sm:$0xff]  ;;  %v7003_v13 = vld [vmem:[#allocation55_spill] sm:$0xff]  ;;  %v7006_v7 = vand.u32 4294901760, %v6993_v62 }
 0x1ca   : > { %6990 = vst [vmem:[#allocation202_spill] sm:$0xff] %v4966_v22  ;;  %6991 = vst [vmem:[#allocation203_spill] sm:$0xff] %v4968_v54  ;;  %v7004_v47 = vld [vmem:[#allocation57_spill] sm:$0xff]  ;;  %v7005_v16 = vld [vmem:[#allocation58_spill] sm:$0xff]  ;;  %v1956_v39 = vand.u32 4294901760, %v1955_v48  ;;  %v7007_v6 = vand.u32 4294901760, %v6994_v56 }
 0x1cb   : > { %6992 = vst [vmem:[#allocation204_spill] sm:$0xff] %v4970_v1  ;;  %6995 = vst [vmem:[#allocation205_spill] sm:$0xff] %v4980_v19  ;;  %v1944_v19 = vand.u32 4294901760, %v1943_v15  ;;  %v665_v60 = vsub.f32 %v6993_v62, %v7006_v7  ;;  %v7008_v8 = vand.u32 4294901760, %v6996_v34  ;;  %v7009_v24 = vand.u32 4294901760, %v6997_v49  ;;  %v7010_v1 = vld [vmem:[#allocation60_spill] sm:$0xff] }
 0x1cc   : > { %v677_v51 = vsub.f32 %v6994_v56, %v7007_v6  ;;  %v7011_v15 = vld [vmem:[#allocation61_spill] sm:$0xff]  ;;  %v7012_v54 = vand.u32 4294901760, %v6998_v23  ;;  %v7013_v62 = vand.u32 4294901760, %v6999_v53  ;;  %v7014_v56 = vand.u32 4294901760, %v7000_v12  ;;  %v7020_v10 = vld [vmem:[#allocation62_spill] sm:$0xff] }
 0x1cd   : > { %v1949_v58 = vsub.f32 %v6996_v34, %v7008_v8  ;;  %v1961_v43 = vsub.f32 %v6997_v49, %v7009_v24  ;;  %v7015_v34 = vand.u32 4294901760, %v7001_v63  ;;  %v7016_v52 = vand.u32 4294901760, %v7002_v40 }
 0x1ce   : > { %v683_v7 = vsub.f32 %v6998_v23, %v7012_v54  ;;  %v695_v6 = vsub.f32 %v6999_v53, %v7013_v62  ;;  %v1967_v8 = vsub.f32 %v7000_v12, %v7014_v56  ;;  %v7017_v49 = vand.u32 4294901760, %v7003_v13 }
 0x1cf   : > { %v1979_v24 = vsub.f32 %v7001_v63, %v7015_v34  ;;  %v689_v48 = vsub.f32 %v7002_v40, %v7016_v52  ;;  %v7018_v23 = vand.u32 4294901760, %v7004_v47  ;;  %v7019_v53 = vand.u32 4294901760, %v7005_v16  ;;  %v7021_v63 = vld [vmem:[#allocation64_spill] sm:$0xff] }
 0x1d0   : > { %v701_v54 = vsub.f32 %v7003_v13, %v7017_v49  ;;  %v666_v12 = vand.u32 4294901760, %v665_v60  ;;  %v678_v22 = vand.u32 4294901760, %v677_v51  ;;  %v6595_v37 = vand.u32 4294901760, %v7021_v63 }
 0x1d1   : > { %v1973_v62 = vsub.f32 %v7004_v47, %v7018_v23  ;;  %v1985_v56 = vsub.f32 %v7005_v16, %v7019_v53  ;;  %v1950_v42 = vand.u32 4294901760, %v1949_v58  ;;  %v1962_v52 = vand.u32 4294901760, %v1961_v43 }
 0x1d2   : > { %v7022_v40 = vand.u32 4294901760, %v7010_v1  ;;  %v7023_v13 = vand.u32 4294901760, %v7011_v15  ;;  %v684_v47 = vand.u32 4294901760, %v683_v7  ;;  %v696_v21 = vand.u32 4294901760, %v695_v6 }
 0x1d3   : > { %v1968_v20 = vand.u32 4294901760, %v1967_v8  ;;  %v1980_v53 = vand.u32 4294901760, %v1979_v24  ;;  %v690_v60 = vand.u32 4294901760, %v689_v48  ;;  %v702_v51 = vand.u32 4294901760, %v701_v54  ;;  %v7026_v8 = vld [vmem:[#allocation66_spill] sm:$0xff]  ;;  %v7027_v48 = vld [vmem:[#allocation67_spill] sm:$0xff] }
 0x1d4   : > { %v707_v49 = vsub.f32 %v7010_v1, %v7022_v40  ;;  %v719_v23 = vsub.f32 %v7011_v15, %v7023_v13  ;;  %v1974_v16 = vand.u32 4294901760, %v1973_v62  ;;  %v1986_v34 = vand.u32 4294901760, %v1985_v56  ;;  %v7048_v1 = vld [vmem:[#allocation85_spill] sm:$0xff] }
 0x1d5   : > { %v5038_v30 = vpack.c.bf16 %v672_v29, %v660_v35  ;;  %v5040_v58 = vpack.c.bf16 %v1956_v39, %v1944_v19  ;;  %v7025_v43 = vand.u32 4294901760, %v7020_v10  ;;  %v2003_v13 = vsub.f32 %v7021_v63, %v6595_v37  ;;  %v7031_v29 = vld [vmem:[#allocation69_spill] sm:$0xff]  ;;  %v7036_v63 = vld [vmem:[#allocation72_spill] sm:$0xff] }
 0x1d6   : > { %v708_v7 = vand.u32 4294901760, %v707_v49  ;;  %v720_v6 = vand.u32 4294901760, %v719_v23  ;;  %v5050_v62 = vpack.c.bf16 %v678_v22, %v666_v12  ;;  %v5052_v35 = vpack.c.bf16 %v1962_v52, %v1950_v42  ;;  %v7035_v49 = vld [vmem:[#allocation70_spill] sm:$0xff]  ;;  %v7037_v12 = vld [vmem:[#allocation73_spill] sm:$0xff] }
 0x1d7   : > { %7024 = vst [vmem:[#allocation206_spill] sm:$0xff] %v5040_v58  ;;  %v1991_v40 = vsub.f32 %v7020_v10, %v7025_v43  ;;  %v5054_v19 = vpack.c.bf16 %v696_v21, %v684_v47  ;;  %v6601_v39 = vand.u32 4294901760, %v7031_v29  ;;  %v5057_v56 = vpack.c.bf16 %v1980_v53, %v1968_v20  ;;  %v7045_v22 = vld [vmem:[#allocation81_spill] sm:$0xff]  ;;  %v7046_v23 = vld [vmem:[#allocation82_spill] sm:$0xff] }
 0x1d8   : > { %7028 = vst [vmem:[#allocation207_spill] sm:$0xff] %v5050_v62  ;;  %7029 = vst [vmem:[#allocation208_spill] sm:$0xff] %v5052_v35  ;;  %v5059_v43 = vpack.c.bf16 %v702_v51, %v690_v60  ;;  %v5061_v10 = vpack.c.bf16 %v1986_v34, %v1974_v16  ;;  %v2004_v24 = vand.u32 4294901760, %v2003_v13  ;;  %v5066_v42 = vpack.c.bf16 %v720_v6, %v708_v7  ;;  %v7041_v16 = vld [vmem:[#allocation74_spill] sm:$0xff]  ;;  %v7042_v60 = vld [vmem:[#allocation76_spill] sm:$0xff] }
 0x1d9   : > { %7030 = vst [vmem:[#allocation209_spill] sm:$0xff] %v5054_v19  ;;  %7032 = vst [vmem:[#allocation210_spill] sm:$0xff] %v5057_v56  ;;  %v1992_v37 = vand.u32 4294901760, %v1991_v40  ;;  %v7039_v21 = vand.u32 4294901760, %v7026_v8  ;;  %v7040_v20 = vand.u32 4294901760, %v7027_v48  ;;  %v1997_v53 = vsub.f32 %v7031_v29, %v6601_v39  ;;  %v7043_v40 = vld [vmem:[#allocation78_spill] sm:$0xff] }
 0x1da   : > { %7033 = vst [vmem:[#allocation211_spill] sm:$0xff] %v5059_v43  ;;  %7034 = vst [vmem:[#allocation212_spill] sm:$0xff] %v5061_v10  ;;  %v7044_v7 = vld [vmem:[#allocation79_spill] sm:$0xff]  ;;  %v7050_v34 = vand.u32 4294901760, %v7035_v49  ;;  %v7051_v51 = vand.u32 4294901760, %v7036_v63  ;;  %v7052_v6 = vand.u32 4294901760, %v7037_v12 }
 0x1db   : > { %7038 = vst [vmem:[#allocation213_spill] sm:$0xff] %v5066_v42  ;;  %v713_v47 = vsub.f32 %v7026_v8, %v7039_v21  ;;  %v725_v52 = vsub.f32 %v7027_v48, %v7040_v20  ;;  %v7047_v8 = vld [vmem:[#allocation84_spill] sm:$0xff]  ;;  %v5085_v48 = vpack.c.bf16 %v2004_v24, %v1992_v37  ;;  %v7053_v21 = vand.u32 4294901760, %v7041_v16  ;;  %v7054_v20 = vld [vmem:[#allocation86_spill] sm:$0xff]  ;;  %v7066_v35 = vld [vmem:[#allocation91_spill] sm:$0xff] }
 0x1dc   : > { %v2009_v39 = vsub.f32 %v7035_v49, %v7050_v34  ;;  %v731_v13 = vsub.f32 %v7036_v63, %v7051_v51  ;;  %v743_v54 = vsub.f32 %v7037_v12, %v7052_v6  ;;  %v7055_v24 = vld [vmem:[#allocation88_spill] sm:$0xff]  ;;  %v7056_v34 = vand.u32 4294901760, %v7042_v60  ;;  %v7068_v62 = vld [vmem:[#allocation94_spill] sm:$0xff] }
 0x1dd   : > { %7049 = vst [vmem:[#allocation214_spill] sm:$0xff] %v5085_v48  ;;  %v714_v29 = vand.u32 4294901760, %v713_v47  ;;  %v2015_v15 = vsub.f32 %v7041_v16, %v7053_v21  ;;  %v726_v42 = vand.u32 4294901760, %v725_v52  ;;  %v7057_v51 = vand.u32 4294901760, %v7043_v40 }
 0x1de   : > { %v2027_v49 = vsub.f32 %v7042_v60, %v7056_v34  ;;  %v7058_v6 = vand.u32 4294901760, %v7044_v7  ;;  %v7059_v12 = vand.u32 4294901760, %v7045_v22  ;;  %v7060_v37 = vand.u32 4294901760, %v7046_v23 }
 0x1df   : > { %v737_v63 = vsub.f32 %v7043_v40, %v7057_v51  ;;  %v7061_v48 = vand.u32 4294901760, %v7047_v8  ;;  %v7062_v60 = vand.u32 4294901760, %v7048_v1  ;;  %v1998_v40 = vand.u32 4294901760, %v1997_v53 }
 0x1e0   : > { %v749_v47 = vsub.f32 %v7044_v7, %v7058_v6  ;;  %v2021_v21 = vsub.f32 %v7045_v22, %v7059_v12  ;;  %v2033_v52 = vsub.f32 %v7046_v23, %v7060_v37  ;;  %v2010_v16 = vand.u32 4294901760, %v2009_v39  ;;  %v7065_v23 = vld [vmem:[#allocation90_spill] sm:$0xff] }
 0x1e1   : > { %v755_v34 = vsub.f32 %v7047_v8, %v7061_v48  ;;  %v767_v51 = vsub.f32 %v7048_v1, %v7062_v60  ;;  %v732_v10 = vand.u32 4294901760, %v731_v13  ;;  %v744_v6 = vand.u32 4294901760, %v743_v54 }
 0x1e2   : > { %v2016_v7 = vand.u32 4294901760, %v2015_v15  ;;  %v7063_v43 = vand.u32 4294901760, %v7054_v20  ;;  %v7064_v22 = vand.u32 4294901760, %v7055_v24  ;;  %v2028_v48 = vand.u32 4294901760, %v2027_v49 }
 0x1e3   : > { %v738_v8 = vand.u32 4294901760, %v737_v63  ;;  %v750_v19 = vand.u32 4294901760, %v749_v47  ;;  %v6615_v60 = vand.u32 4294901760, %v7066_v35  ;;  %v2022_v53 = vand.u32 4294901760, %v2021_v21 }
 0x1e4   : > { %v2039_v12 = vsub.f32 %v7054_v20, %v7063_v43  ;;  %v2051_v37 = vsub.f32 %v7055_v24, %v7064_v22  ;;  %v2034_v39 = vand.u32 4294901760, %v2033_v52  ;;  %v756_v13 = vand.u32 4294901760, %v755_v34  ;;  %v7067_v43 = vld [vmem:[#allocation93_spill] sm:$0xff]  ;;  %v7073_v52 = vld [vmem:[#allocation98_spill] sm:$0xff] }
 0x1e5   : > { %v768_v54 = vand.u32 4294901760, %v767_v51  ;;  %v5130_v15 = vpack.c.bf16 %v726_v42, %v714_v29  ;;  %v5132_v1 = vpack.c.bf16 %v2010_v16, %v1998_v40  ;;  %v6617_v20 = vand.u32 4294901760, %v7067_v43  ;;  %v7071_v42 = vld [vmem:[#allocation96_spill] sm:$0xff]  ;;  %v7072_v40 = vld [vmem:[#allocation97_spill] sm:$0xff] }
 0x1e6   : > { %v6616_v58 = vand.u32 4294901760, %v7068_v62  ;;  %v5136_v22 = vpack.c.bf16 %v744_v6, %v732_v10  ;;  %v2040_v56 = vand.u32 4294901760, %v2039_v12  ;;  %v2052_v49 = vand.u32 4294901760, %v2051_v37 }
 0x1e7   : > { %v7070_v63 = vand.u32 4294901760, %v7065_v23  ;;  %v5146_v29 = vsub.f32 %v7066_v35, %v6615_v60  ;;  %v6618_v16 = vand.u32 4294901760, %v7071_v42  ;;  %v6619_v21 = vand.u32 4294901760, %v7072_v40  ;;  %v7078_v60 = vld [vmem:[#allocation100_spill] sm:$0xff]  ;;  %v7085_v35 = vld [vmem:[#allocation106_spill] sm:$0xff] }
 0x1e8   : > { %7069 = vst [vmem:[#allocation215_spill] sm:$0xff] %v5136_v22  ;;  %v5151_v10 = vpack.c.bf16 %v2028_v48, %v2016_v7  ;;  %v5153_v51 = vpack.c.bf16 %v750_v19, %v738_v8  ;;  %v5155_v6 = vpack.c.bf16 %v2034_v39, %v2022_v53  ;;  %v5157_v12 = vpack.c.bf16 %v768_v54, %v756_v13  ;;  %v7079_v7 = vld [vmem:[#allocation102_spill] sm:$0xff]  ;;  %v7084_v19 = vld [vmem:[#allocation105_spill] sm:$0xff] }
 0x1e9   : > { %v5141_v47 = vsub.f32 %v7065_v23, %v7070_v63  ;;  %v5162_v37 = vsub.f32 %v7067_v43, %v6617_v20  ;;  %v5167_v63 = vsub.f32 %v7068_v62, %v6616_v58  ;;  %v6628_v34 = vand.u32 4294901760, %v7078_v60  ;;  %v7082_v20 = vld [vmem:[#allocation103_spill] sm:$0xff] }
 0x1ea   : > { %7074 = vst [vmem:[#allocation216_spill] sm:$0xff] %v5151_v10  ;;  %7075 = vst [vmem:[#allocation217_spill] sm:$0xff] %v5153_v51  ;;  %v5171_v8 = vpack.c.bf16 %v2052_v49, %v2040_v56  ;;  %v6622_v53 = vand.u32 4294901760, %v4750_v46  ;;  %v6625_v39 = vand.u32 4294901760, %v4752_v17  ;;  %v5180_v54 = vsub.f32 %v7071_v42, %v6618_v16 }
 0x1eb   : > { %7076 = vst [vmem:[#allocation218_spill] sm:$0xff] %v5155_v6  ;;  %7077 = vst [vmem:[#allocation219_spill] sm:$0xff] %v5157_v12  ;;  %v5185_v58 = vsub.f32 %v7072_v40, %v6619_v21  ;;  %v7081_v56 = vand.u32 4294901760, %v7073_v52  ;;  %v6631_v48 = vand.u32 4294901760, %v4754_v3  ;;  %v5203_v21 = vsub.f32 %v7078_v60, %v6628_v34 }
 0x1ec   : > { %7080 = vst [vmem:[#allocation220_spill] sm:$0xff] %v5171_v8  ;;  %v2141_v13 = vsub.f32 %v4750_v46, %v6622_v53  ;;  %v2153_v16 = vsub.f32 %v4752_v17, %v6625_v39  ;;  %v6633_v53 = vand.u32 4294901760, %v4756_v14  ;;  %v6635_v43 = vand.u32 4294901760, %v4758_v33 }
 0x1ed   : > { %v5190_v49 = vsub.f32 %v7073_v52, %v7081_v56  ;;  %v7083_v56 = vand.u32 4294901760, %v7079_v7  ;;  %v875_v39 = vsub.f32 %v4754_v3, %v6631_v48  ;;  %v6637_v40 = vand.u32 4294901760, %v4762_v5 }
 0x1ee   : > { %v2142_v42 = vand.u32 4294901760, %v2141_v13  ;;  %v2154_v62 = vand.u32 4294901760, %v2153_v16  ;;  %v887_v60 = vsub.f32 %v4756_v14, %v6633_v53  ;;  %v2159_v16 = vsub.f32 %v4758_v33, %v6635_v43 }
 0x1ef   : > { %v5208_v52 = vsub.f32 %v7079_v7, %v7083_v56  ;;  %v6636_v56 = vand.u32 4294901760, %v4760_v9  ;;  %v876_v13 = vand.u32 4294901760, %v875_v39  ;;  %v6638_v48 = vand.u32 4294901760, %v4764_v55 }
 0x1f0   : > { %v5222_v7 = vpack.c.bf16 %v2154_v62, %v2142_v42  ;;  %v888_v23 = vand.u32 4294901760, %v887_v60  ;;  %v881_v53 = vsub.f32 %v4762_v5, %v6637_v40  ;;  %v6639_v24 = vand.u32 4294901760, %v4768_v26 }
 0x1f1   : > { %v2171_v34 = vsub.f32 %v4760_v9, %v6636_v56  ;;  %v2160_v62 = vand.u32 4294901760, %v2159_v16  ;;  %v893_v42 = vsub.f32 %v4764_v55, %v6638_v48  ;;  %v6640_v39 = vand.u32 4294901760, %v4770_v2 }
 0x1f2   : > { %7086 = vst [vmem:[#allocation221_spill] sm:$0xff] %v5222_v7  ;;  %v6641_v43 = vand.u32 4294901760, %v4775_v11  ;;  %v5240_v60 = vpack.c.bf16 %v888_v23, %v876_v13  ;;  %v882_v8 = vand.u32 4294901760, %v881_v53  ;;  %v2165_v56 = vsub.f32 %v4768_v26, %v6639_v24 }
 0x1f3   : > { %v2172_v7 = vand.u32 4294901760, %v2171_v34  ;;  %v894_v40 = vand.u32 4294901760, %v893_v42  ;;  %v2177_v16 = vsub.f32 %v4770_v2, %v6640_v39  ;;  %v6642_v12 = vand.u32 4294901760, %v4777_v25 }
 0x1f4   : > { %7087 = vst [vmem:[#allocation222_spill] sm:$0xff] %v5240_v60  ;;  %v899_v48 = vsub.f32 %v4775_v11, %v6641_v43  ;;  %v2166_v23 = vand.u32 4294901760, %v2165_v56  ;;  %v6643_v34 = vand.u32 4294901760, %v4781_v27  ;;  %v6644_v53 = vand.u32 4294901760, %v4783_v38 }
 0x1f5   : > { %v5252_v6 = vpack.c.bf16 %v2172_v7, %v2160_v62  ;;  %v5256_v13 = vpack.c.bf16 %v894_v40, %v882_v8  ;;  %v2178_v42 = vand.u32 4294901760, %v2177_v16  ;;  %v911_v39 = vsub.f32 %v4777_v25, %v6642_v12 }
 0x1f6   : > { %v900_v24 = vand.u32 4294901760, %v899_v48  ;;  %v2183_v43 = vsub.f32 %v4781_v27, %v6643_v34  ;;  %v2195_v7 = vsub.f32 %v4783_v38, %v6644_v53  ;;  %v6645_v56 = vand.u32 4294901760, %v4788_v28 }
 0x1f7   : > { %7088 = vst [vmem:[#allocation223_spill] sm:$0xff] %v5252_v6  ;;  %7089 = vst [vmem:[#allocation224_spill] sm:$0xff] %v5256_v13  ;;  %v6646_v62 = vand.u32 4294901760, %v4790_v44  ;;  %v5269_v40 = vpack.c.bf16 %v2178_v42, %v2166_v23  ;;  %v912_v8 = vand.u32 4294901760, %v911_v39  ;;  %v6647_v48 = vand.u32 4294901760, %v4792_v59 }
 0x1f8   : > { %v6649_v16 = vand.u32 4294901760, %v4798_v61  ;;  %v2184_v12 = vand.u32 4294901760, %v2183_v43  ;;  %v2196_v13 = vand.u32 4294901760, %v2195_v7  ;;  %v905_v34 = vsub.f32 %v4788_v28, %v6645_v56  ;;  %v7181_v28 = vld [vmem:[#allocation216_spill] sm:$0xff] }
 0x1f9   : > { %7090 = vst [vmem:[#allocation225_spill] sm:$0xff] %v5269_v40  ;;  %v917_v53 = vsub.f32 %v4790_v44, %v6646_v62  ;;  %v5279_v6 = vpack.c.bf16 %v912_v8, %v900_v24  ;;  %v2189_v39 = vsub.f32 %v4792_v59, %v6647_v48  ;;  %v6648_v43 = vand.u32 4294901760, %v4802_v4  ;;  %v7199_v59 = vld [vmem:[#allocation139_spill] sm:$0xff] }
 0x1fa   : > { %v2201_v23 = vsub.f32 %v4798_v61, %v6649_v16  ;;  %v5288_v42 = vpack.c.bf16 %v2196_v13, %v2184_v12  ;;  %v906_v7 = vand.u32 4294901760, %v905_v34  ;;  %v6650_v40 = vand.u32 4294901760, %v4804_v57  ;;  %v7195_v61 = vld [vmem:[#allocation137_spill] sm:$0xff] }
 0x1fb   : > { %7091 = vst [vmem:[#allocation226_spill] sm:$0xff] %v5279_v6  ;;  %v918_v56 = vand.u32 4294901760, %v917_v53  ;;  %v2190_v60 = vand.u32 4294901760, %v2189_v39  ;;  %v923_v24 = vsub.f32 %v4802_v4, %v6648_v43  ;;  %v6651_v8 = vand.u32 4294901760, %v4809_v50 }
 0x1fc   : > { %7092 = vst [vmem:[#allocation227_spill] sm:$0xff] %v5288_v42  ;;  %v2202_v62 = vand.u32 4294901760, %v2201_v23  ;;  %v935_v12 = vsub.f32 %v4804_v57, %v6650_v40  ;;  %v6652_v34 = vand.u32 4294901760, %v4811_v41  ;;  %v6653_v53 = vand.u32 4294901760, %v4815_v36  ;;  %v7202_v57 = vld [vmem:[#allocation220_spill] sm:$0xff] }
 0x1fd   : > { %v5295_v6 = vpack.c.bf16 %v918_v56, %v906_v7  ;;  %v924_v23 = vand.u32 4294901760, %v923_v24  ;;  %v2207_v43 = vsub.f32 %v4809_v50, %v6651_v8  ;;  %v6654_v40 = vand.u32 4294901760, %v4819_v18 }
 0x1fe   : > { %v5303_v39 = vpack.c.bf16 %v2202_v62, %v2190_v60  ;;  %v936_v16 = vand.u32 4294901760, %v935_v12  ;;  %v2219_v56 = vsub.f32 %v4811_v41, %v6652_v34  ;;  %v929_v7 = vsub.f32 %v4815_v36, %v6653_v53 }
 0x1ff   : > { %7093 = vst [vmem:[#allocation228_spill] sm:$0xff] %v5295_v6  ;;  %v4040_v6 = vld [vmem:[%s4346_s13] sm:$0xff]  ;;  %v2208_v60 = vand.u32 4294901760, %v2207_v43  ;;  %v6658_v62 = vand.u32 4294901760, %v4824_v45  ;;  %v941_v34 = vsub.f32 %v4819_v18, %v6654_v40 }
 0x200   : > { %7094 = vst [vmem:[#allocation229_spill] sm:$0xff] %v5303_v39  ;;  %v5320_v24 = vpack.c.bf16 %v936_v16, %v924_v23  ;;  %v2220_v12 = vand.u32 4294901760, %v2219_v56  ;;  %v930_v8 = vand.u32 4294901760, %v929_v7  ;;  %v7098_v39 = vand.u32 4294901760, %v4826_v32 }
 0x201   : > { %v2213_v16 = vsub.f32 %v4824_v45, %v6658_v62  ;;  %v942_v7 = vand.u32 4294901760, %v941_v34 }
 0x202   : > { %7096 = vst [vmem:[#allocation231_spill] sm:$0xff] %v5320_v24  ;;  %v5334_v56 = vpack.c.bf16 %v2220_v12, %v2208_v60  ;;  %v2225_v42 = vsub.f32 %v4826_v32, %v7098_v39  ;;  %v6665_v60 = vand.u32 4294901760, %v4828_v0  ;;  %v7100_v12 = vld [vmem:[#allocation179_spill] sm:$0xff] }
 0x203   : > { %v2214_v24 = vand.u32 4294901760, %v2213_v16  ;;  %v5341_v18 = vpack.c.bf16 %v942_v7, %v930_v8  ;;  %v6666_v34 = vand.u32 4294901760, %v7100_v12 }
 0x204   : > { %7097 = vst [vmem:[#allocation232_spill] sm:$0xff] %v5334_v56  ;;  %v2226_v62 = vand.u32 4294901760, %v2225_v42  ;;  %v947_v39 = vsub.f32 %v4828_v0, %v6665_v60 }
 0x205   : > { %7099 = vst [vmem:[#allocation233_spill] sm:$0xff] %v5341_v18  ;;  %v959_v8 = vsub.f32 %v7100_v12, %v6666_v34 }
 0x206   : > { %v5345_v16 = vpack.c.bf16 %v2226_v62, %v2214_v24  ;;  %v948_v18 = vand.u32 4294901760, %v947_v39 }
 0x207   : > { %v960_v32 = vand.u32 4294901760, %v959_v8 }
 0x208   : > { %7101 = vst [vmem:[#allocation234_spill] sm:$0xff] %v5345_v16 }
 0x209   : > { %v5358_v16 = vpack.c.bf16 %v960_v32, %v948_v18  ;;  %v7107_v32 = vld [vmem:[#allocation186_spill] sm:$0xff] }
 0x20a   : > { %v6673_v18 = vand.u32 4294901760, %v7107_v32 }
 0x20b   : > { %7104 = vst [vmem:[#allocation235_spill] sm:$0xff] %v5358_v16 }
 0x215   : > { %v293_v48 = vpop.permute.xlu0 %292 }
 0x216   : > { %v301_v13 = vrot.slane %v293_v48, %v4960_v31 }
 0x218   : > { %v5316_v31 = vmul.f32 %v4040_v6, %v301_v13 }
 0x21a   : > { %7095 = vst [vmem:[#allocation230_spill] sm:$0xff] %v5316_v31  ;;  %v305_v53 = vcombine.high %v5316_v31, %v5316_v31  ;;  %v307_v6 = vsel %vm233_vm0, %v5316_v31, 0.0  ;;  %v321_v43 = vsel %vm233_vm0, %v5316_v31, -inf }
 0x21b   : > { %v308_v13 = vrot.slane %v307_v6, 4  ;;  %v322_v23 = vrot.slane %v321_v43, 4 }
 0x21c   : > { %v314_v40 = vsel %vm233_vm0, %v305_v53, 0.0  ;;  %v328_v48 = vsel %vm233_vm0, %v305_v53, -inf }
 0x21d   : > { %v309_v51 = vadd.f32 %v308_v13, %v307_v6  ;;  %v323_v31 = vmax.f32 %v321_v43, %v322_v23  ;;  %v315_v10 = vrot.slane %v314_v40, 4  ;;  %v329_v22 = vrot.slane %v328_v48, 4  ;;  %v7102_v6 = vld [vmem:[#allocation181_spill] sm:$0xff] }
 0x21e   : > { %v6668_v42 = vand.u32 4294901760, %v7102_v6 }
 0x21f   : > { %v310_v56 = vrot.slane %v309_v51, 2  ;;  %v324_v45 = vrot.slane %v323_v31, 2  ;;  %v316_v36 = vadd.f32 %v315_v10, %v314_v40  ;;  %v330_v53 = vmax.f32 %v328_v48, %v329_v22  ;;  %v7103_v10 = vld [vmem:[#allocation182_spill] sm:$0xff] }
 0x220   : > { %v2231_v22 = vsub.f32 %v7102_v6, %v6668_v42  ;;  %v6669_v40 = vand.u32 4294901760, %v7103_v10 }
 0x221   : > { %v317_v43 = vrot.slane %v316_v36, 2  ;;  %v331_v13 = vrot.slane %v330_v53, 2  ;;  %v311_v23 = vadd.f32 %v310_v56, %v309_v51  ;;  %v325_v7 = vmax.f32 %v323_v31, %v324_v45  ;;  %v7105_v45 = vld [vmem:[#allocation183_spill] sm:$0xff] }
 0x222   : > { %v2232_v34 = vand.u32 4294901760, %v2231_v22  ;;  %v2243_v51 = vsub.f32 %v7103_v10, %v6669_v40  ;;  %v6674_v31 = vand.u32 4294901760, %v7105_v45 }
 0x223   : > { %v318_v62 = vadd.f32 %v317_v43, %v316_v36  ;;  %v332_v48 = vmax.f32 %v330_v53, %v331_v13  ;;  %v312_v24 = vrot.slane %v311_v23, 1  ;;  %v326_v60 = vrot.slane %v325_v7, 1  ;;  %v7106_v53 = vld [vmem:[#allocation185_spill] sm:$0xff] }
 0x224   : > { %v2244_v42 = vand.u32 4294901760, %v2243_v51  ;;  %v953_v36 = vsub.f32 %v7105_v45, %v6674_v31  ;;  %v6672_v43 = vand.u32 4294901760, %v7106_v53  ;;  %v7115_v51 = vld [vmem:[#allocation188_spill] sm:$0xff] }
 0x225   : > { %v319_v56 = vrot.slane %v318_v62, 1  ;;  %v333_v39 = vrot.slane %v332_v48, 1  ;;  %v313_v8 = vadd.f32 %v312_v24, %v311_v23  ;;  %v327_v12 = vmax.f32 %v325_v7, %v326_v60  ;;  %v7126_v45 = vld [vmem:[#allocation196_spill] sm:$0xff] }
 0x226   : > { %v5373_v10 = vpack.c.bf16 %v2244_v42, %v2232_v34  ;;  %v954_v6 = vand.u32 4294901760, %v953_v36  ;;  %v965_v60 = vsub.f32 %v7106_v53, %v6672_v43  ;;  %v2237_v23 = vsub.f32 %v7107_v32, %v6673_v18 }
 0x227   : > { %v320_v13 = vadd.f32 %v319_v56, %v318_v62  ;;  %v334_v22 = vmax.f32 %v332_v48, %v333_v39  ;;  %v5369_v16 = vand.u32 4294901760, %v313_v8  ;;  %v5371_v40 = vand.u32 4294901760, %v327_v12  ;;  %v7116_v39 = vld [vmem:[#allocation190_spill] sm:$0xff] }
 0x228   : > { %7110 = vst [vmem:[#allocation238_spill] sm:$0xff] %v5373_v10  ;;  %v966_v34 = vand.u32 4294901760, %v965_v60  ;;  %v2238_v42 = vand.u32 4294901760, %v2237_v23  ;;  %v6679_v56 = vand.u32 4294901760, %v7115_v51  ;;  %v6680_v36 = vand.u32 4294901760, %v7116_v39  ;;  %v7120_v23 = vld [vmem:[#allocation191_spill] sm:$0xff] }
 0x229   : > { %7108 = vst [vmem:[#allocation236_spill] sm:$0xff] %v5369_v16  ;;  %7109 = vst [vmem:[#allocation237_spill] sm:$0xff] %v5371_v40  ;;  %v5381_v7 = vand.u32 4294901760, %v320_v13  ;;  %v5383_v24 = vand.u32 4294901760, %v334_v22  ;;  %v5386_v62 = vsub.f32 %v313_v8, %v5369_v16  ;;  %v5389_v48 = vsub.f32 %v327_v12, %v5371_v40  ;;  %v7122_v10 = vld [vmem:[#allocation193_spill] sm:$0xff] }
 0x22a   : > { %v5401_v16 = vpack.c.bf16 %v966_v34, %v954_v6  ;;  %v2249_v12 = vsub.f32 %v7115_v51, %v6679_v56  ;;  %v971_v60 = vsub.f32 %v7116_v39, %v6680_v36  ;;  %v6701_v39 = vand.u32 4294901760, %v7122_v10 }
 0x22b   : > { %7111 = vst [vmem:[#allocation239_spill] sm:$0xff] %v5381_v7  ;;  %7112 = vst [vmem:[#allocation240_spill] sm:$0xff] %v5383_v24  ;;  %v5394_v43 = vsub.f32 %v320_v13, %v5381_v7  ;;  %v5397_v18 = vsub.f32 %v334_v22, %v5383_v24  ;;  %v6683_v31 = vand.u32 4294901760, %v5386_v62  ;;  %v6688_v13 = vand.u32 4294901760, %v7120_v23 }
 0x22c   : > { %7113 = vst [vmem:[#allocation241_spill] sm:$0xff] %v5386_v62  ;;  %7114 = vst [vmem:[#allocation242_spill] sm:$0xff] %v5389_v48  ;;  %v7121_v6 = vand.u32 4294901760, %v5389_v48  ;;  %v972_v56 = vand.u32 4294901760, %v971_v60  ;;  %v2255_v60 = vsub.f32 %v7122_v10, %v6701_v39  ;;  %v6704_v0 = vand.u32 4294901760, %v7126_v45  ;;  %v7133_v39 = vld [vmem:[#allocation110_spill] sm:$0xff] }
 0x22d   : > { %7117 = vst [vmem:[#allocation243_spill] sm:$0xff] %v5394_v43  ;;  %7118 = vst [vmem:[#allocation244_spill] sm:$0xff] %v5397_v18  ;;  %v6695_v40 = vand.u32 4294901760, %v5394_v43  ;;  %v600_v8 = vsub.f32 %v5386_v62, %v6683_v31  ;;  %v983_v36 = vsub.f32 %v7120_v23, %v6688_v13  ;;  %v7123_v51 = vand.u32 4294901760, %v5397_v18 }
 0x22e   : > { %7119 = vst [vmem:[#allocation245_spill] sm:$0xff] %v5401_v16  ;;  %v1884_v34 = vsub.f32 %v5389_v48, %v7121_v6  ;;  %v2250_v16 = vand.u32 4294901760, %v2249_v12  ;;  %v7125_v6 = vld [vmem:[#allocation194_spill] sm:$0xff] }
 0x22f   : > { %v594_v22 = vsub.f32 %v5394_v43, %v6695_v40  ;;  %v1878_v31 = vsub.f32 %v5397_v18, %v7123_v51  ;;  %v601_v62 = vand.u32 4294901760, %v600_v8  ;;  %v984_v12 = vand.u32 4294901760, %v983_v36  ;;  %v7127_v40 = vld [vmem:[#allocation197_spill] sm:$0xff]  ;;  %v7130_v8 = vld [vmem:[#allocation108_spill] sm:$0xff]  ;;  %v7135_v18 = vld [vmem:[#allocation123_spill] sm:$0xff] }
 0x230   : > { %v1885_v32 = vand.u32 4294901760, %v1884_v34  ;;  %v5428_v53 = vpack.c.bf16 %v2250_v16, %v2238_v42  ;;  %v6700_v13 = vand.u32 4294901760, %v7125_v6  ;;  %v6705_v43 = vand.u32 4294901760, %v7127_v40  ;;  %v7129_v42 = vld [vmem:[#allocation199_spill] sm:$0xff] }
 0x231   : > { %v595_v48 = vand.u32 4294901760, %v594_v22  ;;  %v1879_v23 = vand.u32 4294901760, %v1878_v31  ;;  %v5436_v41 = vpack.c.bf16 %v984_v12, %v972_v56  ;;  %v2256_v51 = vand.u32 4294901760, %v2255_v60  ;;  %v7131_v22 = vld [vmem:[#allocation200_spill] sm:$0xff]  ;;  %v7132_v60 = vld [vmem:[#allocation109_spill] sm:$0xff] }
 0x232   : > { %7124 = vst [vmem:[#allocation246_spill] sm:$0xff] %v5428_v53  ;;  %v2267_v16 = vsub.f32 %v7125_v6, %v6700_v13  ;;  %v977_v31 = vsub.f32 %v7126_v45, %v6704_v0  ;;  %v989_v56 = vsub.f32 %v7127_v40, %v6705_v43  ;;  %v6707_v12 = vand.u32 4294901760, %v7131_v22  ;;  %v7136_v0 = vld [vmem:[#allocation201_spill] sm:$0xff]  ;;  %v7141_v53 = vld [vmem:[#allocation203_spill] sm:$0xff] }
 0x233   : > { %7128 = vst [vmem:[#allocation247_spill] sm:$0xff] %v5436_v41  ;;  %596 = vmatprep.mubr.f32.mxu1 %v595_v48  ;;  %1880 = vmatprep.mubr.f32.mxu0 %v1879_v23  ;;  %v7134_v23 = vand.u32 4294901760, %v7129_v42  ;;  %v7137_v41 = vld [vmem:[#allocation112_spill] sm:$0xff]  ;;  %v7143_v13 = vand.u32 4294901760, %v7130_v8 }
 0x234   : > { %602 = vmatmul.mubr.f32.vlgmr.msra.gmra.mrb[0].mxu1 %v601_v62  ;;  %1886 = vmatmul.mubr.f32.vlgmr.msra.gmra.mrb[0].mxu0 %v1885_v32  ;;  %v2268_v48 = vand.u32 4294901760, %v2267_v16  ;;  %v978_v43 = vand.u32 4294901760, %v977_v31  ;;  %v990_v40 = vand.u32 4294901760, %v989_v56  ;;  %v2273_v32 = vsub.f32 %v7131_v22, %v6707_v12  ;;  %v7140_v56 = vld [vmem:[#allocation202_spill] sm:$0xff]  ;;  %v7205_v22 = vld [vmem:[#allocation143_spill] sm:$0xff] }
 0x235   : > { %v2261_v34 = vsub.f32 %v7129_v42, %v7134_v23  ;;  %3241 = vmatpush1.bf16.msra.mxu1 %v7135_v18  ;;  %3625 = vmatpush1.bf16.msra.mxu0 %v7136_v0  ;;  %v7138_v62 = vand.u32 4294901760, %v7082_v20  ;;  %v7139_v18 = vand.u32 4294901760, %v7084_v19  ;;  %v7142_v12 = vand.u32 4294901760, %v7085_v35  ;;  %v7204_v42 = vld [vmem:[#allocation142_spill] sm:$0xff] }
 0x236   : > { %993 = vmatprep.mubr.f32.mxu1 %v5381_v7  ;;  %2277 = vmatprep.mubr.f32.mxu0 %v5383_v24  ;;  %v5469_v23 = vpack.c.bf16 %v2268_v48, %v2256_v51  ;;  %v803_v24 = vsub.f32 %v7130_v8, %v7143_v13  ;;  %v2274_v7 = vand.u32 4294901760, %v2273_v32  ;;  %v2058_v51 = vand.u32 4294901760, %v5167_v63  ;;  %v7160_v8 = vld [vmem:[#allocation210_spill] sm:$0xff] }
 0x237   : > { %v797_v16 = vsub.f32 %v7082_v20, %v7138_v62  ;;  %v2069_v0 = vsub.f32 %v7084_v19, %v7139_v18  ;;  %v2262_v31 = vand.u32 4294901760, %v2261_v34  ;;  %3243 = vmatprep.subr.bf16.mxu1 %v7140_v56  ;;  %3627 = vmatprep.subr.bf16.mxu0 %v7141_v53  ;;  %v2081_v36 = vsub.f32 %v7085_v35, %v7142_v12  ;;  %v7145_v56 = vld [vmem:[#allocation204_spill] sm:$0xff]  ;;  %v7146_v12 = vld [vmem:[#allocation205_spill] sm:$0xff] }
 0x238   : > { %v5479_v62 = vpack.c.bf16 %v990_v40, %v978_v43  ;;  %v2046_v18 = vand.u32 4294901760, %v5162_v37  ;;  %v780_v34 = vand.u32 4294901760, %v5180_v54  ;;  %v7144_v48 = vand.u32 4294901760, %v7132_v60  ;;  %v7150_v54 = vld [vmem:[#allocation206_spill] sm:$0xff] }
 0x239   : > { %3245 = vmatpush1.bf16.msra.mxu1 %v7145_v56  ;;  %3629 = vmatpush1.bf16.msra.mxu0 %v7146_v12  ;;  %v792_v35 = vand.u32 4294901760, %v5185_v58  ;;  %v7147_v40 = vand.u32 4294901760, %v7133_v39  ;;  %v7148_v37 = vand.u32 4294901760, %v7137_v41  ;;  %v5496_v13 = vpack.c.bf16 %v2274_v7, %v2262_v31  ;;  %v7153_v31 = vld [vmem:[#allocation117_spill] sm:$0xff] }
 0x23a   : > { %v815_v53 = vsub.f32 %v7132_v60, %v7144_v48  ;;  %3247 = vmatprep.subr.bf16.mxu1 %v5038_v30  ;;  %3631 = vmatprep.subr.bf16.mxu0 %v7150_v54  ;;  %v2064_v32 = vand.u32 4294901760, %v5190_v49  ;;  %v2076_v48 = vand.u32 4294901760, %v5203_v21  ;;  %v786_v58 = vand.u32 4294901760, %v5208_v52  ;;  %v7154_v30 = vld [vmem:[#allocation118_spill] sm:$0xff]  ;;  %v7155_v54 = vld [vmem:[#allocation207_spill] sm:$0xff]  ;;  %v7156_v49 = vld [vmem:[#allocation208_spill] sm:$0xff] }
 0x23b   : > { %v2087_v43 = vsub.f32 %v7133_v39, %v7147_v40  ;;  %v2099_v63 = vsub.f32 %v7137_v41, %v7148_v37  ;;  %7149 = vst [vmem:[#allocation123_spill] sm:$0xff] %v5496_v13  ;;  %v798_v56 = vand.u32 4294901760, %v797_v16  ;;  %v2070_v12 = vand.u32 4294901760, %v2069_v0  ;;  %v7151_v39 = vld [vmem:[#allocation114_spill] sm:$0xff]  ;;  %v7152_v37 = vld [vmem:[#allocation115_spill] sm:$0xff]  ;;  %v7157_v52 = vld [vmem:[#allocation132_spill] sm:$0xff] }
 0x23c   : > { %v2082_v60 = vand.u32 4294901760, %v2081_v36  ;;  %v804_v40 = vand.u32 4294901760, %v803_v24  ;;  %v816_v19 = vand.u32 4294901760, %v815_v53  ;;  %v7158_v0 = vld [vmem:[#allocation133_spill] sm:$0xff]  ;;  %v7161_v53 = vand.u32 4294901760, %v5141_v47 }
 0x23d   : > { %3249 = vmatpush1.bf16.msra.mxu1 %v7155_v54  ;;  %3633 = vmatpush1.bf16.msra.mxu0 %v7156_v49  ;;  %v2088_v21 = vand.u32 4294901760, %v2087_v43  ;;  %v2100_v13 = vand.u32 4294901760, %v2099_v63  ;;  %v7159_v24 = vld [vmem:[#allocation209_spill] sm:$0xff]  ;;  %v7162_v41 = vand.u32 4294901760, %v5146_v29  ;;  %v5519_v20 = vpack.c.bf16 %v2058_v51, %v2046_v18  ;;  %v7163_v43 = vld [vmem:[#allocation134_spill] sm:$0xff] }
 0x23e   : > { %3251 = vmatprep.subr.bf16.mxu1 %v7159_v24  ;;  %3635 = vmatprep.subr.bf16.mxu0 %v7160_v8  ;;  %v5521_v54 = vpack.c.bf16 %v792_v35, %v780_v34  ;;  %v6719_v63 = vand.u32 4294901760, %v7163_v43  ;;  %v5524_v49 = vpack.c.bf16 %v2076_v48, %v2064_v32  ;;  %v5526_v16 = vpack.c.bf16 %v798_v56, %v786_v58  ;;  %v7168_v32 = vld [vmem:[#allocation211_spill] sm:$0xff]  ;;  %v7169_v48 = vld [vmem:[#allocation212_spill] sm:$0xff]  ;;  %v7172_v24 = vld [vmem:[#allocation213_spill] sm:$0xff] }
 0x23f   : > { %v5517_v7 = vpack.c.bf16 %v7162_v41, %v7161_v53  ;;  %v5528_v36 = vpack.c.bf16 %v2082_v60, %v2070_v12  ;;  %v7164_v8 = vand.u32 4294901760, %v7151_v39  ;;  %v5535_v29 = vpack.c.bf16 %v816_v19, %v804_v40  ;;  %v7173_v53 = vld [vmem:[#allocation214_spill] sm:$0xff] }
 0x240   : > { %v7165_v41 = vand.u32 4294901760, %v7152_v37  ;;  %v7166_v18 = vand.u32 4294901760, %v7153_v31  ;;  %v7167_v60 = vand.u32 4294901760, %v7154_v30  ;;  %v5554_v19 = vpack.c.bf16 %v2100_v13, %v2088_v21  ;;  %v7174_v13 = vld [vmem:[#allocation135_spill] sm:$0xff] }
 0x241   : > { %v5533_v47 = vsub.f32 %v7151_v39, %v7164_v8  ;;  %3253 = vmatpush1.bf16.msra.mxu1 %v7168_v32  ;;  %3637 = vmatpush1.bf16.msra.mxu0 %v7169_v48  ;;  %v7170_v58 = vand.u32 4294901760, %v7157_v52  ;;  %v7171_v12 = vand.u32 4294901760, %v7158_v0  ;;  %v5571_v8 = vsub.f32 %v7163_v43, %v6719_v63  ;;  %v7197_v48 = vld [vmem:[#allocation217_spill] sm:$0xff] }
 0x242   : > { %v5540_v35 = vsub.f32 %v7152_v37, %v7165_v41  ;;  %v5545_v51 = vsub.f32 %v7153_v31, %v7166_v18  ;;  %v5550_v34 = vsub.f32 %v7154_v30, %v7167_v60  ;;  %3255 = vmatprep.subr.bf16.mxu1 %v7172_v24  ;;  %3639 = vmatprep.subr.bf16.mxu0 %v7173_v53  ;;  %v7180_v24 = vld [vmem:[#allocation215_spill] sm:$0xff]  ;;  %v7182_v53 = vld [vmem:[#allocation136_spill] sm:$0xff]  ;;  %v7203_v60 = vld [vmem:[#allocation141_spill] sm:$0xff]  ;;  %v7215_v44 = vand.u32 4294901760, %v7205_v22 }
 0x243   : > { %v5559_v56 = vsub.f32 %v7157_v52, %v7170_v58  ;;  %v5564_v40 = vsub.f32 %v7158_v0, %v7171_v12  ;;  %v7198_v12 = vld [vmem:[#allocation218_spill] sm:$0xff]  ;;  %v7206_v6 = vand.u32 4294901760, %v7182_v53  ;;  %v7212_v18 = vld [vmem:[#allocation145_spill] sm:$0xff] }
 0x244   : > { %v822_v10 = vand.u32 4294901760, %v5540_v35  ;;  %v2094_v50 = vand.u32 4294901760, %v5545_v51  ;;  %v7207_v51 = vand.u32 4294901760, %v7195_v61  ;;  %v7217_v38 = vand.u32 4294901760, %v7212_v18 }
 0x245   : > { %3257 = vmatpush1.bf16.msra.mxu1 %v5130_v15  ;;  %3641 = vmatpush1.bf16.msra.mxu0 %v5132_v1  ;;  %v7194_v15 = vand.u32 4294901760, %v7174_v13  ;;  %v7196_v1 = vld [vmem:[#allocation138_spill] sm:$0xff]  ;;  %v828_v35 = vand.u32 4294901760, %v5559_v56  ;;  %v840_v45 = vand.u32 4294901760, %v5564_v40  ;;  %v7211_v40 = vld [vmem:[#allocation144_spill] sm:$0xff] }
 0x246   : > { %3259 = vmatprep.subr.bf16.mxu1 %v7180_v24  ;;  %3643 = vmatprep.subr.bf16.mxu0 %v7181_v28  ;;  %v810_v28 = vand.u32 4294901760, %v5533_v47  ;;  %v7200_v24 = vld [vmem:[#allocation140_spill] sm:$0xff]  ;;  %v2106_v47 = vand.u32 4294901760, %v5550_v34  ;;  %v845_v58 = vsub.f32 %v7195_v61, %v7207_v51  ;;  %v7209_v34 = vand.u32 4294901760, %v7199_v59 }
 0x247   : > { %v2123_v63 = vsub.f32 %v7174_v13, %v7194_v15  ;;  %v7201_v15 = vld [vmem:[#allocation219_spill] sm:$0xff]  ;;  %v3274_v4 = vpack.c.bf16 %v840_v45, %v828_v35  ;;  %v7216_v27 = vand.u32 4294901760, %v7211_v40 }
 0x248   : > { %v2129_v56 = vsub.f32 %v7199_v59, %v7209_v34  ;;  %v3272_v32 = vpack.c.bf16 %v822_v10, %v810_v28  ;;  %v7224_v35 = vld [vmem:[#allocation227_spill] sm:$0xff] }
 0x249   : > { %3261 = vmatpush1.bf16.msra.mxu1 %v7197_v48  ;;  %3645 = vmatpush1.bf16.msra.mxu0 %v7198_v12  ;;  %v2124_v21 = vand.u32 4294901760, %v2123_v63  ;;  %v7208_v48 = vand.u32 4294901760, %v7196_v1 }
 0x24a   : > { %3263 = vmatprep.subr.bf16.mxu1 %v7201_v15  ;;  %3647 = vmatprep.subr.bf16.mxu0 %v7202_v57  ;;  %v833_v15 = vsub.f32 %v7182_v53, %v7206_v6  ;;  %v2112_v57 = vand.u32 4294901760, %v5571_v8  ;;  %v7210_v6 = vand.u32 4294901760, %v7200_v24  ;;  %v3656_v8 = vpack.c.bf16 %v2106_v47, %v2094_v50  ;;  %v7222_v47 = vld [vmem:[#allocation225_spill] sm:$0xff] }
 0x24b   : > { %v2117_v12 = vsub.f32 %v7196_v1, %v7208_v48  ;;  %v7214_v48 = vand.u32 4294901760, %v7204_v42 }
 0x24c   : > { %v851_v63 = vsub.f32 %v7200_v24, %v7210_v6  ;;  %v2147_v6 = vsub.f32 %v7205_v22, %v7215_v44  ;;  %v3658_v51 = vpack.c.bf16 %v2124_v21, %v2112_v57  ;;  %v834_v41 = vand.u32 4294901760, %v833_v15  ;;  %v7225_v15 = vld [vmem:[#allocation228_spill] sm:$0xff]  ;;  %v7226_v57 = vld [vmem:[#allocation229_spill] sm:$0xff] }
 0x24d   : > { %3265 = vmatpush1.bf16.msra.mxu1 %v5517_v7  ;;  %3649 = vmatpush1.bf16.msra.mxu0 %v5519_v20  ;;  %v7213_v7 = vand.u32 4294901760, %v7203_v60  ;;  %v2135_v34 = vsub.f32 %v7204_v42, %v7214_v48  ;;  %v857_v48 = vsub.f32 %v7211_v40, %v7216_v27  ;;  %v869_v44 = vsub.f32 %v7212_v18, %v7217_v38 }
 0x24e   : > { %3267 = vmatprep.subr.bf16.mxu1 %v5521_v54  ;;  %3651 = vmatprep.subr.bf16.mxu0 %v5524_v49  ;;  %v846_v54 = vand.u32 4294901760, %v845_v58  ;;  %v2118_v49 = vand.u32 4294901760, %v2117_v12  ;;  %v852_v50 = vand.u32 4294901760, %v851_v63  ;;  %v7228_v63 = vld [vmem:[#allocation232_spill] sm:$0xff] }
 0x24f   : > { %v863_v20 = vsub.f32 %v7203_v60, %v7213_v7  ;;  %v2130_v7 = vand.u32 4294901760, %v2129_v56  ;;  %v2136_v45 = vand.u32 4294901760, %v2135_v34  ;;  %v858_v58 = vand.u32 4294901760, %v857_v48  ;;  %v7227_v56 = vld [vmem:[#allocation231_spill] sm:$0xff]  ;;  %v7232_v34 = vld [vmem:[#allocation238_spill] sm:$0xff]  ;;  %v7237_v48 = vld [vmem:[#allocation13_spill] sm:$0xff] }
 0x250   : > { %v870_v28 = vand.u32 4294901760, %v869_v44 }
 0x251   : > { %3269 = vmatpush1.bf16.msra.mxu1 %v5526_v16  ;;  %3653 = vmatpush1.bf16.msra.mxu0 %v5528_v36  ;;  %v864_v10 = vand.u32 4294901760, %v863_v20  ;;  %v2148_v16 = vand.u32 4294901760, %v2147_v6  ;;  %v3276_v36 = vpack.c.bf16 %v846_v54, %v834_v41  ;;  %v3660_v21 = vpack.c.bf16 %v2130_v7, %v2118_v49  ;;  %v7221_v41 = vld [vmem:[#allocation224_spill] sm:$0xff]  ;;  %v7231_v20 = vld [vmem:[#allocation235_spill] sm:$0xff]  ;;  %v7233_v6 = vld [vmem:[#allocation245_spill] sm:$0xff] }
 0x252   : > { %3271 = vmatprep.subr.bf16.mxu1 %v5535_v29  ;;  %3655 = vmatprep.subr.bf16.mxu0 %v5554_v19  ;;  %v3280_v38 = vpack.c.bf16 %v870_v28, %v858_v58  ;;  %v7218_v29 = vld [vmem:[#allocation221_spill] sm:$0xff]  ;;  %v7219_v19 = vld [vmem:[#allocation222_spill] sm:$0xff]  ;;  %v7235_v49 = vld [vmem:[#allocation247_spill] sm:$0xff] }
 0x253   : > { %v3278_v27 = vpack.c.bf16 %v864_v10, %v852_v50  ;;  %v3662_v12 = vpack.c.bf16 %v2148_v16, %v2136_v45  ;;  %v7234_v54 = vld [vmem:[#allocation246_spill] sm:$0xff]  ;;  %v7236_v7 = vld [vmem:[#allocation12_spill] sm:$0xff]  ;;  %v7240_v16 = vld [vmem:[#allocation123_spill] sm:$0xff] }
 0x254   : > { %v3302_v44 = vpack.c.bf16 %v7237_v48, %v7236_v7  ;;  %v7238_v50 = vld [vmem:[#allocation14_spill] sm:$0xff]  ;;  %v7239_v10 = vld [vmem:[#allocation16_spill] sm:$0xff]  ;;  %v7243_v28 = vld [vmem:[#allocation21_spill] sm:$0xff] }
 0x255   : > { %3273 = vmatpush1.bf16.msra.mxu1 %v3272_v32  ;;  %3657 = vmatpush1.bf16.msra.mxu0 %v3656_v8  ;;  %v7220_v32 = vld [vmem:[#allocation223_spill] sm:$0xff]  ;;  %v7229_v8 = vld [vmem:[#allocation233_spill] sm:$0xff]  ;;  %v3686_v45 = vpack.c.bf16 %v7239_v10, %v7238_v50 }
 0x256   : > { %3275 = vmatprep.subr.bf16.mxu1 %v3274_v4  ;;  %3659 = vmatprep.subr.bf16.mxu0 %v3658_v51  ;;  %v7223_v4 = vld [vmem:[#allocation226_spill] sm:$0xff] }
 0x257   : > { %v7230_v51 = vld [vmem:[#allocation234_spill] sm:$0xff] }
 0x259   : > { %3277 = vmatpush1.bf16.msra.mxu1 %v3276_v36  ;;  %3661 = vmatpush1.bf16.msra.mxu0 %v3660_v21  ;;  %v7241_v36 = vld [vmem:[#allocation18_spill] sm:$0xff]  ;;  %v7242_v21 = vld [vmem:[#allocation19_spill] sm:$0xff] }
 0x25a   : > { %3279 = vmatprep.subr.bf16.mxu1 %v3278_v27  ;;  %3663 = vmatprep.subr.bf16.mxu0 %v3662_v12  ;;  %v3304_v58 = vpack.c.bf16 %v7242_v21, %v7241_v36  ;;  %v7244_v27 = vld [vmem:[#allocation22_spill] sm:$0xff] }
 0x25b   : > { %v3688_v12 = vpack.c.bf16 %v7244_v27, %v7243_v28 }
 0x25d   : > { %3281 = vmatpush1.bf16.msra.mxu1 %v3280_v38  ;;  %3665 = vmatpush1.bf16.msra.mxu0 %v7218_v29  ;;  %v7245_v38 = vld [vmem:[#allocation23_spill] sm:$0xff] }
 0x25e   : > { %3283 = vmatprep.subr.bf16.mxu1 %v7219_v19  ;;  %3667 = vmatprep.subr.bf16.mxu0 %v7220_v32  ;;  %v7247_v19 = vld [vmem:[#allocation27_spill] sm:$0xff]  ;;  %v7248_v32 = vld [vmem:[#allocation28_spill] sm:$0xff] }
 0x261   : > { %3285 = vmatpush1.bf16.msra.mxu1 %v7221_v41  ;;  %3669 = vmatpush1.bf16.msra.mxu0 %v7222_v47  ;;  %v3690_v41 = vpack.c.bf16 %v7248_v32, %v7247_v19  ;;  %v7249_v47 = vld [vmem:[#allocation236_spill] sm:$0xff] }
 0x262   : > { %3287 = vmatprep.subr.bf16.mxu1 %v7223_v4  ;;  %3671 = vmatprep.subr.bf16.mxu0 %v7224_v35  ;;  %v7250_v4 = vld [vmem:[#allocation237_spill] sm:$0xff] }
 0x263   : > { %v7252_v35 = vld [vmem:[#allocation29_spill] sm:$0xff] }
 0x265   : > { %3289 = vmatpush1.bf16.msra.mxu1 %v7225_v15  ;;  %3673 = vmatpush1.bf16.msra.mxu0 %v7226_v57  ;;  %v7253_v15 = vld [vmem:[#allocation31_spill] sm:$0xff] }
 0x266   : > { %3291 = vmatprep.subr.bf16.mxu1 %v7227_v56  ;;  %3675 = vmatprep.subr.bf16.mxu0 %v7228_v63  ;;  %v3308_v57 = vpack.c.bf16 %v7253_v15, %v7252_v35  ;;  %v7254_v56 = vld [vmem:[#allocation244_spill] sm:$0xff]  ;;  %v7266_v35 = vld [vmem:[#allocation49_spill] sm:$0xff] }
 0x267   : > { %v7255_v63 = vld [vmem:[#allocation32_spill] sm:$0xff] }
 0x268   : > { %v7265_v15 = vld [vmem:[#allocation48_spill] sm:$0xff] }
 0x269   : > { %3293 = vmatpush1.bf16.msra.mxu1 %v7229_v8  ;;  %3677 = vmatpush1.bf16.msra.mxu0 %v7230_v51  ;;  %v7256_v8 = vld [vmem:[#allocation34_spill] sm:$0xff] }
 0x26a   : > { %3295 = vmatprep.subr.bf16.mxu1 %v7231_v20  ;;  %3679 = vmatprep.subr.bf16.mxu0 %v7232_v34  ;;  %v3692_v51 = vpack.c.bf16 %v7256_v8, %v7255_v63  ;;  %v7257_v20 = vld [vmem:[#allocation36_spill] sm:$0xff]  ;;  %v7258_v34 = vld [vmem:[#allocation37_spill] sm:$0xff]  ;;  %v3314_v8 = vpack.c.bf16 %v7266_v35, %v7265_v15  ;;  %v7267_v63 = vld [vmem:[#allocation51_spill] sm:$0xff] }
 0x26b   : > { %v7278_v15 = vld [vmem:[#allocation67_spill] sm:$0xff] }
 0x26d   : > { %3297 = vmatpush1.bf16.msra.mxu1 %v7233_v6  ;;  %3681 = vmatpush1.bf16.msra.mxu0 %v7234_v54  ;;  %v3310_v6 = vpack.c.bf16 %v7258_v34, %v7257_v20  ;;  %v7259_v54 = vld [vmem:[#allocation39_spill] sm:$0xff]  ;;  %v7268_v34 = vld [vmem:[#allocation52_spill] sm:$0xff] }
 0x26e   : > { %3299 = vmatprep.subr.bf16.mxu1 %v7235_v49  ;;  %3683 = vmatprep.subr.bf16.mxu0 %v5469_v23  ;;  %v7246_v23 = vld [vmem:[#allocation25_spill] sm:$0xff]  ;;  %v7260_v49 = vld [vmem:[#allocation40_spill] sm:$0xff]  ;;  %v7270_v20 = vld [vmem:[#allocation55_spill] sm:$0xff] }
 0x26f   : > { %v3306_v29 = vpack.c.bf16 %v7246_v23, %v7245_v38 }
 0x271   : > { %3301 = vmatpush1.bf16.msra.mxu1 %v5479_v62  ;;  %3685 = vmatpush1.bf16.msra.mxu0 %v7240_v16  ;;  %v7251_v62 = vld [vmem:[#allocation243_spill] sm:$0xff] }
 0x272   : > { %3303 = vmatprep.subr.bf16.mxu1 %v3302_v44  ;;  %3687 = vmatprep.subr.bf16.mxu0 %v3686_v45  ;;  %v3694_v44 = vpack.c.bf16 %v7260_v49, %v7259_v54  ;;  %v7261_v45 = vld [vmem:[#allocation42_spill] sm:$0xff]  ;;  %v7262_v16 = vld [vmem:[#allocation43_spill] sm:$0xff] }
 0x274   : > { %995 = vmatmul.mubr.f32.vlgmr.msra.gmra.mrb[0].mxu1 %v7249_v47  ;;  %2279 = vmatmul.mubr.f32.vlgmr.msra.gmra.mrb[0].mxu0 %v7250_v4  ;;  %v7264_v4 = vld [vmem:[#allocation46_spill] sm:$0xff] }
 0x275   : > { %3305 = vmatpush1.bf16.msra.mxu1 %v3304_v58  ;;  %1195 = vmatprep.mubr.f32.mxu1 %v7251_v62  ;;  %v3312_v58 = vpack.c.bf16 %v7262_v16, %v7261_v45  ;;  %v7272_v16 = vld [vmem:[#allocation58_spill] sm:$0xff]  ;;  %v7274_v45 = vld [vmem:[#allocation61_spill] sm:$0xff] }
 0x276   : > { %3689 = vmatpush1.bf16.msra.mxu0 %v3688_v12  ;;  %2479 = vmatprep.mubr.f32.mxu0 %v7254_v56  ;;  %v7263_v12 = vld [vmem:[#allocation45_spill] sm:$0xff] }
 0x277   : > { %3307 = vmatprep.subr.bf16.mxu1 %v3306_v29  ;;  %3691 = vmatprep.subr.bf16.mxu0 %v3690_v41  ;;  %v3696_v47 = vpack.c.bf16 %v7264_v4, %v7263_v12  ;;  %v3698_v29 = vpack.c.bf16 %v7268_v34, %v7267_v63  ;;  %v7269_v41 = vld [vmem:[#allocation53_spill] sm:$0xff]  ;;  %v7275_v4 = vld [vmem:[#allocation62_spill] sm:$0xff]  ;;  %v7276_v12 = vld [vmem:[#allocation64_spill] sm:$0xff] }
 0x278   : > { %v3316_v49 = vpack.c.bf16 %v7270_v20, %v7269_v41  ;;  %v3702_v35 = vpack.c.bf16 %v7276_v12, %v7275_v4  ;;  %v7280_v20 = vld [vmem:[#allocation70_spill] sm:$0xff]  ;;  %v7282_v41 = vld [vmem:[#allocation73_spill] sm:$0xff] }
 0x279   : > { %3309 = vmatpush1.bf16.msra.mxu1 %v3308_v57  ;;  %v7271_v57 = vld [vmem:[#allocation57_spill] sm:$0xff] }
 0x27a   : > { %3693 = vmatpush1.bf16.msra.mxu0 %v3692_v51  ;;  %3311 = vmatprep.subr.bf16.mxu1 %v3310_v6  ;;  %v3700_v51 = vpack.c.bf16 %v7272_v16, %v7271_v57  ;;  %v7273_v6 = vld [vmem:[#allocation60_spill] sm:$0xff]  ;;  %v7283_v16 = vld [vmem:[#allocation74_spill] sm:$0xff] }
 0x27b   : > { %3695 = vmatprep.subr.bf16.mxu0 %v3694_v44  ;;  %v3318_v54 = vpack.c.bf16 %v7274_v45, %v7273_v6  ;;  %v7277_v44 = vld [vmem:[#allocation66_spill] sm:$0xff]  ;;  %v7284_v57 = vld [vmem:[#allocation76_spill] sm:$0xff]  ;;  %v7286_v6 = vld [vmem:[#allocation79_spill] sm:$0xff] }
 0x27c   : > { %v3320_v34 = vpack.c.bf16 %v7278_v15, %v7277_v44  ;;  %v3706_v45 = vpack.c.bf16 %v7284_v57, %v7283_v16  ;;  %v7288_v15 = vld [vmem:[#allocation82_spill] sm:$0xff]  ;;  %v7290_v44 = vld [vmem:[#allocation85_spill] sm:$0xff] }
 0x27d   : > { %3313 = vmatpush1.bf16.msra.mxu1 %v3312_v58  ;;  %v7279_v58 = vld [vmem:[#allocation69_spill] sm:$0xff] }
 0x27e   : > { %3697 = vmatpush1.bf16.msra.mxu0 %v3696_v47  ;;  %3315 = vmatprep.subr.bf16.mxu1 %v3314_v8  ;;  %v3704_v47 = vpack.c.bf16 %v7280_v20, %v7279_v58  ;;  %v7281_v8 = vld [vmem:[#allocation72_spill] sm:$0xff]  ;;  %v7291_v20 = vld [vmem:[#allocation86_spill] sm:$0xff] }
 0x27f   : > { %3699 = vmatprep.subr.bf16.mxu0 %v3698_v29  ;;  %v3322_v63 = vpack.c.bf16 %v7282_v41, %v7281_v8  ;;  %v7285_v29 = vld [vmem:[#allocation78_spill] sm:$0xff]  ;;  %v7292_v58 = vld [vmem:[#allocation88_spill] sm:$0xff]  ;;  %v7294_v8 = vld [vmem:[#allocation91_spill] sm:$0xff] }
 0x280   : > { %v3324_v12 = vpack.c.bf16 %v7286_v6, %v7285_v29  ;;  %v3710_v41 = vpack.c.bf16 %v7292_v58, %v7291_v20  ;;  %v7296_v6 = vld [vmem:[#allocation94_spill] sm:$0xff]  ;;  %v7298_v29 = vld [vmem:[#allocation97_spill] sm:$0xff] }
 0x281   : > { %3317 = vmatpush1.bf16.msra.mxu1 %v3316_v49  ;;  %v7287_v49 = vld [vmem:[#allocation81_spill] sm:$0xff] }
 0x282   : > { %3701 = vmatpush1.bf16.msra.mxu0 %v3700_v51  ;;  %3319 = vmatprep.subr.bf16.mxu1 %v3318_v54  ;;  %v3708_v51 = vpack.c.bf16 %v7288_v15, %v7287_v49  ;;  %v7289_v54 = vld [vmem:[#allocation84_spill] sm:$0xff]  ;;  %v7299_v15 = vld [vmem:[#allocation98_spill] sm:$0xff] }
 0x283   : > { %3703 = vmatprep.subr.bf16.mxu0 %v3702_v35  ;;  %v3326_v4 = vpack.c.bf16 %v7290_v44, %v7289_v54  ;;  %v7293_v35 = vld [vmem:[#allocation90_spill] sm:$0xff]  ;;  %v7300_v49 = vld [vmem:[#allocation100_spill] sm:$0xff]  ;;  %v7302_v54 = vld [vmem:[#allocation103_spill] sm:$0xff] }
 0x284   : > { %v3328_v57 = vpack.c.bf16 %v7294_v8, %v7293_v35  ;;  %v3714_v44 = vpack.c.bf16 %v7300_v49, %v7299_v15  ;;  %v7304_v8 = vld [vmem:[#allocation106_spill] sm:$0xff]  ;;  %v7306_v35 = vld [vmem:[#allocation109_spill] sm:$0xff] }
 0x285   : > { %3321 = vmatpush1.bf16.msra.mxu1 %v3320_v34  ;;  %v7295_v34 = vld [vmem:[#allocation93_spill] sm:$0xff] }
 0x286   : > { %3705 = vmatpush1.bf16.msra.mxu0 %v3704_v47  ;;  %3323 = vmatprep.subr.bf16.mxu1 %v3322_v63  ;;  %v3712_v47 = vpack.c.bf16 %v7296_v6, %v7295_v34  ;;  %v7297_v63 = vld [vmem:[#allocation96_spill] sm:$0xff]  ;;  %v7307_v6 = vld [vmem:[#allocation110_spill] sm:$0xff] }
 0x287   : > { %3707 = vmatprep.subr.bf16.mxu0 %v3706_v45  ;;  %v3330_v16 = vpack.c.bf16 %v7298_v29, %v7297_v63  ;;  %v7301_v45 = vld [vmem:[#allocation102_spill] sm:$0xff]  ;;  %v7308_v34 = vld [vmem:[#allocation112_spill] sm:$0xff] }
 0x288   : > { %v3332_v58 = vpack.c.bf16 %v7302_v54, %v7301_v45  ;;  %v3718_v29 = vpack.c.bf16 %v7308_v34, %v7307_v6 }
 0x289   : > { %3325 = vmatpush1.bf16.msra.mxu1 %v3324_v12  ;;  %v7303_v12 = vld [vmem:[#allocation105_spill] sm:$0xff] }
 0x28a   : > { %3709 = vmatpush1.bf16.msra.mxu0 %v3708_v51  ;;  %3327 = vmatprep.subr.bf16.mxu1 %v3326_v4  ;;  %v3716_v51 = vpack.c.bf16 %v7304_v8, %v7303_v12  ;;  %v7305_v4 = vld [vmem:[#allocation108_spill] sm:$0xff] }
 0x28b   : > { %3711 = vmatprep.subr.bf16.mxu0 %v3710_v41  ;;  %v3334_v20 = vpack.c.bf16 %v7306_v35, %v7305_v4  ;;  %v3336_v41 = vpack.c.bf16 %v7152_v37, %v7151_v39 }
 0x28d   : > { %3329 = vmatpush1.bf16.msra.mxu1 %v3328_v57  ;;  %v3720_v57 = vpack.c.bf16 %v7154_v30, %v7153_v31 }
 0x28e   : > { %3713 = vmatpush1.bf16.msra.mxu0 %v3712_v47  ;;  %3331 = vmatprep.subr.bf16.mxu1 %v3330_v16  ;;  %v3338_v16 = vpack.c.bf16 %v7158_v0, %v7157_v52  ;;  %v3722_v47 = vpack.c.bf16 %v7174_v13, %v7163_v43 }
 0x28f   : > { %3715 = vmatprep.subr.bf16.mxu0 %v3714_v44  ;;  %v3340_v44 = vpack.c.bf16 %v7195_v61, %v7182_v53 }
 0x291   : > { %3333 = vmatpush1.bf16.msra.mxu1 %v3332_v58  ;;  %v3724_v58 = vpack.c.bf16 %v7199_v59, %v7196_v1 }
 0x292   : > { %3717 = vmatpush1.bf16.msra.mxu0 %v3716_v51  ;;  %3335 = vmatprep.subr.bf16.mxu1 %v3334_v20  ;;  %v3342_v20 = vpack.c.bf16 %v7203_v60, %v7200_v24  ;;  %v3726_v51 = vpack.c.bf16 %v7205_v22, %v7204_v42 }
 0x293   : > { %3719 = vmatprep.subr.bf16.mxu0 %v3718_v29  ;;  %v3344_v29 = vpack.c.bf16 %v7212_v18, %v7211_v40 }
 0x295   : > { %3337 = vmatpush1.bf16.msra.mxu1 %v3336_v41  ;;  %v7309_v41 = vpack.c.bf16 %v4752_v17, %v4750_v46 }
 0x296   : > { %3721 = vmatpush1.bf16.msra.mxu0 %v3720_v57  ;;  %3339 = vmatprep.subr.bf16.mxu1 %v3338_v16  ;;  %v7310_v57 = vpack.c.bf16 %v4756_v14, %v4754_v3  ;;  %v7311_v16 = vpack.c.bf16 %v4760_v9, %v4758_v33  ;;  %v7322_v33 = vld [vmem:[#allocation162_spill] sm:$0xff] }
 0x297   : > { %3723 = vmatprep.subr.bf16.mxu0 %v3722_v47  ;;  %v7312_v47 = vpack.c.bf16 %v4764_v55, %v4762_v5  ;;  %v7325_v5 = vld [vmem:[#allocation166_spill] sm:$0xff] }
 0x299   : > { %3341 = vmatpush1.bf16.msra.mxu1 %v3340_v44  ;;  %v7313_v44 = vpack.c.bf16 %v4770_v2, %v4768_v26  ;;  %v7328_v26 = vld [vmem:[#allocation169_spill] sm:$0xff] }
 0x29a   : > { %3725 = vmatpush1.bf16.msra.mxu0 %v3724_v58  ;;  %3343 = vmatprep.subr.bf16.mxu1 %v3342_v20  ;;  %v7314_v58 = vpack.c.bf16 %v4777_v25, %v4775_v11  ;;  %v7315_v20 = vld [vmem:[#allocation158_spill] sm:$0xff]  ;;  %v7331_v11 = vld [vmem:[#allocation172_spill] sm:$0xff] }
 0x29b   : > { %3727 = vmatprep.subr.bf16.mxu0 %v3726_v51  ;;  %v7316_v51 = vld [vmem:[#allocation157_spill] sm:$0xff] }
 0x29d   : > { %3345 = vmatpush1.bf16.msra.mxu1 %v3344_v29  ;;  %v7317_v29 = vpack.c.bf16 %v7315_v20, %v7316_v51  ;;  %v7334_v51 = vld [vmem:[#allocation175_spill] sm:$0xff] }
 0x29e   : > { %3729 = vmatpush1.bf16.msra.mxu0 %v7309_v41  ;;  %3347 = vmatprep.subr.bf16.mxu1 %v7310_v57  ;;  %v7318_v41 = vld [vmem:[#allocation161_spill] sm:$0xff]  ;;  %v7319_v57 = vld [vmem:[#allocation160_spill] sm:$0xff] }
 0x29f   : > { %3731 = vmatprep.subr.bf16.mxu0 %v7311_v16  ;;  %v7320_v9 = vpack.c.bf16 %v7318_v41, %v7319_v57  ;;  %v7321_v16 = vld [vmem:[#allocation164_spill] sm:$0xff]  ;;  %v7337_v57 = vld [vmem:[#allocation177_spill] sm:$0xff] }
 0x2a0   : > { %v7323_v55 = vpack.c.bf16 %v7321_v16, %v7322_v33  ;;  %v7340_v33 = vld [vmem:[#allocation181_spill] sm:$0xff] }
 0x2a1   : > { %3349 = vmatpush1.bf16.msra.mxu1 %v7312_v47  ;;  %v7324_v47 = vld [vmem:[#allocation167_spill] sm:$0xff] }
 0x2a2   : > { %3733 = vmatpush1.bf16.msra.mxu0 %v7313_v44  ;;  %3351 = vmatprep.subr.bf16.mxu1 %v7314_v58  ;;  %v7326_v2 = vpack.c.bf16 %v7324_v47, %v7325_v5  ;;  %v7327_v44 = vld [vmem:[#allocation170_spill] sm:$0xff]  ;;  %v7330_v58 = vld [vmem:[#allocation173_spill] sm:$0xff]  ;;  %v7343_v5 = vld [vmem:[#allocation183_spill] sm:$0xff] }
 0x2a3   : > { %3735 = vmatprep.subr.bf16.mxu0 %v7317_v29  ;;  %v7329_v25 = vpack.c.bf16 %v7327_v44, %v7328_v26  ;;  %v7332_v20 = vpack.c.bf16 %v7330_v58, %v7331_v11  ;;  %v7333_v29 = vld [vmem:[#allocation176_spill] sm:$0xff]  ;;  %v7346_v26 = vld [vmem:[#allocation186_spill] sm:$0xff] }
 0x2a4   : > { %v7335_v41 = vpack.c.bf16 %v7333_v29, %v7334_v51  ;;  %v7349_v11 = vld [vmem:[#allocation190_spill] sm:$0xff]  ;;  %v7352_v51 = vld [vmem:[#allocation193_spill] sm:$0xff] }
 0x2a5   : > { %3353 = vmatpush1.bf16.msra.mxu1 %v7320_v9  ;;  %v7336_v9 = vld [vmem:[#allocation179_spill] sm:$0xff] }
 0x2a6   : > { %3737 = vmatpush1.bf16.msra.mxu0 %v7323_v55  ;;  %3355 = vmatprep.subr.bf16.mxu1 %v7326_v2  ;;  %v7338_v16 = vpack.c.bf16 %v7336_v9, %v7337_v57  ;;  %v7339_v55 = vld [vmem:[#allocation182_spill] sm:$0xff]  ;;  %v7342_v2 = vld [vmem:[#allocation185_spill] sm:$0xff]  ;;  %v7355_v57 = vld [vmem:[#allocation196_spill] sm:$0xff] }
 0x2a7   : > { %3739 = vmatprep.subr.bf16.mxu0 %v7329_v25  ;;  %v7341_v47 = vpack.c.bf16 %v7339_v55, %v7340_v33  ;;  %v7344_v44 = vpack.c.bf16 %v7342_v2, %v7343_v5  ;;  %v7345_v25 = vld [vmem:[#allocation188_spill] sm:$0xff]  ;;  %v7358_v33 = vld [vmem:[#allocation199_spill] sm:$0xff] }
 0x2a8   : > { %v7347_v58 = vpack.c.bf16 %v7345_v25, %v7346_v26  ;;  %v7361_v25 = vld [vmem:[#allocation15_spill] sm:$0xff] }
 0x2a9   : > { %3357 = vmatpush1.bf16.msra.mxu1 %v7332_v20  ;;  %v7348_v20 = vld [vmem:[#allocation191_spill] sm:$0xff] }
 0x2aa   : > { %3741 = vmatpush1.bf16.msra.mxu0 %v7335_v41  ;;  %3359 = vmatprep.subr.bf16.mxu1 %v7338_v16  ;;  %v7350_v29 = vpack.c.bf16 %v7348_v20, %v7349_v11  ;;  %v7351_v41 = vld [vmem:[#allocation194_spill] sm:$0xff]  ;;  %v7354_v16 = vld [vmem:[#allocation197_spill] sm:$0xff] }
 0x2ab   : > { %3743 = vmatprep.subr.bf16.mxu0 %v7341_v47  ;;  %v7353_v9 = vpack.c.bf16 %v7351_v41, %v7352_v51  ;;  %v7356_v55 = vpack.c.bf16 %v7354_v16, %v7355_v57  ;;  %v7357_v47 = vld [vmem:[#allocation200_spill] sm:$0xff]  ;;  %v7363_v20 = vld [vmem:[#allocation242_spill] sm:$0xff] }
 0x2ac   : > { %v7359_v2 = vpack.c.bf16 %v7357_v47, %v7358_v33  ;;  %v7366_v41 = vld [vmem:[#allocation20_spill] sm:$0xff]  ;;  %v7372_v33 = vld [vmem:[#allocation35_spill] sm:$0xff]  ;;  %v7373_v16 = vld [vmem:[#allocation38_spill] sm:$0xff] }
 0x2ad   : > { %3361 = vmatpush1.bf16.msra.mxu1 %v7344_v44  ;;  %v7360_v44 = vld [vmem:[#allocation11_spill] sm:$0xff]  ;;  %v7368_v47 = vld [vmem:[#allocation24_spill] sm:$0xff] }
 0x2ae   : > { %3745 = vmatpush1.bf16.msra.mxu0 %v7347_v58  ;;  %3363 = vmatprep.subr.bf16.mxu1 %v7350_v29  ;;  %v7362_v58 = vld [vmem:[#allocation241_spill] sm:$0xff] }
 0x2af   : > { %3747 = vmatprep.subr.bf16.mxu0 %v7353_v9  ;;  %v7364_v29 = vld [vmem:[#allocation17_spill] sm:$0xff]  ;;  %v7365_v9 = vand.u32 4294901760, %v7251_v62  ;;  %v7375_v62 = vld [vmem:[#allocation44_spill] sm:$0xff] }
 0x2b1   : > { %3365 = vmatpush1.bf16.msra.mxu1 %v7356_v55  ;;  %v7367_v55 = vand.u32 4294901760, %v7254_v56  ;;  %v7377_v56 = vld [vmem:[#allocation50_spill] sm:$0xff] }
 0x2b2   : > { %3749 = vmatpush1.bf16.msra.mxu0 %v7359_v2  ;;  %3367 = vmatprep.subr.bf16.mxu1 %v7360_v44  ;;  %v7369_v2 = vld [vmem:[#allocation26_spill] sm:$0xff] }
 0x2b3   : > { %3751 = vmatprep.subr.bf16.mxu0 %v7361_v25  ;;  %v7370_v44 = vld [vmem:[#allocation30_spill] sm:$0xff]  ;;  %v7371_v25 = vld [vmem:[#allocation33_spill] sm:$0xff] }
 0x2b4   : > { %1198 = vmatmul.mubr.f32.vlgmr.msra.gmra.mrb[0].mxu1 %v7362_v58 }
 0x2b5   : > { %2482 = vmatmul.mubr.f32.vlgmr.msra.gmra.mrb[0].mxu0 %v7363_v20  ;;  %3369 = vmatpush1.bf16.msra.mxu1 %v7364_v29  ;;  %v7374_v29 = vld [vmem:[#allocation41_spill] sm:$0xff] }
 0x2b6   : > { %1335 = vmatprep.mubr.f32.mxu1 %v7365_v9  ;;  %3753 = vmatpush1.bf16.msra.mxu0 %v7366_v41  ;;  %v7376_v9 = vld [vmem:[#allocation47_spill] sm:$0xff] }
 0x2b7   : > { %2619 = vmatprep.mubr.f32.mxu0 %v7367_v55  ;;  %3371 = vmatprep.subr.bf16.mxu1 %v7368_v47  ;;  %v7378_v55 = vld [vmem:[#allocation54_spill] sm:$0xff]  ;;  %v7379_v47 = vld [vmem:[#allocation56_spill] sm:$0xff]  ;;  %v7430_v41 = vld [vmem:[#allocation195_spill] sm:$0xff] }
 0x2b8   : > { %3755 = vmatprep.subr.bf16.mxu0 %v7369_v2  ;;  %v7380_v2 = vld [vmem:[#allocation59_spill] sm:$0xff] }
 0x2b9   : > { %3373 = vmatpush1.bf16.msra.mxu1 %v7370_v44  ;;  %v7381_v44 = vld [vmem:[#allocation63_spill] sm:$0xff] }
 0x2ba   : > { %3757 = vmatpush1.bf16.msra.mxu0 %v7371_v25  ;;  %3375 = vmatprep.subr.bf16.mxu1 %v7372_v33  ;;  %v7382_v25 = vld [vmem:[#allocation65_spill] sm:$0xff]  ;;  %v7383_v33 = vld [vmem:[#allocation68_spill] sm:$0xff] }
 0x2bb   : > { %3759 = vmatprep.subr.bf16.mxu0 %v7373_v16  ;;  %v7384_v16 = vld [vmem:[#allocation71_spill] sm:$0xff] }
 0x2bd   : > { %3377 = vmatpush1.bf16.msra.mxu1 %v7374_v29  ;;  %v7385_v29 = vld [vmem:[#allocation75_spill] sm:$0xff] }
 0x2be   : > { %3761 = vmatpush1.bf16.msra.mxu0 %v7375_v62  ;;  %3379 = vmatprep.subr.bf16.mxu1 %v7376_v9  ;;  %v7386_v62 = vld [vmem:[#allocation77_spill] sm:$0xff]  ;;  %v7387_v9 = vld [vmem:[#allocation80_spill] sm:$0xff] }
 0x2bf   : > { %3763 = vmatprep.subr.bf16.mxu0 %v7377_v56  ;;  %v7388_v56 = vld [vmem:[#allocation83_spill] sm:$0xff] }
 0x2c1   : > { %3381 = vmatpush1.bf16.msra.mxu1 %v7378_v55  ;;  %v7389_v55 = vld [vmem:[#allocation87_spill] sm:$0xff] }
 0x2c2   : > { %3765 = vmatpush1.bf16.msra.mxu0 %v7379_v47  ;;  %3383 = vmatprep.subr.bf16.mxu1 %v7380_v2  ;;  %v7390_v47 = vld [vmem:[#allocation89_spill] sm:$0xff]  ;;  %v7391_v2 = vld [vmem:[#allocation92_spill] sm:$0xff] }
 0x2c3   : > { %3767 = vmatprep.subr.bf16.mxu0 %v7381_v44  ;;  %v7392_v44 = vld [vmem:[#allocation95_spill] sm:$0xff] }
 0x2c5   : > { %3385 = vmatpush1.bf16.msra.mxu1 %v7382_v25  ;;  %v7393_v25 = vld [vmem:[#allocation99_spill] sm:$0xff] }
 0x2c6   : > { %3769 = vmatpush1.bf16.msra.mxu0 %v7383_v33  ;;  %3387 = vmatprep.subr.bf16.mxu1 %v7384_v16  ;;  %v7394_v33 = vld [vmem:[#allocation101_spill] sm:$0xff]  ;;  %v7395_v16 = vld [vmem:[#allocation104_spill] sm:$0xff] }
 0x2c7   : > { %3771 = vmatprep.subr.bf16.mxu0 %v7385_v29  ;;  %v7396_v29 = vld [vmem:[#allocation107_spill] sm:$0xff] }
 0x2c9   : > { %3389 = vmatpush1.bf16.msra.mxu1 %v7386_v62  ;;  %v7397_v62 = vld [vmem:[#allocation111_spill] sm:$0xff] }
 0x2ca   : > { %3773 = vmatpush1.bf16.msra.mxu0 %v7387_v9  ;;  %3391 = vmatprep.subr.bf16.mxu1 %v7388_v56  ;;  %v7398_v9 = vld [vmem:[#allocation113_spill] sm:$0xff]  ;;  %v7399_v56 = vld [vmem:[#allocation116_spill] sm:$0xff] }
 0x2cb   : > { %3775 = vmatprep.subr.bf16.mxu0 %v7389_v55  ;;  %v7400_v55 = vld [vmem:[#allocation119_spill] sm:$0xff] }
 0x2cd   : > { %3393 = vmatpush1.bf16.msra.mxu1 %v7390_v47  ;;  %v7401_v47 = vld [vmem:[#allocation120_spill] sm:$0xff] }
 0x2ce   : > { %3777 = vmatpush1.bf16.msra.mxu0 %v7391_v2  ;;  %3395 = vmatprep.subr.bf16.mxu1 %v7392_v44  ;;  %v7402_v2 = vld [vmem:[#allocation121_spill] sm:$0xff]  ;;  %v7403_v44 = vld [vmem:[#allocation122_spill] sm:$0xff] }
 0x2cf   : > { %3779 = vmatprep.subr.bf16.mxu0 %v7393_v25  ;;  %v7404_v25 = vld [vmem:[#allocation124_spill] sm:$0xff] }
 0x2d1   : > { %3397 = vmatpush1.bf16.msra.mxu1 %v7394_v33  ;;  %v7405_v33 = vld [vmem:[#allocation125_spill] sm:$0xff] }
 0x2d2   : > { %3781 = vmatpush1.bf16.msra.mxu0 %v7395_v16  ;;  %3399 = vmatprep.subr.bf16.mxu1 %v7396_v29  ;;  %v7406_v16 = vld [vmem:[#allocation126_spill] sm:$0xff]  ;;  %v7407_v29 = vld [vmem:[#allocation127_spill] sm:$0xff] }
 0x2d3   : > { %3783 = vmatprep.subr.bf16.mxu0 %v7397_v62  ;;  %v7408_v62 = vld [vmem:[#allocation129_spill] sm:$0xff] }
 0x2d5   : > { %3401 = vmatpush1.bf16.msra.mxu1 %v7398_v9  ;;  %v7409_v9 = vld [vmem:[#allocation130_spill] sm:$0xff] }
 0x2d6   : > { %3785 = vmatpush1.bf16.msra.mxu0 %v7399_v56  ;;  %3403 = vmatprep.subr.bf16.mxu1 %v7400_v55  ;;  %v7410_v56 = vld [vmem:[#allocation131_spill] sm:$0xff]  ;;  %v7411_v55 = vld [vmem:[#allocation150_spill] sm:$0xff] }
 0x2d7   : > { %3787 = vmatprep.subr.bf16.mxu0 %v7401_v47  ;;  %v7412_v47 = vld [vmem:[#allocation153_spill] sm:$0xff] }
 0x2d9   : > { %3405 = vmatpush1.bf16.msra.mxu1 %v7402_v2  ;;  %v7413_v2 = vld [vmem:[#allocation156_spill] sm:$0xff] }
 0x2da   : > { %3789 = vmatpush1.bf16.msra.mxu0 %v7403_v44  ;;  %3407 = vmatprep.subr.bf16.mxu1 %v7404_v25  ;;  %v7414_v44 = vld [vmem:[#allocation159_spill] sm:$0xff] }
 0x2db   : > { %3791 = vmatprep.subr.bf16.mxu0 %v7405_v33  ;;  %v7415_v25 = vld [vmem:[#allocation163_spill] sm:$0xff]  ;;  %v7416_v33 = vld [vmem:[#allocation165_spill] sm:$0xff] }
 0x2dd   : > { %3409 = vmatpush1.bf16.msra.mxu1 %v7406_v16  ;;  %v7417_v16 = vld [vmem:[#allocation168_spill] sm:$0xff] }
 0x2de   : > { %3793 = vmatpush1.bf16.msra.mxu0 %v7407_v29  ;;  %3411 = vmatprep.subr.bf16.mxu1 %v7408_v62  ;;  %v7418_v29 = vld [vmem:[#allocation171_spill] sm:$0xff]  ;;  %v7419_v62 = vld [vmem:[#allocation174_spill] sm:$0xff] }
 0x2df   : > { %3795 = vmatprep.subr.bf16.mxu0 %v7409_v9  ;;  %v7420_v9 = vld [vmem:[#allocation178_spill] sm:$0xff] }
 0x2e1   : > { %3413 = vmatpush1.bf16.msra.mxu1 %v7410_v56  ;;  %v7421_v56 = vld [vmem:[#allocation180_spill] sm:$0xff] }
 0x2e2   : > { %3797 = vmatpush1.bf16.msra.mxu0 %v7411_v55  ;;  %3415 = vmatprep.subr.bf16.mxu1 %v7412_v47  ;;  %v7422_v55 = vld [vmem:[#allocation184_spill] sm:$0xff]  ;;  %v7423_v47 = vld [vmem:[#allocation187_spill] sm:$0xff] }
 0x2e3   : > { %3799 = vmatprep.subr.bf16.mxu0 %v7413_v2  ;;  %v7424_v2 = vld [vmem:[#allocation189_spill] sm:$0xff] }
 0x2e5   : > { %3417 = vmatpush1.bf16.msra.mxu1 %v7414_v44 }
 0x2e6   : > { %3801 = vmatpush1.bf16.msra.mxu0 %v7415_v25  ;;  %3419 = vmatprep.subr.bf16.mxu1 %v7416_v33  ;;  %v7425_v25 = vand.u32 4294901760, %v7236_v7  ;;  %v7426_v33 = vand.u32 4294901760, %v7237_v48  ;;  %v7434_v7 = vand.u32 4294901760, %v7243_v28  ;;  %v7442_v28 = vld [vmem:[#allocation29_spill] sm:$0xff] }
 0x2e7   : > { %3803 = vmatprep.subr.bf16.mxu0 %v7417_v16  ;;  %v7427_v16 = vld [vmem:[#allocation192_spill] sm:$0xff] }
 0x2e8   : > { %v3430_v44 = vpack.c.bf16 %v7426_v33, %v7425_v25  ;;  %v7435_v33 = vand.u32 4294901760, %v7244_v27  ;;  %v7443_v27 = vand.u32 4294901760, %v7442_v28 }
 0x2e9   : > { %3421 = vmatpush1.bf16.msra.mxu1 %v7418_v29  ;;  %v7428_v29 = vand.u32 4294901760, %v7238_v50  ;;  %v7436_v50 = vand.u32 4294901760, %v7245_v38 }
 0x2ea   : > { %3805 = vmatpush1.bf16.msra.mxu0 %v7419_v62  ;;  %3423 = vmatprep.subr.bf16.mxu1 %v7420_v9  ;;  %v7429_v62 = vand.u32 4294901760, %v7239_v10  ;;  %v3816_v48 = vpack.c.bf16 %v7435_v33, %v7434_v7  ;;  %v7437_v10 = vand.u32 4294901760, %v7246_v23  ;;  %v7447_v23 = vld [vmem:[#allocation32_spill] sm:$0xff]  ;;  %v7449_v7 = vld [vmem:[#allocation34_spill] sm:$0xff] }
 0x2eb   : > { %3807 = vmatprep.subr.bf16.mxu0 %v7421_v56  ;;  %v7450_v33 = vand.u32 4294901760, %v7449_v7  ;;  %v7464_v7 = vld [vmem:[#allocation45_spill] sm:$0xff] }
 0x2ec   : > { %v3814_v9 = vpack.c.bf16 %v7429_v62, %v7428_v29  ;;  %v3434_v25 = vpack.c.bf16 %v7437_v10, %v7436_v50  ;;  %v7438_v29 = vand.u32 4294901760, %v7362_v58  ;;  %v7444_v62 = vld [vmem:[#allocation31_spill] sm:$0xff]  ;;  %v7448_v58 = vand.u32 4294901760, %v7447_v23  ;;  %v7451_v50 = vld [vmem:[#allocation36_spill] sm:$0xff]  ;;  %v7453_v10 = vld [vmem:[#allocation37_spill] sm:$0xff] }
 0x2ed   : > { %3425 = vmatpush1.bf16.msra.mxu1 %v7422_v55  ;;  %v7431_v55 = vand.u32 4294901760, %v7241_v36  ;;  %v7439_v36 = vand.u32 4294901760, %v7247_v19 }
 0x2ee   : > { %3809 = vmatpush1.bf16.msra.mxu0 %v7423_v47  ;;  %3427 = vmatprep.subr.bf16.mxu1 %v7424_v2  ;;  %v7432_v47 = vand.u32 4294901760, %v7242_v21  ;;  %v7433_v2 = vld [vmem:[#allocation198_spill] sm:$0xff]  ;;  %v7440_v21 = vand.u32 4294901760, %v7248_v32  ;;  %v3820_v19 = vpack.c.bf16 %v7450_v33, %v7448_v58  ;;  %v7452_v32 = vand.u32 4294901760, %v7451_v50 }
 0x2ef   : > { %3811 = vmatprep.subr.bf16.mxu0 %v7427_v16  ;;  %v7465_v33 = vand.u32 4294901760, %v7464_v7  ;;  %v7466_v50 = vld [vmem:[#allocation46_spill] sm:$0xff]  ;;  %v7480_v7 = vld [vmem:[#allocation57_spill] sm:$0xff] }
 0x2f0   : > { %v3432_v56 = vpack.c.bf16 %v7432_v47, %v7431_v55  ;;  %v3818_v47 = vpack.c.bf16 %v7440_v21, %v7439_v36  ;;  %v7446_v55 = vld [vmem:[#allocation239_spill] sm:$0xff]  ;;  %v7455_v36 = vld [vmem:[#allocation240_spill] sm:$0xff] }
 0x2f1   : > { %3429 = vmatpush1.bf16.msra.mxu1 %v7430_v41 }
 0x2f2   : > { %3813 = vmatpush1.bf16.msra.mxu0 %v7433_v2  ;;  %3431 = vmatprep.subr.bf16.mxu1 %v3430_v44  ;;  %v7441_v44 = vand.u32 4294901760, %v7363_v20 }
 0x2f3   : > { %3815 = vmatprep.subr.bf16.mxu0 %v3814_v9  ;;  %v7445_v9 = vand.u32 4294901760, %v7444_v62 }
 0x2f4   : > { %1339 = vmatmul.mubr.f32.vlgmr.msra.gmra.mrb[0].mxu1 %v7438_v29  ;;  %v7454_v29 = vand.u32 4294901760, %v7453_v10 }
 0x2f5   : > { %2623 = vmatmul.mubr.f32.vlgmr.msra.gmra.mrb[0].mxu0 %v7441_v44  ;;  %3433 = vmatpush1.bf16.msra.mxu1 %v3432_v56  ;;  %v3436_v38 = vpack.c.bf16 %v7445_v9, %v7443_v27  ;;  %v7456_v56 = vld [vmem:[#allocation39_spill] sm:$0xff]  ;;  %v7458_v44 = vld [vmem:[#allocation40_spill] sm:$0xff] }
 0x2f6   : > { %1602 = vmatprep.mubr.f32.mxu1 %v7446_v55  ;;  %3817 = vmatpush1.bf16.msra.mxu0 %v3816_v48  ;;  %v3438_v20 = vpack.c.bf16 %v7454_v29, %v7452_v32  ;;  %v7457_v21 = vand.u32 4294901760, %v7456_v56  ;;  %v7459_v28 = vand.u32 4294901760, %v7458_v44  ;;  %v7460_v48 = vld [vmem:[#allocation42_spill] sm:$0xff]  ;;  %v7462_v9 = vld [vmem:[#allocation43_spill] sm:$0xff]  ;;  %v7467_v32 = vand.u32 4294901760, %v7466_v50  ;;  %v7470_v56 = vld [vmem:[#allocation49_spill] sm:$0xff] }
 0x2f7   : > { %2886 = vmatprep.mubr.f32.mxu0 %v7455_v36  ;;  %3435 = vmatprep.subr.bf16.mxu1 %v3434_v25  ;;  %v7461_v62 = vand.u32 4294901760, %v7460_v48  ;;  %v7463_v23 = vand.u32 4294901760, %v7462_v9  ;;  %v7468_v25 = vld [vmem:[#allocation48_spill] sm:$0xff]  ;;  %v7471_v2 = vand.u32 4294901760, %v7470_v56  ;;  %v7482_v50 = vld [vmem:[#allocation58_spill] sm:$0xff] }
 0x2f8   : > { %v3822_v27 = vpack.c.bf16 %v7459_v28, %v7457_v21  ;;  %3819 = vmatprep.subr.bf16.mxu0 %v3818_v47  ;;  %v3824_v10 = vpack.c.bf16 %v7467_v32, %v7465_v33  ;;  %v7469_v29 = vand.u32 4294901760, %v7468_v25  ;;  %v7472_v47 = vld [vmem:[#allocation51_spill] sm:$0xff]  ;;  %v7474_v21 = vld [vmem:[#allocation52_spill] sm:$0xff]  ;;  %v7481_v33 = vand.u32 4294901760, %v7480_v7  ;;  %v7496_v7 = vld [vmem:[#allocation69_spill] sm:$0xff] }
 0x2f9   : > { %3437 = vmatpush1.bf16.msra.mxu1 %v3436_v38  ;;  %v3440_v58 = vpack.c.bf16 %v7463_v23, %v7461_v62  ;;  %v7473_v38 = vand.u32 4294901760, %v7472_v47  ;;  %v7475_v28 = vand.u32 4294901760, %v7474_v21  ;;  %v7476_v62 = vld [vmem:[#allocation53_spill] sm:$0xff]  ;;  %v7483_v32 = vand.u32 4294901760, %v7482_v50  ;;  %v7490_v21 = vld [vmem:[#allocation64_spill] sm:$0xff]  ;;  %v7498_v50 = vld [vmem:[#allocation70_spill] sm:$0xff] }
 0x2fa   : > { %3821 = vmatpush1.bf16.msra.mxu0 %v3820_v19  ;;  %3439 = vmatprep.subr.bf16.mxu1 %v3438_v20  ;;  %v3442_v44 = vpack.c.bf16 %v7471_v2, %v7469_v29  ;;  %v7477_v19 = vand.u32 4294901760, %v7476_v62  ;;  %v7478_v20 = vld [vmem:[#allocation55_spill] sm:$0xff]  ;;  %v7484_v2 = vld [vmem:[#allocation60_spill] sm:$0xff]  ;;  %v7486_v29 = vld [vmem:[#allocation61_spill] sm:$0xff] }
 0x2fb   : > { %3823 = vmatprep.subr.bf16.mxu0 %v3822_v27  ;;  %v3826_v48 = vpack.c.bf16 %v7475_v28, %v7473_v38  ;;  %v7479_v9 = vand.u32 4294901760, %v7478_v20  ;;  %v3828_v25 = vpack.c.bf16 %v7483_v32, %v7481_v33  ;;  %v7485_v27 = vand.u32 4294901760, %v7484_v2  ;;  %v7488_v38 = vld [vmem:[#allocation62_spill] sm:$0xff] }
 0x2fc   : > { %v7487_v56 = vand.u32 4294901760, %v7486_v29  ;;  %v7491_v28 = vand.u32 4294901760, %v7490_v21  ;;  %v7497_v33 = vand.u32 4294901760, %v7496_v7  ;;  %v7499_v32 = vand.u32 4294901760, %v7498_v50  ;;  %v7502_v29 = vld [vmem:[#allocation73_spill] sm:$0xff]  ;;  %v7506_v21 = vld [vmem:[#allocation76_spill] sm:$0xff] }
 0x2fd   : > { %3441 = vmatpush1.bf16.msra.mxu1 %v3440_v58  ;;  %v3444_v23 = vpack.c.bf16 %v7479_v9, %v7477_v19  ;;  %v7489_v58 = vand.u32 4294901760, %v7488_v38  ;;  %v7492_v19 = vld [vmem:[#allocation66_spill] sm:$0xff]  ;;  %v7512_v7 = vld [vmem:[#allocation81_spill] sm:$0xff] }
 0x2fe   : > { %3825 = vmatpush1.bf16.msra.mxu0 %v3824_v10  ;;  %3443 = vmatprep.subr.bf16.mxu1 %v3442_v44  ;;  %v3446_v47 = vpack.c.bf16 %v7487_v56, %v7485_v27  ;;  %v7493_v10 = vand.u32 4294901760, %v7492_v19  ;;  %v7494_v44 = vld [vmem:[#allocation67_spill] sm:$0xff]  ;;  %v3832_v2 = vpack.c.bf16 %v7499_v32, %v7497_v33  ;;  %v7500_v27 = vld [vmem:[#allocation72_spill] sm:$0xff]  ;;  %v7503_v56 = vand.u32 4294901760, %v7502_v29  ;;  %v7514_v50 = vld [vmem:[#allocation82_spill] sm:$0xff] }
 0x2ff   : > { %3827 = vmatprep.subr.bf16.mxu0 %v3826_v48  ;;  %v3830_v62 = vpack.c.bf16 %v7491_v28, %v7489_v58  ;;  %v7495_v20 = vand.u32 4294901760, %v7494_v44  ;;  %v7501_v48 = vand.u32 4294901760, %v7500_v27  ;;  %v7504_v58 = vld [vmem:[#allocation74_spill] sm:$0xff]  ;;  %v7507_v28 = vand.u32 4294901760, %v7506_v21  ;;  %v7518_v29 = vld [vmem:[#allocation85_spill] sm:$0xff]  ;;  %v7522_v21 = vld [vmem:[#allocation88_spill] sm:$0xff] }
 0x300   : > { %v7513_v33 = vand.u32 4294901760, %v7512_v7  ;;  %v7515_v32 = vand.u32 4294901760, %v7514_v50  ;;  %v7528_v7 = vld [vmem:[#allocation93_spill] sm:$0xff]  ;;  %v7530_v50 = vld [vmem:[#allocation94_spill] sm:$0xff] }
 0x301   : > { %3445 = vmatpush1.bf16.msra.mxu1 %v3444_v23  ;;  %v3448_v9 = vpack.c.bf16 %v7495_v20, %v7493_v10  ;;  %v3450_v38 = vpack.c.bf16 %v7503_v56, %v7501_v48  ;;  %v7505_v23 = vand.u32 4294901760, %v7504_v58  ;;  %v7508_v10 = vld [vmem:[#allocation78_spill] sm:$0xff]  ;;  %v7516_v48 = vld [vmem:[#allocation84_spill] sm:$0xff]  ;;  %v7519_v56 = vand.u32 4294901760, %v7518_v29 }
 0x302   : > { %3829 = vmatpush1.bf16.msra.mxu0 %v3828_v25  ;;  %3447 = vmatprep.subr.bf16.mxu1 %v3446_v47  ;;  %v7509_v25 = vand.u32 4294901760, %v7508_v10  ;;  %v7510_v47 = vld [vmem:[#allocation79_spill] sm:$0xff]  ;;  %v3836_v27 = vpack.c.bf16 %v7515_v32, %v7513_v33  ;;  %v7529_v33 = vand.u32 4294901760, %v7528_v7  ;;  %v7531_v32 = vand.u32 4294901760, %v7530_v50 }
 0x303   : > { %3831 = vmatprep.subr.bf16.mxu0 %v3830_v62  ;;  %v3834_v19 = vpack.c.bf16 %v7507_v28, %v7505_v23  ;;  %v7511_v44 = vand.u32 4294901760, %v7510_v47  ;;  %v7517_v62 = vand.u32 4294901760, %v7516_v48  ;;  %v7520_v23 = vld [vmem:[#allocation86_spill] sm:$0xff]  ;;  %v7523_v28 = vand.u32 4294901760, %v7522_v21 }
 0x304   : > { %v3840_v48 = vpack.c.bf16 %v7531_v32, %v7529_v33  ;;  %v7554_v50 = vand.u32 4294901760, %v7195_v61  ;;  %v7557_v32 = vand.u32 4294901760, %v7200_v24  ;;  %v7561_v61 = vand.u32 4294901760, %v7211_v40 }
 0x305   : > { %3449 = vmatpush1.bf16.msra.mxu1 %v3448_v9  ;;  %v3452_v20 = vpack.c.bf16 %v7511_v44, %v7509_v25  ;;  %v3454_v58 = vpack.c.bf16 %v7519_v56, %v7517_v62  ;;  %v7521_v9 = vand.u32 4294901760, %v7520_v23  ;;  %v7524_v25 = vld [vmem:[#allocation90_spill] sm:$0xff]  ;;  %v7533_v62 = vld [vmem:[#allocation97_spill] sm:$0xff]  ;;  %v7536_v23 = vand.u32 4294901760, %v7300_v49 }
 0x306   : > { %3833 = vmatpush1.bf16.msra.mxu0 %v3832_v2  ;;  %3451 = vmatprep.subr.bf16.mxu1 %v3450_v38  ;;  %v7525_v2 = vand.u32 4294901760, %v7524_v25  ;;  %v7526_v38 = vld [vmem:[#allocation91_spill] sm:$0xff]  ;;  %v7534_v29 = vand.u32 4294901760, %v7533_v62  ;;  %v7543_v49 = vand.u32 4294901760, %v7307_v6  ;;  %v7550_v6 = vand.u32 4294901760, %v7158_v0 }
 0x307   : > { %3835 = vmatprep.subr.bf16.mxu0 %v3834_v19  ;;  %v3838_v10 = vpack.c.bf16 %v7523_v28, %v7521_v9  ;;  %v7527_v47 = vand.u32 4294901760, %v7526_v38  ;;  %v7532_v19 = vand.u32 4294901760, %v7297_v63  ;;  %v7539_v28 = vand.u32 4294901760, %v7303_v12 }
 0x308   : > { %v7540_v63 = vand.u32 4294901760, %v7304_v8  ;;  %v7547_v8 = vand.u32 4294901760, %v7153_v31  ;;  %v7562_v62 = vand.u32 4294901760, %v7212_v18  ;;  %v7564_v24 = vand.u32 4294901760, %v4752_v17  ;;  %v7571_v18 = vld [vmem:[#allocation148_spill] sm:$0xff]  ;;  %v7575_v17 = vld [vmem:[#allocation151_spill] sm:$0xff] }
 0x309   : > { %3453 = vmatpush1.bf16.msra.mxu1 %v3452_v20  ;;  %v3456_v44 = vpack.c.bf16 %v7527_v47, %v7525_v2  ;;  %v3458_v56 = vpack.c.bf16 %v7534_v29, %v7532_v19  ;;  %v7535_v20 = vand.u32 4294901760, %v7299_v15  ;;  %v7542_v15 = vand.u32 4294901760, %v7306_v35 }
 0x30a   : > { %3837 = vmatpush1.bf16.msra.mxu0 %v3836_v27  ;;  %3455 = vmatprep.subr.bf16.mxu1 %v3454_v58  ;;  %v7537_v27 = vand.u32 4294901760, %v7301_v45  ;;  %v7538_v58 = vand.u32 4294901760, %v7302_v54  ;;  %v3844_v25 = vpack.c.bf16 %v7540_v63, %v7539_v28  ;;  %v7544_v45 = vand.u32 4294901760, %v7308_v34 }
 0x30b   : > { %3839 = vmatprep.subr.bf16.mxu0 %v3838_v10  ;;  %v3842_v9 = vpack.c.bf16 %v7536_v23, %v7535_v20  ;;  %v7541_v10 = vand.u32 4294901760, %v7305_v4  ;;  %v7545_v54 = vand.u32 4294901760, %v7151_v39  ;;  %v7546_v47 = vand.u32 4294901760, %v7152_v37  ;;  %v7569_v23 = vld [vmem:[#allocation147_spill] sm:$0xff] }
 0x30c   : > { %v3460_v21 = vpack.c.bf16 %v7538_v58, %v7537_v27  ;;  %v3846_v38 = vpack.c.bf16 %v7544_v45, %v7543_v49  ;;  %v7548_v4 = vand.u32 4294901760, %v7154_v30  ;;  %v7551_v34 = vand.u32 4294901760, %v7163_v43  ;;  %v7573_v58 = vld [vmem:[#allocation149_spill] sm:$0xff] }
 0x30d   : > { %3457 = vmatpush1.bf16.msra.mxu1 %v3456_v44  ;;  %v3462_v2 = vpack.c.bf16 %v7542_v15, %v7541_v10  ;;  %v3464_v12 = vpack.c.bf16 %v7546_v47, %v7545_v54  ;;  %v7549_v44 = vand.u32 4294901760, %v7157_v52  ;;  %v7552_v39 = vand.u32 4294901760, %v7174_v13  ;;  %v7581_v15 = vld [vmem:[#allocation155_spill] sm:$0xff]  ;;  %v7583_v45 = vld [vmem:[#allocation157_spill] sm:$0xff]  ;;  %v7585_v54 = vld [vmem:[#allocation158_spill] sm:$0xff] }
 0x30e   : > { %3841 = vmatpush1.bf16.msra.mxu0 %v3840_v48  ;;  %3459 = vmatprep.subr.bf16.mxu1 %v3458_v56  ;;  %v3848_v35 = vpack.c.bf16 %v7548_v4, %v7547_v8  ;;  %v7553_v37 = vand.u32 4294901760, %v7182_v53  ;;  %v7555_v30 = vand.u32 4294901760, %v7196_v1  ;;  %v7556_v52 = vand.u32 4294901760, %v7199_v59  ;;  %v7587_v8 = vld [vmem:[#allocation160_spill] sm:$0xff] }
 0x30f   : > { %3843 = vmatprep.subr.bf16.mxu0 %v3842_v9  ;;  %v3466_v7 = vpack.c.bf16 %v7550_v6, %v7549_v44  ;;  %v3850_v33 = vpack.c.bf16 %v7552_v39, %v7551_v34  ;;  %v7558_v43 = vand.u32 4294901760, %v7203_v60  ;;  %v7559_v13 = vand.u32 4294901760, %v7204_v42  ;;  %v7593_v39 = vld [vmem:[#allocation164_spill] sm:$0xff] }
 0x310   : > { %v3468_v31 = vpack.c.bf16 %v7554_v50, %v7553_v37  ;;  %v3852_v0 = vpack.c.bf16 %v7556_v52, %v7555_v30  ;;  %v7560_v53 = vand.u32 4294901760, %v7205_v22  ;;  %v3472_v1 = vpack.c.bf16 %v7562_v62, %v7561_v61  ;;  %v7567_v22 = vld [vmem:[#allocation146_spill] sm:$0xff]  ;;  %v7597_v30 = vld [vmem:[#allocation167_spill] sm:$0xff]  ;;  %v7605_v62 = vld [vmem:[#allocation173_spill] sm:$0xff] }
 0x311   : > { %3461 = vmatpush1.bf16.msra.mxu1 %v3460_v21  ;;  %v3470_v48 = vpack.c.bf16 %v7558_v43, %v7557_v32  ;;  %v7563_v59 = vand.u32 4294901760, %v4750_v46  ;;  %v7565_v29 = vand.u32 4294901760, %v4754_v3  ;;  %v7566_v42 = vand.u32 4294901760, %v4756_v14  ;;  %v7577_v3 = vld [vmem:[#allocation152_spill] sm:$0xff]  ;;  %v7595_v50 = vld [vmem:[#allocation166_spill] sm:$0xff]  ;;  %v7599_v32 = vld [vmem:[#allocation169_spill] sm:$0xff] }
 0x312   : > { %3845 = vmatpush1.bf16.msra.mxu0 %v3844_v25  ;;  %3463 = vmatprep.subr.bf16.mxu1 %v3462_v2  ;;  %v3854_v19 = vpack.c.bf16 %v7560_v53, %v7559_v13  ;;  %v7568_v20 = vand.u32 4294901760, %v7567_v22  ;;  %v7570_v40 = vand.u32 4294901760, %v7569_v23  ;;  %v7572_v27 = vand.u32 4294901760, %v7571_v18  ;;  %v7579_v25 = vld [vmem:[#allocation154_spill] sm:$0xff]  ;;  %v7611_v22 = vld [vmem:[#allocation177_spill] sm:$0xff]  ;;  %v7613_v23 = vld [vmem:[#allocation179_spill] sm:$0xff] }
 0x313   : > { %3847 = vmatprep.subr.bf16.mxu0 %v3846_v38  ;;  %v3856_v60 = vpack.c.bf16 %v7564_v24, %v7563_v59  ;;  %v3474_v56 = vpack.c.bf16 %v7566_v42, %v7565_v29  ;;  %v7574_v21 = vand.u32 4294901760, %v7573_v58  ;;  %v7576_v28 = vand.u32 4294901760, %v7575_v17  ;;  %v7607_v24 = vld [vmem:[#allocation175_spill] sm:$0xff]  ;;  %v7609_v29 = vld [vmem:[#allocation176_spill] sm:$0xff]  ;;  %v7615_v18 = vld [vmem:[#allocation181_spill] sm:$0xff] }
 0x314   : > { %v3858_v9 = vpack.c.bf16 %v7570_v40, %v7568_v20  ;;  %v7578_v63 = vand.u32 4294901760, %v7577_v3  ;;  %v7580_v10 = vand.u32 4294901760, %v7579_v25  ;;  %v7582_v2 = vand.u32 4294901760, %v7581_v15  ;;  %v7617_v58 = vld [vmem:[#allocation182_spill] sm:$0xff]  ;;  %v7623_v25 = vld [vmem:[#allocation188_spill] sm:$0xff] }
 0x315   : > { %3465 = vmatpush1.bf16.msra.mxu1 %v3464_v12  ;;  %v3476_v46 = vpack.c.bf16 %v7574_v21, %v7572_v27  ;;  %v7584_v38 = vand.u32 4294901760, %v7583_v45  ;;  %v7586_v47 = vand.u32 4294901760, %v7585_v54  ;;  %v7588_v4 = vand.u32 4294901760, %v7587_v8 }
 0x316   : > { %3849 = vmatpush1.bf16.msra.mxu0 %v3848_v35  ;;  %3467 = vmatprep.subr.bf16.mxu1 %v3466_v7  ;;  %v3860_v14 = vpack.c.bf16 %v7578_v63, %v7576_v28  ;;  %v3478_v49 = vpack.c.bf16 %v7582_v2, %v7580_v10  ;;  %v7589_v35 = vld [vmem:[#allocation161_spill] sm:$0xff]  ;;  %v7591_v7 = vld [vmem:[#allocation162_spill] sm:$0xff]  ;;  %v7598_v52 = vand.u32 4294901760, %v7597_v30  ;;  %v7600_v43 = vand.u32 4294901760, %v7599_v32  ;;  %v7648_v32 = vld [vmem:[#allocation35_spill] sm:$0xff] }
 0x317   : > { %3851 = vmatprep.subr.bf16.mxu0 %v3850_v33  ;;  %v3862_v12 = vpack.c.bf16 %v7586_v47, %v7584_v38  ;;  %v7590_v44 = vand.u32 4294901760, %v7589_v35  ;;  %v7592_v34 = vand.u32 4294901760, %v7591_v7  ;;  %v7594_v33 = vand.u32 4294901760, %v7593_v39  ;;  %v7620_v28 = vld [vmem:[#allocation185_spill] sm:$0xff]  ;;  %v7629_v47 = vld [vmem:[#allocation194_spill] sm:$0xff]  ;;  %v7639_v39 = vld [vmem:[#allocation15_spill] sm:$0xff] }
 0x318   : > { %v7610_v42 = vand.u32 4294901760, %v7609_v29  ;;  %v7612_v20 = vand.u32 4294901760, %v7611_v22  ;;  %v7614_v40 = vand.u32 4294901760, %v7613_v23  ;;  %v7616_v27 = vand.u32 4294901760, %v7615_v18  ;;  %v7645_v30 = vld [vmem:[#allocation26_spill] sm:$0xff]  ;;  %v7662_v29 = vld [vmem:[#allocation77_spill] sm:$0xff] }
 0x319   : > { %3469 = vmatpush1.bf16.msra.mxu1 %v3468_v31  ;;  %v3480_v6 = vpack.c.bf16 %v7590_v44, %v7588_v4  ;;  %v3864_v37 = vpack.c.bf16 %v7594_v33, %v7592_v34  ;;  %v7596_v31 = vand.u32 4294901760, %v7595_v50  ;;  %v7618_v21 = vand.u32 4294901760, %v7617_v58  ;;  %v7632_v4 = vld [vmem:[#allocation197_spill] sm:$0xff]  ;;  %v7634_v44 = vld [vmem:[#allocation199_spill] sm:$0xff]  ;;  %v7640_v33 = vld [vmem:[#allocation236_spill] sm:$0xff] }
 0x31a   : > { %3853 = vmatpush1.bf16.msra.mxu0 %v3852_v0  ;;  %3471 = vmatprep.subr.bf16.mxu1 %v3470_v48  ;;  %v7601_v48 = vld [vmem:[#allocation170_spill] sm:$0xff]  ;;  %v7619_v17 = vand.u32 4294901760, %v7343_v5  ;;  %v7621_v3 = vand.u32 4294901760, %v7620_v28  ;;  %v7624_v10 = vand.u32 4294901760, %v7623_v25  ;;  %v7625_v2 = vand.u32 4294901760, %v7349_v11  ;;  %v7636_v11 = vld [vmem:[#allocation200_spill] sm:$0xff] }
 0x31b   : > { %3855 = vmatprep.subr.bf16.mxu0 %v3854_v19  ;;  %v3482_v0 = vpack.c.bf16 %v7598_v52, %v7596_v31  ;;  %v7602_v13 = vand.u32 4294901760, %v7601_v48  ;;  %v7603_v19 = vld [vmem:[#allocation172_spill] sm:$0xff]  ;;  %v7628_v54 = vand.u32 4294901760, %v7352_v51  ;;  %v7630_v5 = vand.u32 4294901760, %v7629_v47  ;;  %v7638_v51 = vld [vmem:[#allocation11_spill] sm:$0xff]  ;;  %v7646_v52 = vld [vmem:[#allocation30_spill] sm:$0xff] }
 0x31c   : > { %v7604_v61 = vand.u32 4294901760, %v7603_v19  ;;  %v3488_v63 = vpack.c.bf16 %v7621_v3, %v7619_v17  ;;  %v7631_v8 = vand.u32 4294901760, %v7355_v57  ;;  %v7633_v35 = vand.u32 4294901760, %v7632_v4  ;;  %v7641_v57 = vld [vmem:[#allocation237_spill] sm:$0xff]  ;;  %v7643_v50 = vld [vmem:[#allocation20_spill] sm:$0xff]  ;;  %v7665_v22 = vld [vmem:[#allocation87_spill] sm:$0xff] }
 0x31d   : > { %3473 = vmatpush1.bf16.msra.mxu1 %v3472_v1  ;;  %v3866_v53 = vpack.c.bf16 %v7602_v13, %v7600_v43  ;;  %v7606_v1 = vand.u32 4294901760, %v7605_v62  ;;  %v7637_v7 = vand.u32 4294901760, %v7636_v11  ;;  %v7644_v31 = vld [vmem:[#allocation24_spill] sm:$0xff]  ;;  %v7649_v43 = vld [vmem:[#allocation38_spill] sm:$0xff]  ;;  %v7650_v48 = vld [vmem:[#allocation41_spill] sm:$0xff] }
 0x31e   : > { %3857 = vmatpush1.bf16.msra.mxu0 %v3856_v60  ;;  %3475 = vmatprep.subr.bf16.mxu1 %v3474_v56  ;;  %v7608_v60 = vand.u32 4294901760, %v7607_v24  ;;  %v7651_v13 = vld [vmem:[#allocation44_spill] sm:$0xff]  ;;  %v7657_v62 = vld [vmem:[#allocation63_spill] sm:$0xff]  ;;  %v7670_v18 = vld [vmem:[#allocation101_spill] sm:$0xff] }
 0x31f   : > { %3859 = vmatprep.subr.bf16.mxu0 %v3858_v9  ;;  %v3484_v59 = vpack.c.bf16 %v7606_v1, %v7604_v61  ;;  %v3486_v9 = vpack.c.bf16 %v7614_v40, %v7612_v20  ;;  %v7655_v19 = vld [vmem:[#allocation56_spill] sm:$0xff]  ;;  %v7656_v61 = vld [vmem:[#allocation59_spill] sm:$0xff]  ;;  %v7658_v1 = vld [vmem:[#allocation65_spill] sm:$0xff] }
 0x320   : > { %v3868_v56 = vpack.c.bf16 %v7610_v42, %v7608_v60  ;;  %v7660_v24 = vld [vmem:[#allocation71_spill] sm:$0xff]  ;;  %v7663_v42 = vld [vmem:[#allocation80_spill] sm:$0xff]  ;;  %v7666_v20 = vld [vmem:[#allocation89_spill] sm:$0xff] }
 0x321   : > { %3477 = vmatpush1.bf16.msra.mxu1 %v3476_v46  ;;  %v3870_v46 = vpack.c.bf16 %v7618_v21, %v7616_v27  ;;  %v7661_v60 = vld [vmem:[#allocation75_spill] sm:$0xff]  ;;  %v7667_v23 = vld [vmem:[#allocation92_spill] sm:$0xff]  ;;  %v7688_v47 = vld [vmem:[#allocation153_spill] sm:$0xff] }
 0x322   : > { %3861 = vmatpush1.bf16.msra.mxu0 %v3860_v14  ;;  %3479 = vmatprep.subr.bf16.mxu1 %v3478_v49  ;;  %v7622_v14 = vand.u32 4294901760, %v7346_v26  ;;  %v7626_v49 = vld [vmem:[#allocation191_spill] sm:$0xff]  ;;  %v3492_v26 = vpack.c.bf16 %v7633_v35, %v7631_v8  ;;  %v7671_v27 = vld [vmem:[#allocation104_spill] sm:$0xff]  ;;  %v7692_v4 = vld [vmem:[#allocation165_spill] sm:$0xff] }
 0x323   : > { %3863 = vmatprep.subr.bf16.mxu0 %v3862_v12  ;;  %v7627_v45 = vand.u32 4294901760, %v7626_v49  ;;  %v3874_v12 = vpack.c.bf16 %v7630_v5, %v7628_v54  ;;  %v7668_v40 = vld [vmem:[#allocation95_spill] sm:$0xff]  ;;  %v7675_v17 = vld [vmem:[#allocation116_spill] sm:$0xff]  ;;  %v7684_v49 = vld [vmem:[#allocation129_spill] sm:$0xff] }
 0x324   : > { %v3872_v15 = vpack.c.bf16 %v7624_v10, %v7622_v14  ;;  %v7672_v58 = vld [vmem:[#allocation107_spill] sm:$0xff]  ;;  %v7677_v3 = vld [vmem:[#allocation120_spill] sm:$0xff]  ;;  %v7679_v14 = vld [vmem:[#allocation122_spill] sm:$0xff] }
 0x325   : > { %3481 = vmatpush1.bf16.msra.mxu1 %v3480_v6  ;;  %v3490_v38 = vpack.c.bf16 %v7627_v45, %v7625_v2  ;;  %v7635_v6 = vand.u32 4294901760, %v7634_v44  ;;  %v7673_v21 = vld [vmem:[#allocation111_spill] sm:$0xff]  ;;  %v7680_v25 = vld [vmem:[#allocation124_spill] sm:$0xff]  ;;  %v7681_v10 = vld [vmem:[#allocation125_spill] sm:$0xff] }
 0x326   : > { %3865 = vmatpush1.bf16.msra.mxu0 %v3864_v37  ;;  %3483 = vmatprep.subr.bf16.mxu1 %v3482_v0  ;;  %v7642_v37 = vld [vmem:[#allocation17_spill] sm:$0xff]  ;;  %v7676_v28 = vld [vmem:[#allocation119_spill] sm:$0xff]  ;;  %v7685_v45 = vld [vmem:[#allocation130_spill] sm:$0xff] }
 0x327   : > { %3867 = vmatprep.subr.bf16.mxu0 %v3866_v53  ;;  %v3876_v34 = vpack.c.bf16 %v7637_v7, %v7635_v6  ;;  %v7647_v0 = vld [vmem:[#allocation33_spill] sm:$0xff]  ;;  %v7653_v53 = vld [vmem:[#allocation50_spill] sm:$0xff]  ;;  %v7683_v2 = vld [vmem:[#allocation127_spill] sm:$0xff] }
 0x328   : > { %v7687_v54 = vld [vmem:[#allocation150_spill] sm:$0xff]  ;;  %v7689_v5 = vld [vmem:[#allocation156_spill] sm:$0xff]  ;;  %v7691_v8 = vld [vmem:[#allocation163_spill] sm:$0xff] }
 0x329   : > { %3485 = vmatpush1.bf16.msra.mxu1 %v3484_v59  ;;  %v7659_v59 = vld [vmem:[#allocation68_spill] sm:$0xff]  ;;  %v7695_v44 = vld [vmem:[#allocation174_spill] sm:$0xff] }
 0x32a   : > { %3869 = vmatpush1.bf16.msra.mxu0 %v3868_v56  ;;  %3487 = vmatprep.subr.bf16.mxu1 %v3486_v9  ;;  %v7664_v56 = vld [vmem:[#allocation83_spill] sm:$0xff]  ;;  %v7693_v35 = vld [vmem:[#allocation168_spill] sm:$0xff]  ;;  %v7696_v6 = vld [vmem:[#allocation178_spill] sm:$0xff] }
 0x32b   : > { %3871 = vmatprep.subr.bf16.mxu0 %v3870_v46  ;;  %v7669_v9 = vld [vmem:[#allocation99_spill] sm:$0xff]  ;;  %v7674_v46 = vld [vmem:[#allocation113_spill] sm:$0xff]  ;;  %v7697_v11 = vld [vmem:[#allocation180_spill] sm:$0xff] }
 0x32c   : > { %v7698_v7 = vld [vmem:[#allocation184_spill] sm:$0xff] }
 0x32d   : > { %3489 = vmatpush1.bf16.msra.mxu1 %v3488_v63  ;;  %v7678_v63 = vld [vmem:[#allocation121_spill] sm:$0xff] }
 0x32e   : > { %3873 = vmatpush1.bf16.msra.mxu0 %v3872_v15  ;;  %3491 = vmatprep.subr.bf16.mxu1 %v3490_v38  ;;  %v7682_v15 = vld [vmem:[#allocation126_spill] sm:$0xff]  ;;  %v7686_v38 = vld [vmem:[#allocation131_spill] sm:$0xff] }
 0x32f   : > { %3875 = vmatprep.subr.bf16.mxu0 %v3874_v12  ;;  %v7690_v12 = vld [vmem:[#allocation159_spill] sm:$0xff] }
 0x331   : > { %3493 = vmatpush1.bf16.msra.mxu1 %v3492_v26  ;;  %v7694_v26 = vld [vmem:[#allocation171_spill] sm:$0xff] }
 0x332   : > { %3877 = vmatpush1.bf16.msra.mxu0 %v3876_v34  ;;  %3495 = vmatprep.subr.bf16.mxu1 %v7638_v51  ;;  %v7699_v34 = vld [vmem:[#allocation187_spill] sm:$0xff]  ;;  %v7700_v51 = vld [vmem:[#allocation189_spill] sm:$0xff] }
 0x333   : > { %3879 = vmatprep.subr.bf16.mxu0 %v7639_v39  ;;  %v7701_v39 = vld [vmem:[#allocation198_spill] sm:$0xff] }
 0x334   : > { %1604 = vmatmul.mubr.f32.vlgmr.msra.gmra.mrb[0].mxu1 %v7640_v33 }
 0x335   : > { %2888 = vmatmul.mubr.f32.vlgmr.msra.gmra.mrb[0].mxu0 %v7641_v57  ;;  %3497 = vmatpush1.bf16.msra.mxu1 %v7642_v37 }
 0x336   : > { %1739 = vmatprep.mubr.f32.mxu1 %v7446_v55  ;;  %3881 = vmatpush1.bf16.msra.mxu0 %v7643_v50  ;;  %v7652_v55 = vld [vmem:[#allocation47_spill] sm:$0xff] }
 0x337   : > { %3023 = vmatprep.mubr.f32.mxu0 %v7455_v36  ;;  %3499 = vmatprep.subr.bf16.mxu1 %v7644_v31  ;;  %v7654_v36 = vld [vmem:[#allocation54_spill] sm:$0xff] }
 0x338   : > { %3883 = vmatprep.subr.bf16.mxu0 %v7645_v30 }
 0x339   : > { %3501 = vmatpush1.bf16.msra.mxu1 %v7646_v52 }
 0x33a   : > { %3885 = vmatpush1.bf16.msra.mxu0 %v7647_v0  ;;  %3503 = vmatprep.subr.bf16.mxu1 %v7648_v32 }
 0x33b   : > { %3887 = vmatprep.subr.bf16.mxu0 %v7649_v43 }
 0x33d   : > { %3505 = vmatpush1.bf16.msra.mxu1 %v7650_v48 }
 0x33e   : > { %3889 = vmatpush1.bf16.msra.mxu0 %v7651_v13  ;;  %3507 = vmatprep.subr.bf16.mxu1 %v7652_v55  ;;  %v7702_v55 = vld [vmem:[#allocation128_spill] sm:$0xff] }
 0x33f   : > { %3891 = vmatprep.subr.bf16.mxu0 %v7653_v53 }
 0x341   : > { %3509 = vmatpush1.bf16.msra.mxu1 %v7654_v36 }
 0x342   : > { %3893 = vmatpush1.bf16.msra.mxu0 %v7655_v19  ;;  %3511 = vmatprep.subr.bf16.mxu1 %v7656_v61  ;;  %v7703_v61 = vld [vmem:[#allocation230_spill] sm:$0xff] }
 0x343   : > { %3895 = vmatprep.subr.bf16.mxu0 %v7657_v62 }
 0x345   : > { %3513 = vmatpush1.bf16.msra.mxu1 %v7658_v1  ;;  %v4041_v1 = vld [vmem:[%s4346_s13] sm:$0xff] }
 0x346   : > { %3897 = vmatpush1.bf16.msra.mxu0 %v7659_v59  ;;  %3515 = vmatprep.subr.bf16.mxu1 %v7660_v24 }
 0x347   : > { %3899 = vmatprep.subr.bf16.mxu0 %v7661_v60 }
 0x349   : > { %3517 = vmatpush1.bf16.msra.mxu1 %v7662_v29 }
 0x34a   : > { %3901 = vmatpush1.bf16.msra.mxu0 %v7663_v42  ;;  %3519 = vmatprep.subr.bf16.mxu1 %v7664_v56 }
 0x34b   : > { %3903 = vmatprep.subr.bf16.mxu0 %v7665_v22 }
 0x34d   : > { %3521 = vmatpush1.bf16.msra.mxu1 %v7666_v20 }
 0x34e   : > { %3905 = vmatpush1.bf16.msra.mxu0 %v7667_v23  ;;  %3523 = vmatprep.subr.bf16.mxu1 %v7668_v40 }
 0x34f   : > { %3907 = vmatprep.subr.bf16.mxu0 %v7669_v9 }
 0x351   : > { %3525 = vmatpush1.bf16.msra.mxu1 %v7670_v18 }
 0x352   : > { %3909 = vmatpush1.bf16.msra.mxu0 %v7671_v27  ;;  %3527 = vmatprep.subr.bf16.mxu1 %v7672_v58 }
 0x353   : > { %3911 = vmatprep.subr.bf16.mxu0 %v7673_v21 }
 0x355   : > { %3529 = vmatpush1.bf16.msra.mxu1 %v7674_v46 }
 0x356   : > { %3913 = vmatpush1.bf16.msra.mxu0 %v7675_v17  ;;  %3531 = vmatprep.subr.bf16.mxu1 %v7676_v28 }
 0x357   : > { %3915 = vmatprep.subr.bf16.mxu0 %v7677_v3 }
 0x359   : > { %3533 = vmatpush1.bf16.msra.mxu1 %v7678_v63 }
 0x35a   : > { %3917 = vmatpush1.bf16.msra.mxu0 %v7679_v14  ;;  %3535 = vmatprep.subr.bf16.mxu1 %v7680_v25 }
 0x35b   : > { %3919 = vmatprep.subr.bf16.mxu0 %v7681_v10 }
 0x35d   : > { %3537 = vmatpush1.bf16.msra.mxu1 %v7682_v15 }
 0x35e   : > { %3921 = vmatpush1.bf16.msra.mxu0 %v7683_v2  ;;  %3539 = vmatprep.subr.bf16.mxu1 %v7684_v49 }
 0x35f   : > { %3923 = vmatprep.subr.bf16.mxu0 %v7685_v45 }
 0x361   : > { %3541 = vmatpush1.bf16.msra.mxu1 %v7686_v38 }
 0x362   : > { %3925 = vmatpush1.bf16.msra.mxu0 %v7687_v54  ;;  %3543 = vmatprep.subr.bf16.mxu1 %v7688_v47 }
 0x363   : > { %3927 = vmatprep.subr.bf16.mxu0 %v7689_v5 }
 0x365   : > { %3545 = vmatpush1.bf16.msra.mxu1 %v7690_v12 }
 0x366   : > { %3929 = vmatpush1.bf16.msra.mxu0 %v7691_v8  ;;  %3547 = vmatprep.subr.bf16.mxu1 %v7692_v4 }
 0x367   : > { %3931 = vmatprep.subr.bf16.mxu0 %v7693_v35 }
 0x369   : > { %3549 = vmatpush1.bf16.msra.mxu1 %v7694_v26 }
 0x36a   : > { %3933 = vmatpush1.bf16.msra.mxu0 %v7695_v44  ;;  %3551 = vmatprep.subr.bf16.mxu1 %v7696_v6 }
 0x36b   : > { %3935 = vmatprep.subr.bf16.mxu0 %v7697_v11 }
 0x36d   : > { %3553 = vmatpush1.bf16.msra.mxu1 %v7698_v7 }
 0x36e   : > { %3937 = vmatpush1.bf16.msra.mxu0 %v7699_v34  ;;  %3555 = vmatprep.subr.bf16.mxu1 %v7700_v51 }
 0x36f   : > { %3939 = vmatprep.subr.bf16.mxu0 %v7427_v16 }
 0x371   : > { %3557 = vmatpush1.bf16.msra.mxu1 %v7430_v41 }
 0x372   : > { %3941 = vmatpush1.bf16.msra.mxu0 %v7701_v39 }
 0x374   : > { %1741 = vmatmul.mubr.f32.vlgmr.msra.gmra.mrb[0].mxu1 %v7640_v33 }
 0x375   : > { %3025 = vmatmul.mubr.f32.vlgmr.msra.gmra.mrb[0].mxu0 %v7641_v57 }
 0x447   : > { %v1742_v37 = vpop.f32.mrb[0].mxu1 }
 0x448   : > { %v3026_v50 = vpop.f32.mrb[0].mxu0  ;;  %v1744_v31 = vpop.f32.mrb[1].mxu1 }
 0x449   : > { %v3942_v30 = vadd.f32 %v3026_v50, %v1742_v37  ;;  %v3028_v52 = vpop.f32.mrb[1].mxu0 }
 0x44a   : > { %v3943_v0 = vadd.f32 %v3028_v52, %v1744_v31 }
 0x44b   : > { %v3165_v32 = vmul.f32 -1.442695, %v3942_v30 }
 0x44c   : > { %v3166_v43 = vmul.f32 -1.442695, %v3943_v0 }
 0x44d   : > { %4032 = vpow2.f32 %v3165_v32 }
 0x44e   : > { %4034 = vpow2.f32 %v3166_v43 }
 0x457   : > { %v4033_v41 = vpop.eup %4032 }
 0x458   : > { %v4035_v16 = vpop.eup %4034  ;;  %v3037_v48 = vadd.f32 1.0, %v4033_v41 }
 0x459   : > { %v3038_v13 = vadd.f32 1.0, %v4035_v16 }
 0x45a   : > { %4036 = vrcp.f32 %v3037_v48 }
 0x45b   : > { %4038 = vrcp.f32 %v3038_v13 }
 0x464   : > { %v4037_v33 = vpop.eup %4036 }
 0x465   : > { %v4039_v57 = vpop.eup %4038  ;;  %v3046_v53 = vrot.slane %v4037_v33, %v7702_v55 }
 0x466   : > { %v3050_v36 = vrot.slane %v4039_v57, %v7702_v55 }
 0x468   : > { %v3053_v19 = vcombine.low %v3046_v53, %v3050_v36 }
 0x46a   : > { %v3055_v62 = vmul.f32 %v3053_v19, %v7703_v61 }
 0x46c   : > { %v3056_v59 = vadd.f32 %v4041_v1, %v3055_v62 }
 0x46e   : > { %3057 = vst [vmem:[%s228_s10] sm:$0xff] %v3056_v59 }
 0x46f   : > { %4113 = shalt.err (!%p4110_p7)
}
 0x470   : > { %s4114_s25 = scalar_lea.hbm %s6268_s5, 128  ;;  %s4118_s21 = scalar_lea.hbm %s6316_s4, 256 }
 0x471   : > { %p4115_p9 = scmp.ne.s32.totalorder %s6268_s5, %s4114_s25  ;;  %p4119_p0 = scmp.lt.u32.totalorder %s6268_s5, %s6316_s4 }
 0x472   : > { %p4120_p11 = scmp.lt.u32.totalorder %s4118_s21, %s4114_s25  ;;  %p4122_p4 = scmp.lt.u32.totalorder %s4114_s25, %s6268_s5 }
 0x473   : > { %p4116_p2 = pnand %p4115_p9, %p4295_p12 }
 0x474   : > { %p4121_p1 = por %p4120_p11, %p4119_p0 }
 0x475   : > { %p4117_p5 = pneg %p4116_p2 }
 0x476   : > { %p4123_p6 = por %p4122_p4, %p4121_p1 }
 0x478   : > { %p4124_p8 = pnand %p4123_p6, %p4117_p5 }
 0x47a   : > { %4127 = shalt.err (!%p4124_p8)
}
 0x47b   : > { %3970 = dma.vmem_to_hbm [thread:$0]  (%p4295_p12), %s6270_s14, 128, %s6268_s5, %s3059_s7  }
 0x47c PF: > { %s3085_s28 = sand.u32 1, %s4158_s15   ;;  %p7704_p10 = scmp.ne.s32.totalorder %s6752_s22, 0 }
 0x47d   : > { %p7705_p13 = scmp.ge.s32.totalorder %s4170_s18, 2  ;;  %s3086_s29 = scalar_lea.sflag [#allocation4], %s3085_s28 }
 0x47f   : > { %p3981_p3 = pnand %p7705_p13, %p7704_p10 }
 0x481   : > { %4153 = dma.done.wait (!%p3981_p3), %s3086_s29, 128  }
 0x482   : > { %4155 = vsyncadd (!%p3981_p3), %s3086_s29, 4294967168  ;;  %p18_p7 = scmp.ge.s32.totalorder %s4260_s27, 4   ;;  %s7706_s15 = smov %s4162_s16 }
 0x483   : > { %s7707_s16 = smov %s4166_s17  ;;  %s7708_s17 = smov %s4291_s24 }
 0x484   : > { %s7709_s18 = smov %s4260_s27  ;;  %20 = sbr.rel (!%p18_p7) target bundleno = 6 (0x6), region = 85 }
 0x48b   :  { %3091 = vsyncpa [#allocation3], 1 }
 0x48c   :  { %3093 = vsyncpa [#allocation3 + $0x1], 1 }
 0x48d   :  { %3094 = vsyncpa [#allocation6], 1 }
 0x48e   :  { %3095 = vsyncpa [#allocation4], 1 }
 0x48f   :  { %3097 = vsyncpa [#allocation4 + $0x1], 1 }

</bundles_post_ra>
